<compile_context>
chip_gen: v7x
topology: tpu7x:2x2x1
jax: 0.10.0
libtpu: 0.0.40
codegen_flags: <defaults>
</compile_context>

<pallas_src>
import functools

import jax
import jax.numpy as jnp
from jax.experimental import pallas as pl
from jax.experimental.pallas import tpu as pltpu


# ----------------------------------------------------------------------------
# Kernel 1: fused channel attention.
#   grid = (N, HW // thw)
#   - accumulate sum / max over HW tiles into VMEM scratch (arbitrary axis)
#   - on the last tile: ca[n] = sigmoid( relu(avg@W1)@W2 + relu(max@W1)@W2 )
# ----------------------------------------------------------------------------
def _channel_attention_kernel(x_ref, w1_ref, w2_ref, ca_ref, sum_sc, max_sc,
                              *, inv_hw):
    t = pl.program_id(1)

    @pl.when(t == 0)
    def _():
        sum_sc[...] = jnp.zeros_like(sum_sc)
        max_sc[...] = jnp.full(max_sc.shape, -jnp.inf, jnp.float32)

    x = x_ref[0]                                          # [thw, C]
    sum_sc[...] += jnp.sum(x, axis=0, keepdims=True)      # running sum
    max_sc[...] = jnp.maximum(max_sc[...], jnp.max(x, axis=0, keepdims=True))

    @pl.when(t == pl.num_programs(1) - 1)
    def _():
        avg = sum_sc[...] * inv_hw                        # [1, C]  (sum -> mean)
        mx = max_sc[...]                                  # [1, C]
        w1 = w1_ref[...]                                  # [C, C//r]
        w2 = w2_ref[...]                                  # [C//r, C]
        h = (jnp.maximum(jnp.dot(avg, w1, preferred_element_type=jnp.float32), 0.0)
             + jnp.maximum(jnp.dot(mx, w1, preferred_element_type=jnp.float32), 0.0))
        z = jnp.dot(h, w2, preferred_element_type=jnp.float32)
        ca_ref[0] = jax.nn.sigmoid(z)                     # [1, C]


# ----------------------------------------------------------------------------
# Kernel 2: fused  y = ca*x ; sp = [mean_c(y), max_c(y)] ; sa = sigmoid(conv7x7(sp))
#           out = sa * y.   One grid step per batch element (parallel).
# The 7x7 "same" conv is done with 49 shifted reads of zero-padded VMEM
# scratch maps; the 98 weights + bias live in SMEM as scalars.
# ----------------------------------------------------------------------------
def _cbam_apply_kernel(x_ref, ca_ref, w_ref, o_ref, mean_pad, max_pad, *, H, W):
    x = x_ref[0]                                          # [H, W, C]
    ca = ca_ref[0, 0]                                     # [C]  (already sigmoid'ed)
    y = x * ca[None, None, :]                             # channel attention applied

    mean_c = jnp.mean(y, axis=-1)                         # [H, W]
    max_c = jnp.max(y, axis=-1)                           # [H, W]

    # zero-padded maps (halo = 3) for the 7x7 convolution
    mean_pad[...] = jnp.zeros_like(mean_pad)
    max_pad[...] = jnp.zeros_like(max_pad)
    mean_pad[pl.ds(3, H), pl.ds(3, W)] = mean_c
    max_pad[pl.ds(3, H), pl.ds(3, W)] = max_c

    acc = jnp.zeros((H, W), jnp.float32)
    for i in range(7):
        for j in range(7):
            k = (i * 7 + j) * 2
            acc = acc + w_ref[k] * mean_pad[pl.ds(i, H), pl.ds(j, W)]
            acc = acc + w_ref[k + 1] * max_pad[pl.ds(i, H), pl.ds(j, W)]

    sa = jax.nn.sigmoid(acc + w_ref[98])                  # [H, W]
    o_ref[0] = y * sa[:, :, None]


# ----------------------------------------------------------------------------
# Wrapper
# ----------------------------------------------------------------------------
def _choose_hw_tile(hw, target=2048):
    """Largest divisor of hw that is <= target and a multiple of 8 (else hw)."""
    if hw <= target:
        return hw
    for d in range(target, 0, -1):
        if hw % d == 0 and d % 8 == 0:
            return d
    return hw


def cbam_forward(x_nchw, params):
    x = jnp.transpose(x_nchw, (0, 2, 3, 1)).astype(jnp.float32)   # NCHW -> NHWC
    N, H, W, C = x.shape
    HW = H * W
    hidden = params["mlp_w1"].shape[1]
    x3 = x.reshape(N, HW, C)
    thw = _choose_hw_tile(HW)

    # ---- channel attention: pooling + shared MLP + sigmoid, one kernel ------
    ca = pl.pallas_call(
        functools.partial(_channel_attention_kernel, inv_hw=1.0 / HW),
        out_shape=jax.ShapeDtypeStruct((N, 1, C), jnp.float32),
        grid=(N, HW // thw),
        in_specs=[
            pl.BlockSpec((1, thw, C), lambda n, t: (n, t, 0)),
            pl.BlockSpec((C, hidden), lambda n, t: (0, 0)),    # resident weights
            pl.BlockSpec((hidden, C), lambda n, t: (0, 0)),    # resident weights
        ],
        out_specs=pl.BlockSpec((1, 1, C), lambda n, t: (n, 0, 0)),
        scratch_shapes=[pltpu.VMEM((1, C), jnp.float32),
                        pltpu.VMEM((1, C), jnp.float32)],
        compiler_params=pltpu.CompilerParams(
            dimension_semantics=("parallel", "arbitrary")),
    )(x3, params["mlp_w1"], params["mlp_w2"])

    # ---- fused apply: ca*x, spatial pooling, 7x7 conv, sigmoid, sa*y --------
    w_flat = jnp.concatenate(
        [params["sa_w"].reshape(-1), params["sa_b"].reshape(-1)]
    ).astype(jnp.float32)                                  # [7*7*2 + 1] = [99]

    out = pl.pallas_call(
        functools.partial(_cbam_apply_kernel, H=H, W=W),
        out_shape=jax.ShapeDtypeStruct((N, H, W, C), jnp.float32),
        grid=(N,),
        in_specs=[
            pl.BlockSpec((1, H, W, C), lambda n: (n, 0, 0, 0)),
            pl.BlockSpec((1, 1, C), lambda n: (n, 0, 0)),
            pl.BlockSpec(memory_space=pltpu.MemorySpace.SMEM),
        ],
        out_specs=pl.BlockSpec((1, H, W, C), lambda n: (n, 0, 0, 0)),
        scratch_shapes=[pltpu.VMEM((H + 6, W + 6), jnp.float32),
                        pltpu.VMEM((H + 6, W + 6), jnp.float32)],
        compiler_params=pltpu.CompilerParams(
            dimension_semantics=("parallel",)),
    )(x, ca, w_flat)

    return jnp.transpose(out, (0, 3, 1, 2))                # back to NCHW


# ----------------------------------------------------------------------------
# Deterministic parameters (shapes per the PyTorch __init__, DOConv folded)
# ----------------------------------------------------------------------------
def make_cbam_params(key, channel, ratio=16):
    k1, k2, k3 = jax.random.split(key, 3)
    hidden = channel // ratio

    def _w(k, shape, fan_in):
        return ((2.0 / fan_in) ** 0.5) * jax.random.normal(k, shape, jnp.float32)

    return {
        # shared MLP: DOConv2d(C, C//r, 1, bias=False) + ReLU + DOConv2d(C//r, C, 1, bias=False)
        "mlp_w1": _w(k1, (channel, hidden), channel),
        "mlp_w2": _w(k2, (hidden, channel), hidden),
        # spatial attention: DOConv2d(2, 1, 7, padding=3) with bias; [KH, KW, Cin, Cout]
        "sa_w": _w(k3, (7, 7, 2, 1), 7 * 7 * 2),
        "sa_b": jnp.zeros((1,), jnp.float32),
    }


# ----------------------------------------------------------------------------
# Pure-JAX reference (for correctness check)
# ----------------------------------------------------------------------------
def cbam_reference(x_nchw, p):
    x = jnp.transpose(x_nchw, (0, 2, 3, 1)).astype(jnp.float32)
    avg = jnp.mean(x, axis=(1, 2))
    mx = jnp.max(x, axis=(1, 2))

    def mlp(v):
        return jnp.maximum(v @ p["mlp_w1"], 0.0) @ p["mlp_w2"]

    ca = jax.nn.sigmoid(mlp(avg) + mlp(mx))
    y = x * ca[:, None, None, :]
    sp = jnp.stack([jnp.mean(y, axis=-1), jnp.max(y, axis=-1)], axis=-1)
    sa = jax.lax.conv_general_dilated(
        sp, p["sa_w"], window_strides=(1, 1), padding="SAME",
        dimension_numbers=("NHWC", "HWIO", "NHWC")) + p["sa_b"]
    out = y * jax.nn.sigmoid(sa)
    return jnp.transpose(out, (0, 3, 1, 2))


# ----------------------------------------------------------------------------
if __name__ == "__main__":
    N, C, H, W = 2, 128, 16, 16          # channel must be >= ratio(16)

    key = jax.random.PRNGKey(0)
    kp, kx = jax.random.split(key)
    params = make_cbam_params(kp, C)
    x = jax.random.normal(kx, (N, C, H, W), jnp.float32)

    fwd = jax.jit(lambda v: cbam_forward(v, params))
    out = jax.block_until_ready(fwd(x))

    assert out.shape == (N, C, H, W), out.shape
    assert bool(jnp.all(jnp.isfinite(out)))

    ref = jax.block_until_ready(cbam_reference(x, params))
    err = float(jnp.max(jnp.abs(out - ref)))
    assert err < 1e-4, f"max abs error {err}"

    print("KERNEL_OK")
</pallas_src>

<mosaic_0001>
module attributes {stable_mosaic.version = 11 : i64} {
  func.func @_channel_attention_kernel(%arg0: i32, %arg1: i32, %arg2: memref<1x256x128xf32, #tpu.memory_space<vmem>>, %arg3: memref<128x8xf32, #tpu.memory_space<vmem>>, %arg4: memref<8x128xf32, #tpu.memory_space<vmem>>, %arg5: memref<1x1x128xf32, #tpu.memory_space<vmem>>, %arg6: memref<1x128xf32, #tpu.memory_space<vmem>>, %arg7: memref<1x128xf32, #tpu.memory_space<vmem>>) attributes {dimension_semantics = [#tpu.dimension_semantics<parallel>, #tpu.dimension_semantics<arbitrary>], iteration_bounds = array<i64: 2, 1>, scalar_prefetch = 0 : i64, scratch_operands = 2 : i64, tpu.core_type = #tpu.core_type<tc>, window_params = [{transform_indices = @transform_0, window_bounds = array<i64: 1, 256, 128>}, {pipeline_mode = #tpu.pipeline_mode<synchronous>, transform_indices = @transform_1, window_bounds = array<i64: 128, 8>}, {pipeline_mode = #tpu.pipeline_mode<synchronous>, transform_indices = @transform_2, window_bounds = array<i64: 8, 128>}, {transform_indices = @transform_3, window_bounds = array<i64: 1, 1, 128>}]} {
    %c0_i32 = arith.constant 0 : i32
    %0 = arith.cmpi eq, %arg1, %c0_i32 : i32
    %1 = arith.extui %0 : i1 to i32
    %c0_i32_0 = arith.constant 0 : i32
    %2 = arith.cmpi ne, %1, %c0_i32_0 : i32
    scf.if %2 {
      %cst_14 = arith.constant 0.000000e+00 : f32
      %18 = vector.broadcast %cst_14 : f32 to vector<1x128xf32>
      %c0_15 = arith.constant 0 : index
      %c0_16 = arith.constant 0 : index
      %19 = vector.load %arg6[%c0_15, %c0_16] : memref<1x128xf32, #tpu.memory_space<vmem>>, vector<1x128xf32>
      tpu.vector_store %arg6[%c0_15, %c0_16], %18 {strides = array<i32>} : memref<1x128xf32, #tpu.memory_space<vmem>>, vector<1x128xf32>,
      %cst_17 = arith.constant 0xFF800000 : f32
      %20 = vector.broadcast %cst_17 : f32 to vector<1x128xf32>
      %c0_18 = arith.constant 0 : index
      %c0_19 = arith.constant 0 : index
      %21 = vector.load %arg7[%c0_18, %c0_19] : memref<1x128xf32, #tpu.memory_space<vmem>>, vector<1x128xf32>
      tpu.vector_store %arg7[%c0_18, %c0_19], %20 {strides = array<i32>} : memref<1x128xf32, #tpu.memory_space<vmem>>, vector<1x128xf32>,
    } else {
    }
    %c0 = arith.constant 0 : index
    %c0_1 = arith.constant 0 : index
    %c0_2 = arith.constant 0 : index
    %3 = vector.load %arg2[%c0, %c0_1, %c0_2] : memref<1x256x128xf32, #tpu.memory_space<vmem>>, vector<1x256x128xf32>
    %4 = vector.shape_cast %3 : vector<1x256x128xf32> to vector<256x128xf32>
    %c0_3 = arith.constant 0 : index
    %c0_4 = arith.constant 0 : index
    %5 = vector.load %arg6[%c0_3, %c0_4] : memref<1x128xf32, #tpu.memory_space<vmem>>, vector<1x128xf32>
    %cst = arith.constant dense<0.000000e+00> : vector<128xf32>
    %6 = vector.multi_reduction <add>, %4, %cst [0] : vector<256x128xf32> to vector<128xf32>
    %7 = vector.shape_cast %6 : vector<128xf32> to vector<1x128xf32>
    %8 = arith.addf %5, %7 : vector<1x128xf32>
    %c0_5 = arith.constant 0 : index
    %c0_6 = arith.constant 0 : index
    %9 = vector.load %arg6[%c0_5, %c0_6] : memref<1x128xf32, #tpu.memory_space<vmem>>, vector<1x128xf32>
    tpu.vector_store %arg6[%c0_5, %c0_6], %8 {strides = array<i32>} : memref<1x128xf32, #tpu.memory_space<vmem>>, vector<1x128xf32>,
    %c0_7 = arith.constant 0 : index
    %c0_8 = arith.constant 0 : index
    %10 = vector.load %arg7[%c0_7, %c0_8] : memref<1x128xf32, #tpu.memory_space<vmem>>, vector<1x128xf32>
    %cst_9 = arith.constant dense<0xFF800000> : vector<128xf32>
    %11 = vector.multi_reduction <maximumf>, %4, %cst_9 [0] : vector<256x128xf32> to vector<128xf32>
    %12 = vector.shape_cast %11 : vector<128xf32> to vector<1x128xf32>
    %13 = arith.maximumf %10, %12 : vector<1x128xf32>
    %c0_10 = arith.constant 0 : index
    %c0_11 = arith.constant 0 : index
    %14 = vector.load %arg7[%c0_10, %c0_11] : memref<1x128xf32, #tpu.memory_space<vmem>>, vector<1x128xf32>
    tpu.vector_store %arg7[%c0_10, %c0_11], %13 {strides = array<i32>} : memref<1x128xf32, #tpu.memory_space<vmem>>, vector<1x128xf32>,
    %c0_i32_12 = arith.constant 0 : i32
    %15 = arith.cmpi eq, %arg1, %c0_i32_12 : i32
    %16 = arith.extui %15 : i1 to i32
    %c0_i32_13 = arith.constant 0 : i32
    %17 = arith.cmpi ne, %16, %c0_i32_13 : i32
    scf.if %17 {
      %c0_14 = arith.constant 0 : index
      %c0_15 = arith.constant 0 : index
      %18 = vector.load %arg6[%c0_14, %c0_15] : memref<1x128xf32, #tpu.memory_space<vmem>>, vector<1x128xf32>
      %cst_16 = arith.constant 3.906250e-03 : f32
      %19 = vector.broadcast %cst_16 : f32 to vector<1x128xf32>
      %20 = arith.mulf %18, %19 : vector<1x128xf32>
      %c0_17 = arith.constant 0 : index
      %c0_18 = arith.constant 0 : index
      %21 = vector.load %arg7[%c0_17, %c0_18] : memref<1x128xf32, #tpu.memory_space<vmem>>, vector<1x128xf32>
      %c0_19 = arith.constant 0 : index
      %c0_20 = arith.constant 0 : index
      %22 = vector.load %arg3[%c0_19, %c0_20] : memref<128x8xf32, #tpu.memory_space<vmem>>, vector<128x8xf32>
      %c0_21 = arith.constant 0 : index
      %c0_22 = arith.constant 0 : index
      %23 = vector.load %arg4[%c0_21, %c0_22] : memref<8x128xf32, #tpu.memory_space<vmem>>, vector<8x128xf32>
      %cst_23 = arith.constant dense<0.000000e+00> : vector<1x8xf32>
      %24 = tpu.matmul %20, %22, %cst_23 {dimension_numbers = #tpu.dot_dimension_numbers<[1], [0], [0], [1], [0, 0, 1, 1], [], []>} : vector<1x128xf32>, vector<128x8xf32>, vector<1x8xf32> -> vector<1x8xf32>
      %cst_24 = arith.constant 0.000000e+00 : f32
      %25 = vector.broadcast %cst_24 : f32 to vector<1x8xf32>
      %26 = arith.maximumf %24, %25 : vector<1x8xf32>
      %cst_25 = arith.constant dense<0.000000e+00> : vector<1x8xf32>
      %27 = tpu.matmul %21, %22, %cst_25 {dimension_numbers = #tpu.dot_dimension_numbers<[1], [0], [0], [1], [0, 0, 1, 1], [], []>} : vector<1x128xf32>, vector<128x8xf32>, vector<1x8xf32> -> vector<1x8xf32>
      %cst_26 = arith.constant 0.000000e+00 : f32
      %28 = vector.broadcast %cst_26 : f32 to vector<1x8xf32>
      %29 = arith.maximumf %27, %28 : vector<1x8xf32>
      %30 = arith.addf %26, %29 : vector<1x8xf32>
      %cst_27 = arith.constant dense<0.000000e+00> : vector<1x128xf32>
      %31 = tpu.matmul %30, %23, %cst_27 {dimension_numbers = #tpu.dot_dimension_numbers<[1], [0], [0], [1], [0, 0, 1, 1], [], []>} : vector<1x8xf32>, vector<8x128xf32>, vector<1x128xf32> -> vector<1x128xf32>
      %32 = arith.negf %31 : vector<1x128xf32>
      %33 = math.exp %32 : vector<1x128xf32>
      %cst_28 = arith.constant 1.000000e+00 : f32
      %34 = vector.broadcast %cst_28 : f32 to vector<1x128xf32>
      %35 = arith.addf %34, %33 : vector<1x128xf32>
      %36 = arith.divf %34, %35 : vector<1x128xf32>
      %c0_29 = arith.constant 0 : index
      %c0_30 = arith.constant 0 : index
      %c0_31 = arith.constant 0 : index
      %37 = vector.load %arg5[%c0_29, %c0_30, %c0_31] : memref<1x1x128xf32, #tpu.memory_space<vmem>>, vector<1x1x128xf32>
      %38 = vector.shape_cast %37 : vector<1x1x128xf32> to vector<1x128xf32>
      %39 = vector.shape_cast %36 : vector<1x128xf32> to vector<1x1x128xf32>
      tpu.vector_store %arg5[%c0_29, %c0_30, %c0_31], %39 {strides = array<i32>} : memref<1x1x128xf32, #tpu.memory_space<vmem>>, vector<1x1x128xf32>,
    } else {
    }
    return
  }
  func.func @transform_0(%arg0: i32, %arg1: i32) -> (i32, i32, i32) {
    %c0_i32 = arith.constant 0 : i32
    %c0_i32_0 = arith.constant 0 : i32
    return %arg0, %arg1, %c0_i32 : i32, i32, i32
  }
  func.func @transform_1(%arg0: i32, %arg1: i32) -> (i32, i32) {
    %c0_i32 = arith.constant 0 : i32
    %c0_i32_0 = arith.constant 0 : i32
    %c0_i32_1 = arith.constant 0 : i32
    return %c0_i32, %c0_i32_0 : i32, i32
  }
  func.func @transform_2(%arg0: i32, %arg1: i32) -> (i32, i32) {
    %c0_i32 = arith.constant 0 : i32
    %c0_i32_0 = arith.constant 0 : i32
    %c0_i32_1 = arith.constant 0 : i32
    return %c0_i32, %c0_i32_0 : i32, i32
  }
  func.func @transform_3(%arg0: i32, %arg1: i32) -> (i32, i32, i32) {
    %c0_i32 = arith.constant 0 : i32
    %c0_i32_0 = arith.constant 0 : i32
    %c0_i32_1 = arith.constant 0 : i32
    return %arg0, %c0_i32, %c0_i32_0 : i32, i32, i32
  }
}

module attributes {stable_mosaic.version = 11 : i64} {
  func.func @_cbam_apply_kernel(%arg0: i32, %arg1: memref<1x16x16x128xf32, #tpu.memory_space<vmem>>, %arg2: memref<1x1x128xf32, #tpu.memory_space<vmem>>, %arg3: memref<99xf32, #tpu.memory_space<smem>>, %arg4: memref<1x16x16x128xf32, #tpu.memory_space<vmem>>, %arg5: memref<22x22xf32, #tpu.memory_space<vmem>>, %arg6: memref<22x22xf32, #tpu.memory_space<vmem>>) attributes {dimension_semantics = [#tpu.dimension_semantics<parallel>], iteration_bounds = array<i64: 2>, scalar_prefetch = 0 : i64, scratch_operands = 2 : i64, tpu.core_type = #tpu.core_type<tc>, window_params = [{transform_indices = @transform_0, window_bounds = array<i64: 1, 16, 16, 128>}, {transform_indices = @transform_1, window_bounds = array<i64: 1, 1, 128>}, {transform_indices = @transform_2, window_bounds = array<i64: 99>}, {transform_indices = @transform_3, window_bounds = array<i64: 1, 16, 16, 128>}]} {
    %c0 = arith.constant 0 : index
    %c0_0 = arith.constant 0 : index
    %c0_1 = arith.constant 0 : index
    %c0_2 = arith.constant 0 : index
    %0 = vector.load %arg1[%c0, %c0_0, %c0_1, %c0_2] : memref<1x16x16x128xf32, #tpu.memory_space<vmem>>, vector<1x16x16x128xf32>
    %1 = vector.shape_cast %0 : vector<1x16x16x128xf32> to vector<16x16x128xf32>
    %c0_3 = arith.constant 0 : index
    %c0_4 = arith.constant 0 : index
    %c0_5 = arith.constant 0 : index
    %2 = vector.load %arg2[%c0_3, %c0_4, %c0_5] : memref<1x1x128xf32, #tpu.memory_space<vmem>>, vector<1x1x128xf32>
    %3 = vector.shape_cast %2 : vector<1x1x128xf32> to vector<128xf32>
    %4 = vector.shape_cast %3 : vector<128xf32> to vector<1x1x128xf32>
    %5 = vector.broadcast %4 : vector<1x1x128xf32> to vector<16x16x128xf32>
    %6 = arith.mulf %1, %5 : vector<16x16x128xf32>
    %cst = arith.constant dense<0.000000e+00> : vector<16x16xf32>
    %7 = vector.multi_reduction <add>, %6, %cst [2] : vector<16x16x128xf32> to vector<16x16xf32>
    %cst_6 = arith.constant 1.280000e+02 : f32
    %8 = vector.broadcast %cst_6 : f32 to vector<16x16xf32>
    %9 = arith.divf %7, %8 : vector<16x16xf32>
    %cst_7 = arith.constant dense<0xFF800000> : vector<16x16xf32>
    %10 = vector.multi_reduction <maximumf>, %6, %cst_7 [2] : vector<16x16x128xf32> to vector<16x16xf32>
    %cst_8 = arith.constant 0.000000e+00 : f32
    %11 = vector.broadcast %cst_8 : f32 to vector<22x22xf32>
    %c0_9 = arith.constant 0 : index
    %c0_10 = arith.constant 0 : index
    %12 = vector.load %arg5[%c0_9, %c0_10] : memref<22x22xf32, #tpu.memory_space<vmem>>, vector<22x22xf32>
    tpu.vector_store %arg5[%c0_9, %c0_10], %11 {strides = array<i32>} : memref<22x22xf32, #tpu.memory_space<vmem>>, vector<22x22xf32>,
    %cst_11 = arith.constant 0.000000e+00 : f32
    %13 = vector.broadcast %cst_11 : f32 to vector<22x22xf32>
    %c0_12 = arith.constant 0 : index
    %c0_13 = arith.constant 0 : index
    %14 = vector.load %arg6[%c0_12, %c0_13] : memref<22x22xf32, #tpu.memory_space<vmem>>, vector<22x22xf32>
    tpu.vector_store %arg6[%c0_12, %c0_13], %13 {strides = array<i32>} : memref<22x22xf32, #tpu.memory_space<vmem>>, vector<22x22xf32>,
    %c3 = arith.constant 3 : index
    %c3_14 = arith.constant 3 : index
    %15 = vector.load %arg5[%c3, %c3_14] : memref<22x22xf32, #tpu.memory_space<vmem>>, vector<16x16xf32>
    tpu.vector_store %arg5[%c3, %c3_14], %9 {strides = array<i32>} : memref<22x22xf32, #tpu.memory_space<vmem>>, vector<16x16xf32>,
    %c3_15 = arith.constant 3 : index
    %c3_16 = arith.constant 3 : index
    %16 = vector.load %arg6[%c3_15, %c3_16] : memref<22x22xf32, #tpu.memory_space<vmem>>, vector<16x16xf32>
    tpu.vector_store %arg6[%c3_15, %c3_16], %10 {strides = array<i32>} : memref<22x22xf32, #tpu.memory_space<vmem>>, vector<16x16xf32>,
    %cst_17 = arith.constant 0.000000e+00 : f32
    %17 = vector.broadcast %cst_17 : f32 to vector<16x16xf32>
    %c0_18 = arith.constant 0 : index
    %18 = memref.load %arg3[%c0_18] : memref<99xf32, #tpu.memory_space<smem>>
    %c0_19 = arith.constant 0 : index
    %c0_20 = arith.constant 0 : index
    %19 = vector.load %arg5[%c0_19, %c0_20] : memref<22x22xf32, #tpu.memory_space<vmem>>, vector<16x16xf32>
    %20 = vector.broadcast %18 : f32 to vector<16x16xf32>
    %21 = arith.mulf %20, %19 : vector<16x16xf32>
    %22 = arith.addf %17, %21 : vector<16x16xf32>
    %c1 = arith.constant 1 : index
    %23 = memref.load %arg3[%c1] : memref<99xf32, #tpu.memory_space<smem>>
    %c0_21 = arith.constant 0 : index
    %c0_22 = arith.constant 0 : index
    %24 = vector.load %arg6[%c0_21, %c0_22] : memref<22x22xf32, #tpu.memory_space<vmem>>, vector<16x16xf32>
    %25 = vector.broadcast %23 : f32 to vector<16x16xf32>
    %26 = arith.mulf %25, %24 : vector<16x16xf32>
    %27 = arith.addf %22, %26 : vector<16x16xf32>
    %c2 = arith.constant 2 : index
    %28 = memref.load %arg3[%c2] : memref<99xf32, #tpu.memory_space<smem>>
    %c0_23 = arith.constant 0 : index
    %c1_24 = arith.constant 1 : index
    %29 = vector.load %arg5[%c0_23, %c1_24] : memref<22x22xf32, #tpu.memory_space<vmem>>, vector<16x16xf32>
    %30 = vector.broadcast %28 : f32 to vector<16x16xf32>
    %31 = arith.mulf %30, %29 : vector<16x16xf32>
    %32 = arith.addf %27, %31 : vector<16x16xf32>
    %c3_25 = arith.constant 3 : index
    %33 = memref.load %arg3[%c3_25] : memref<99xf32, #tpu.memory_space<smem>>
    %c0_26 = arith.constant 0 : index
    %c1_27 = arith.constant 1 : index
    %34 = vector.load %arg6[%c0_26, %c1_27] : memref<22x22xf32, #tpu.memory_space<vmem>>, vector<16x16xf32>
    %35 = vector.broadcast %33 : f32 to vector<16x16xf32>
    %36 = arith.mulf %35, %34 : vector<16x16xf32>
    %37 = arith.addf %32, %36 : vector<16x16xf32>
    %c4 = arith.constant 4 : index
    %38 = memref.load %arg3[%c4] : memref<99xf32, #tpu.memory_space<smem>>
    %c0_28 = arith.constant 0 : index
    %c2_29 = arith.constant 2 : index
    %39 = vector.load %arg5[%c0_28, %c2_29] : memref<22x22xf32, #tpu.memory_space<vmem>>, vector<16x16xf32>
    %40 = vector.broadcast %38 : f32 to vector<16x16xf32>
    %41 = arith.mulf %40, %39 : vector<16x16xf32>
    %42 = arith.addf %37, %41 : vector<16x16xf32>
    %c5 = arith.constant 5 : index
    %43 = memref.load %arg3[%c5] : memref<99xf32, #tpu.memory_space<smem>>
    %c0_30 = arith.constant 0 : index
    %c2_31 = arith.constant 2 : index
    %44 = vector.load %arg6[%c0_30, %c2_31] : memref<22x22xf32, #tpu.memory_space<vmem>>, vector<16x16xf32>
    %45 = vector.broadcast %43 : f32 to vector<16x16xf32>
    %46 = arith.mulf %45, %44 : vector<16x16xf32>
    %47 = arith.addf %42, %46 : vector<16x16xf32>
    %c6 = arith.constant 6 : index
    %48 = memref.load %arg3[%c6] : memref<99xf32, #tpu.memory_space<smem>>
    %c0_32 = arith.constant 0 : index
    %c3_33 = arith.constant 3 : index
    %49 = vector.load %arg5[%c0_32, %c3_33] : memref<22x22xf32, #tpu.memory_space<vmem>>, vector<16x16xf32>
    %50 = vector.broadcast %48 : f32 to vector<16x16xf32>
    %51 = arith.mulf %50, %49 : vector<16x16xf32>
    %52 = arith.addf %47, %51 : vector<16x16xf32>
    %c7 = arith.constant 7 : index
    %53 = memref.load %arg3[%c7] : memref<99xf32, #tpu.memory_space<smem>>
    %c0_34 = arith.constant 0 : index
    %c3_35 = arith.constant 3 : index
    %54 = vector.load %arg6[%c0_34, %c3_35] : memref<22x22xf32, #tpu.memory_space<vmem>>, vector<16x16xf32>
    %55 = vector.broadcast %53 : f32 to vector<16x16xf32>
    %56 = arith.mulf %55, %54 : vector<16x16xf32>
    %57 = arith.addf %52, %56 : vector<16x16xf32>
    %c8 = arith.constant 8 : index
    %58 = memref.load %arg3[%c8] : memref<99xf32, #tpu.memory_space<smem>>
    %c0_36 = arith.constant 0 : index
    %c4_37 = arith.constant 4 : index
    %59 = vector.load %arg5[%c0_36, %c4_37] : memref<22x22xf32, #tpu.memory_space<vmem>>, vector<16x16xf32>
    %60 = vector.broadcast %58 : f32 to vector<16x16xf32>
    %61 = arith.mulf %60, %59 : vector<16x16xf32>
    %62 = arith.addf %57, %61 : vector<16x16xf32>
    %c9 = arith.constant 9 : index
    %63 = memref.load %arg3[%c9] : memref<99xf32, #tpu.memory_space<smem>>
    %c0_38 = arith.constant 0 : index
    %c4_39 = arith.constant 4 : index
    %64 = vector.load %arg6[%c0_38, %c4_39] : memref<22x22xf32, #tpu.memory_space<vmem>>, vector<16x16xf32>
    %65 = vector.broadcast %63 : f32 to vector<16x16xf32>
    %66 = arith.mulf %65, %64 : vector<16x16xf32>
    %67 = arith.addf %62, %66 : vector<16x16xf32>
    %c10 = arith.constant 10 : index
    %68 = memref.load %arg3[%c10] : memref<99xf32, #tpu.memory_space<smem>>
    %c0_40 = arith.constant 0 : index
    %c5_41 = arith.constant 5 : index
    %69 = vector.load %arg5[%c0_40, %c5_41] : memref<22x22xf32, #tpu.memory_space<vmem>>, vector<16x16xf32>
    %70 = vector.broadcast %68 : f32 to vector<16x16xf32>
    %71 = arith.mulf %70, %69 : vector<16x16xf32>
    %72 = arith.addf %67, %71 : vector<16x16xf32>
    %c11 = arith.constant 11 : index
    %73 = memref.load %arg3[%c11] : memref<99xf32, #tpu.memory_space<smem>>
    %c0_42 = arith.constant 0 : index
    %c5_43 = arith.constant 5 : index
    %74 = vector.load %arg6[%c0_42, %c5_43] : memref<22x22xf32, #tpu.memory_space<vmem>>, vector<16x16xf32>
    %75 = vector.broadcast %73 : f32 to vector<16x16xf32>
    %76 = arith.mulf %75, %74 : vector<16x16xf32>
    %77 = arith.addf %72, %76 : vector<16x16xf32>
    %c12 = arith.constant 12 : index
    %78 = memref.load %arg3[%c12] : memref<99xf32, #tpu.memory_space<smem>>
    %c0_44 = arith.constant 0 : index
    %c6_45 = arith.constant 6 : index
    %79 = vector.load %arg5[%c0_44, %c6_45] : memref<22x22xf32, #tpu.memory_space<vmem>>, vector<16x16xf32>
    %80 = vector.broadcast %78 : f32 to vector<16x16xf32>
    %81 = arith.mulf %80, %79 : vector<16x16xf32>
    %82 = arith.addf %77, %81 : vector<16x16xf32>
    %c13 = arith.constant 13 : index
    %83 = memref.load %arg3[%c13] : memref<99xf32, #tpu.memory_space<smem>>
    %c0_46 = arith.constant 0 : index
    %c6_47 = arith.constant 6 : index
    %84 = vector.load %arg6[%c0_46, %c6_47] : memref<22x22xf32, #tpu.memory_space<vmem>>, vector<16x16xf32>
    %85 = vector.broadcast %83 : f32 to vector<16x16xf32>
    %86 = arith.mulf %85, %84 : vector<16x16xf32>
    %87 = arith.addf %82, %86 : vector<16x16xf32>
    %c14 = arith.constant 14 : index
    %88 = memref.load %arg3[%c14] : memref<99xf32, #tpu.memory_space<smem>>
    %c1_48 = arith.constant 1 : index
    %c0_49 = arith.constant 0 : index
    %89 = vector.load %arg5[%c1_48, %c0_49] : memref<22x22xf32, #tpu.memory_space<vmem>>, vector<16x16xf32>
    %90 = vector.broadcast %88 : f32 to vector<16x16xf32>
    %91 = arith.mulf %90, %89 : vector<16x16xf32>
    %92 = arith.addf %87, %91 : vector<16x16xf32>
    %c15 = arith.constant 15 : index
    %93 = memref.load %arg3[%c15] : memref<99xf32, #tpu.memory_space<smem>>
    %c1_50 = arith.constant 1 : index
    %c0_51 = arith.constant 0 : index
    %94 = vector.load %arg6[%c1_50, %c0_51] : memref<22x22xf32, #tpu.memory_space<vmem>>, vector<16x16xf32>
    %95 = vector.broadcast %93 : f32 to vector<16x16xf32>
    %96 = arith.mulf %95, %94 : vector<16x16xf32>
    %97 = arith.addf %92, %96 : vector<16x16xf32>
    %c16 = arith.constant 16 : index
    %98 = memref.load %arg3[%c16] : memref<99xf32, #tpu.memory_space<smem>>
    %c1_52 = arith.constant 1 : index
    %c1_53 = arith.constant 1 : index
    %99 = vector.load %arg5[%c1_52, %c1_53] : memref<22x22xf32, #tpu.memory_space<vmem>>, vector<16x16xf32>
    %100 = vector.broadcast %98 : f32 to vector<16x16xf32>
    %101 = arith.mulf %100, %99 : vector<16x16xf32>
    %102 = arith.addf %97, %101 : vector<16x16xf32>
    %c17 = arith.constant 17 : index
    %103 = memref.load %arg3[%c17] : memref<99xf32, #tpu.memory_space<smem>>
    %c1_54 = arith.constant 1 : index
    %c1_55 = arith.constant 1 : index
    %104 = vector.load %arg6[%c1_54, %c1_55] : memref<22x22xf32, #tpu.memory_space<vmem>>, vector<16x16xf32>
    %105 = vector.broadcast %103 : f32 to vector<16x16xf32>
    %106 = arith.mulf %105, %104 : vector<16x16xf32>
    %107 = arith.addf %102, %106 : vector<16x16xf32>
    %c18 = arith.constant 18 : index
    %108 = memref.load %arg3[%c18] : memref<99xf32, #tpu.memory_space<smem>>
    %c1_56 = arith.constant 1 : index
    %c2_57 = arith.constant 2 : index
    %109 = vector.load %arg5[%c1_56, %c2_57] : memref<22x22xf32, #tpu.memory_space<vmem>>, vector<16x16xf32>
    %110 = vector.broadcast %108 : f32 to vector<16x16xf32>
    %111 = arith.mulf %110, %109 : vector<16x16xf32>
    %112 = arith.addf %107, %111 : vector<16x16xf32>
    %c19 = arith.constant 19 : index
    %113 = memref.load %arg3[%c19] : memref<99xf32, #tpu.memory_space<smem>>
    %c1_58 = arith.constant 1 : index
    %c2_59 = arith.constant 2 : index
    %114 = vector.load %arg6[%c1_58, %c2_59] : memref<22x22xf32, #tpu.memory_space<vmem>>, vector<16x16xf32>
    %115 = vector.broadcast %113 : f32 to vector<16x16xf32>
    %116 = arith.mulf %115, %114 : vector<16x16xf32>
    %117 = arith.addf %112, %116 : vector<16x16xf32>
    %c20 = arith.constant 20 : index
    %118 = memref.load %arg3[%c20] : memref<99xf32, #tpu.memory_space<smem>>
    %c1_60 = arith.constant 1 : index
    %c3_61 = arith.constant 3 : index
    %119 = vector.load %arg5[%c1_60, %c3_61] : memref<22x22xf32, #tpu.memory_space<vmem>>, vector<16x16xf32>
    %120 = vector.broadcast %118 : f32 to vector<16x16xf32>
    %121 = arith.mulf %120, %119 : vector<16x16xf32>
    %122 = arith.addf %117, %121 : vector<16x16xf32>
    %c21 = arith.constant 21 : index
    %123 = memref.load %arg3[%c21] : memref<99xf32, #tpu.memory_space<smem>>
    %c1_62 = arith.constant 1 : index
    %c3_63 = arith.constant 3 : index
    %124 = vector.load %arg6[%c1_62, %c3_63] : memref<22x22xf32, #tpu.memory_space<vmem>>, vector<16x16xf32>
    %125 = vector.broadcast %123 : f32 to vector<16x16xf32>
    %126 = arith.mulf %125, %124 : vector<16x16xf32>
    %127 = arith.addf %122, %126 : vector<16x16xf32>
    %c22 = arith.constant 22 : index
    %128 = memref.load %arg3[%c22] : memref<99xf32, #tpu.memory_space<smem>>
    %c1_64 = arith.constant 1 : index
    %c4_65 = arith.constant 4 : index
    %129 = vector.load %arg5[%c1_64, %c4_65] : memref<22x22xf32, #tpu.memory_space<vmem>>, vector<16x16xf32>
    %130 = vector.broadcast %128 : f32 to vector<16x16xf32>
    %131 = arith.mulf %130, %129 : vector<16x16xf32>
    %132 = arith.addf %127, %131 : vector<16x16xf32>
    %c23 = arith.constant 23 : index
    %133 = memref.load %arg3[%c23] : memref<99xf32, #tpu.memory_space<smem>>
    %c1_66 = arith.constant 1 : index
    %c4_67 = arith.constant 4 : index
    %134 = vector.load %arg6[%c1_66, %c4_67] : memref<22x22xf32, #tpu.memory_space<vmem>>, vector<16x16xf32>
    %135 = vector.broadcast %133 : f32 to vector<16x16xf32>
    %136 = arith.mulf %135, %134 : vector<16x16xf32>
    %137 = arith.addf %132, %136 : vector<16x16xf32>
    %c24 = arith.constant 24 : index
    %138 = memref.load %arg3[%c24] : memref<99xf32, #tpu.memory_space<smem>>
    %c1_68 = arith.constant 1 : index
    %c5_69 = arith.constant 5 : index
    %139 = vector.load %arg5[%c1_68, %c5_69] : memref<22x22xf32, #tpu.memory_space<vmem>>, vector<16x16xf32>
    %140 = vector.broadcast %138 : f32 to vector<16x16xf32>
    %141 = arith.mulf %140, %139 : vector<16x16xf32>
    %142 = arith.addf %137, %141 : vector<16x16xf32>
    %c25 = arith.constant 25 : index
    %143 = memref.load %arg3[%c25] : memref<99xf32, #tpu.memory_space<smem>>
    %c1_70 = arith.constant 1 : index
    %c5_71 = arith.constant 5 : index
    %144 = vector.load %arg6[%c1_70, %c5_71] : memref<22x22xf32, #tpu.memory_space<vmem>>, vector<16x16xf32>
    %145 = vector.broadcast %143 : f32 to vector<16x16xf32>
    %146 = arith.mulf %145, %144 : vector<16x16xf32>
    %147 = arith.addf %142, %146 : vector<16x16xf32>
    %c26 = arith.constant 26 : index
    %148 = memref.load %arg3[%c26] : memref<99xf32, #tpu.memory_space<smem>>
    %c1_72 = arith.constant 1 : index
    %c6_73 = arith.constant 6 : index
    %149 = vector.load %arg5[%c1_72, %c6_73] : memref<22x22xf32, #tpu.memory_space<vmem>>, vector<16x16xf32>
    %150 = vector.broadcast %148 : f32 to vector<16x16xf32>
    %151 = arith.mulf %150, %149 : vector<16x16xf32>
    %152 = arith.addf %147, %151 : vector<16x16xf32>
    %c27 = arith.constant 27 : index
    %153 = memref.load %arg3[%c27] : memref<99xf32, #tpu.memory_space<smem>>
    %c1_74 = arith.constant 1 : index
    %c6_75 = arith.constant 6 : index
    %154 = vector.load %arg6[%c1_74, %c6_75] : memref<22x22xf32, #tpu.memory_space<vmem>>, vector<16x16xf32>
    %155 = vector.broadcast %153 : f32 to vector<16x16xf32>
    %156 = arith.mulf %155, %154 : vector<16x16xf32>
    %157 = arith.addf %152, %156 : vector<16x16xf32>
    %c28 = arith.constant 28 : index
    %158 = memref.load %arg3[%c28] : memref<99xf32, #tpu.memory_space<smem>>
    %c2_76 = arith.constant 2 : index
    %c0_77 = arith.constant 0 : index
    %159 = vector.load %arg5[%c2_76, %c0_77] : memref<22x22xf32, #tpu.memory_space<vmem>>, vector<16x16xf32>
    %160 = vector.broadcast %158 : f32 to vector<16x16xf32>
    %161 = arith.mulf %160, %159 : vector<16x16xf32>
    %162 = arith.addf %157, %161 : vector<16x16xf32>
    %c29 = arith.constant 29 : index
    %163 = memref.load %arg3[%c29] : memref<99xf32, #tpu.memory_space<smem>>
    %c2_78 = arith.constant 2 : index
    %c0_79 = arith.constant 0 : index
    %164 = vector.load %arg6[%c2_78, %c0_79] : memref<22x22xf32, #tpu.memory_space<vmem>>, vector<16x16xf32>
    %165 = vector.broadcast %163 : f32 to vector<16x16xf32>
    %166 = arith.mulf %165, %164 : vector<16x16xf32>
    %167 = arith.addf %162, %166 : vector<16x16xf32>
    %c30 = arith.constant 30 : index
    %168 = memref.load %arg3[%c30] : memref<99xf32, #tpu.memory_space<smem>>
    %c2_80 = arith.constant 2 : index
    %c1_81 = arith.constant 1 : index
    %169 = vector.load %arg5[%c2_80, %c1_81] : memref<22x22xf32, #tpu.memory_space<vmem>>, vector<16x16xf32>
    %170 = vector.broadcast %168 : f32 to vector<16x16xf32>
    %171 = arith.mulf %170, %169 : vector<16x16xf32>
    %172 = arith.addf %167, %171 : vector<16x16xf32>
    %c31 = arith.constant 31 : index
    %173 = memref.load %arg3[%c31] : memref<99xf32, #tpu.memory_space<smem>>
    %c2_82 = arith.constant 2 : index
    %c1_83 = arith.constant 1 : index
    %174 = vector.load %arg6[%c2_82, %c1_83] : memref<22x22xf32, #tpu.memory_space<vmem>>, vector<16x16xf32>
    %175 = vector.broadcast %173 : f32 to vector<16x16xf32>
    %176 = arith.mulf %175, %174 : vector<16x16xf32>
    %177 = arith.addf %172, %176 : vector<16x16xf32>
    %c32 = arith.constant 32 : index
    %178 = memref.load %arg3[%c32] : memref<99xf32, #tpu.memory_space<smem>>
    %c2_84 = arith.constant 2 : index
    %c2_85 = arith.constant 2 : index
    %179 = vector.load %arg5[%c2_84, %c2_85] : memref<22x22xf32, #tpu.memory_space<vmem>>, vector<16x16xf32>
    %180 = vector.broadcast %178 : f32 to vector<16x16xf32>
    %181 = arith.mulf %180, %179 : vector<16x16xf32>
    %182 = arith.addf %177, %181 : vector<16x16xf32>
    %c33 = arith.constant 33 : index
    %183 = memref.load %arg3[%c33] : memref<99xf32, #tpu.memory_space<smem>>
    %c2_86 = arith.constant 2 : index
    %c2_87 = arith.constant 2 : index
    %184 = vector.load %arg6[%c2_86, %c2_87] : memref<22x22xf32, #tpu.memory_space<vmem>>, vector<16x16xf32>
    %185 = vector.broadcast %183 : f32 to vector<16x16xf32>
    %186 = arith.mulf %185, %184 : vector<16x16xf32>
    %187 = arith.addf %182, %186 : vector<16x16xf32>
    %c34 = arith.constant 34 : index
    %188 = memref.load %arg3[%c34] : memref<99xf32, #tpu.memory_space<smem>>
    %c2_88 = arith.constant 2 : index
    %c3_89 = arith.constant 3 : index
    %189 = vector.load %arg5[%c2_88, %c3_89] : memref<22x22xf32, #tpu.memory_space<vmem>>, vector<16x16xf32>
    %190 = vector.broadcast %188 : f32 to vector<16x16xf32>
    %191 = arith.mulf %190, %189 : vector<16x16xf32>
    %192 = arith.addf %187, %191 : vector<16x16xf32>
    %c35 = arith.constant 35 : index
    %193 = memref.load %arg3[%c35] : memref<99xf32, #tpu.memory_space<smem>>
    %c2_90 = arith.constant 2 : index
    %c3_91 = arith.constant 3 : index
    %194 = vector.load %arg6[%c2_90, %c3_91] : memref<22x22xf32, #tpu.memory_space<vmem>>, vector<16x16xf32>
    %195 = vector.broadcast %193 : f32 to vector<16x16xf32>
    %196 = arith.mulf %195, %194 : vector<16x16xf32>
    %197 = arith.addf %192, %196 : vector<16x16xf32>
    %c36 = arith.constant 36 : index
    %198 = memref.load %arg3[%c36] : memref<99xf32, #tpu.memory_space<smem>>
    %c2_92 = arith.constant 2 : index
    %c4_93 = arith.constant 4 : index
    %199 = vector.load %arg5[%c2_92, %c4_93] : memref<22x22xf32, #tpu.memory_space<vmem>>, vector<16x16xf32>
    %200 = vector.broadcast %198 : f32 to vector<16x16xf32>
    %201 = arith.mulf %200, %199 : vector<16x16xf32>
    %202 = arith.addf %197, %201 : vector<16x16xf32>
    %c37 = arith.constant 37 : index
    %203 = memref.load %arg3[%c37] : memref<99xf32, #tpu.memory_space<smem>>
    %c2_94 = arith.constant 2 : index
    %c4_95 = arith.constant 4 : index
    %204 = vector.load %arg6[%c2_94, %c4_95] : memref<22x22xf32, #tpu.memory_space<vmem>>, vector<16x16xf32>
    %205 = vector.broadcast %203 : f32 to vector<16x16xf32>
    %206 = arith.mulf %205, %204 : vector<16x16xf32>
    %207 = arith.addf %202, %206 : vector<16x16xf32>
    %c38 = arith.constant 38 : index
    %208 = memref.load %arg3[%c38] : memref<99xf32, #tpu.memory_space<smem>>
    %c2_96 = arith.constant 2 : index
    %c5_97 = arith.constant 5 : index
    %209 = vector.load %arg5[%c2_96, %c5_97] : memref<22x22xf32, #tpu.memory_space<vmem>>, vector<16x16xf32>
    %210 = vector.broadcast %208 : f32 to vector<16x16xf32>
    %211 = arith.mulf %210, %209 : vector<16x16xf32>
    %212 = arith.addf %207, %211 : vector<16x16xf32>
    %c39 = arith.constant 39 : index
    %213 = memref.load %arg3[%c39] : memref<99xf32, #tpu.memory_space<smem>>
    %c2_98 = arith.constant 2 : index
    %c5_99 = arith.constant 5 : index
    %214 = vector.load %arg6[%c2_98, %c5_99] : memref<22x22xf32, #tpu.memory_space<vmem>>, vector<16x16xf32>
    %215 = vector.broadcast %213 : f32 to vector<16x16xf32>
    %216 = arith.mulf %215, %214 : vector<16x16xf32>
    %217 = arith.addf %212, %216 : vector<16x16xf32>
    %c40 = arith.constant 40 : index
    %218 = memref.load %arg3[%c40] : memref<99xf32, #tpu.memory_space<smem>>
    %c2_100 = arith.constant 2 : index
    %c6_101 = arith.constant 6 : index
    %219 = vector.load %arg5[%c2_100, %c6_101] : memref<22x22xf32, #tpu.memory_space<vmem>>, vector<16x16xf32>
    %220 = vector.broadcast %218 : f32 to vector<16x16xf32>
    %221 = arith.mulf %220, %219 : vector<16x16xf32>
    %222 = arith.addf %217, %221 : vector<16x16xf32>
    %c41 = arith.constant 41 : index
    %223 = memref.load %arg3[%c41] : memref<99xf32, #tpu.memory_space<smem>>
    %c2_102 = arith.constant 2 : index
    %c6_103 = arith.constant 6 : index
    %224 = vector.load %arg6[%c2_102, %c6_103] : memref<22x22xf32, #tpu.memory_space<vmem>>, vector<16x16xf32>
    %225 = vector.broadcast %223 : f32 to vector<16x16xf32>
    %226 = arith.mulf %225, %224 : vector<16x16xf32>
    %227 = arith.addf %222, %226 : vector<16x16xf32>
    %c42 = arith.constant 42 : index
    %228 = memref.load %arg3[%c42] : memref<99xf32, #tpu.memory_space<smem>>
    %c3_104 = arith.constant 3 : index
    %c0_105 = arith.constant 0 : index
    %229 = vector.load %arg5[%c3_104, %c0_105] : memref<22x22xf32, #tpu.memory_space<vmem>>, vector<16x16xf32>
    %230 = vector.broadcast %228 : f32 to vector<16x16xf32>
    %231 = arith.mulf %230, %229 : vector<16x16xf32>
    %232 = arith.addf %227, %231 : vector<16x16xf32>
    %c43 = arith.constant 43 : index
    %233 = memref.load %arg3[%c43] : memref<99xf32, #tpu.memory_space<smem>>
    %c3_106 = arith.constant 3 : index
    %c0_107 = arith.constant 0 : index
    %234 = vector.load %arg6[%c3_106, %c0_107] : memref<22x22xf32, #tpu.memory_space<vmem>>, vector<16x16xf32>
    %235 = vector.broadcast %233 : f32 to vector<16x16xf32>
    %236 = arith.mulf %235, %234 : vector<16x16xf32>
    %237 = arith.addf %232, %236 : vector<16x16xf32>
    %c44 = arith.constant 44 : index
    %238 = memref.load %arg3[%c44] : memref<99xf32, #tpu.memory_space<smem>>
    %c3_108 = arith.constant 3 : index
    %c1_109 = arith.constant 1 : index
    %239 = vector.load %arg5[%c3_108, %c1_109] : memref<22x22xf32, #tpu.memory_space<vmem>>, vector<16x16xf32>
    %240 = vector.broadcast %238 : f32 to vector<16x16xf32>
    %241 = arith.mulf %240, %239 : vector<16x16xf32>
    %242 = arith.addf %237, %241 : vector<16x16xf32>
    %c45 = arith.constant 45 : index
    %243 = memref.load %arg3[%c45] : memref<99xf32, #tpu.memory_space<smem>>
    %c3_110 = arith.constant 3 : index
    %c1_111 = arith.constant 1 : index
    %244 = vector.load %arg6[%c3_110, %c1_111] : memref<22x22xf32, #tpu.memory_space<vmem>>, vector<16x16xf32>
    %245 = vector.broadcast %243 : f32 to vector<16x16xf32>
    %246 = arith.mulf %245, %244 : vector<16x16xf32>
    %247 = arith.addf %242, %246 : vector<16x16xf32>
    %c46 = arith.constant 46 : index
    %248 = memref.load %arg3[%c46] : memref<99xf32, #tpu.memory_space<smem>>
    %c3_112 = arith.constant 3 : index
    %c2_113 = arith.constant 2 : index
    %249 = vector.load %arg5[%c3_112, %c2_113] : memref<22x22xf32, #tpu.memory_space<vmem>>, vector<16x16xf32>
    %250 = vector.broadcast %248 : f32 to vector<16x16xf32>
    %251 = arith.mulf %250, %249 : vector<16x16xf32>
    %252 = arith.addf %247, %251 : vector<16x16xf32>
    %c47 = arith.constant 47 : index
    %253 = memref.load %arg3[%c47] : memref<99xf32, #tpu.memory_space<smem>>
    %c3_114 = arith.constant 3 : index
    %c2_115 = arith.constant 2 : index
    %254 = vector.load %arg6[%c3_114, %c2_115] : memref<22x22xf32, #tpu.memory_space<vmem>>, vector<16x16xf32>
    %255 = vector.broadcast %253 : f32 to vector<16x16xf32>
    %256 = arith.mulf %255, %254 : vector<16x16xf32>
    %257 = arith.addf %252, %256 : vector<16x16xf32>
    %c48 = arith.constant 48 : index
    %258 = memref.load %arg3[%c48] : memref<99xf32, #tpu.memory_space<smem>>
    %c3_116 = arith.constant 3 : index
    %c3_117 = arith.constant 3 : index
    %259 = vector.load %arg5[%c3_116, %c3_117] : memref<22x22xf32, #tpu.memory_space<vmem>>, vector<16x16xf32>
    %260 = vector.broadcast %258 : f32 to vector<16x16xf32>
    %261 = arith.mulf %260, %259 : vector<16x16xf32>
    %262 = arith.addf %257, %261 : vector<16x16xf32>
    %c49 = arith.constant 49 : index
    %263 = memref.load %arg3[%c49] : memref<99xf32, #tpu.memory_space<smem>>
    %c3_118 = arith.constant 3 : index
    %c3_119 = arith.constant 3 : index
    %264 = vector.load %arg6[%c3_118, %c3_119] : memref<22x22xf32, #tpu.memory_space<vmem>>, vector<16x16xf32>
    %265 = vector.broadcast %263 : f32 to vector<16x16xf32>
    %266 = arith.mulf %265, %264 : vector<16x16xf32>
    %267 = arith.addf %262, %266 : vector<16x16xf32>
    %c50 = arith.constant 50 : index
    %268 = memref.load %arg3[%c50] : memref<99xf32, #tpu.memory_space<smem>>
    %c3_120 = arith.constant 3 : index
    %c4_121 = arith.constant 4 : index
    %269 = vector.load %arg5[%c3_120, %c4_121] : memref<22x22xf32, #tpu.memory_space<vmem>>, vector<16x16xf32>
    %270 = vector.broadcast %268 : f32 to vector<16x16xf32>
    %271 = arith.mulf %270, %269 : vector<16x16xf32>
    %272 = arith.addf %267, %271 : vector<16x16xf32>
    %c51 = arith.constant 51 : index
    %273 = memref.load %arg3[%c51] : memref<99xf32, #tpu.memory_space<smem>>
    %c3_122 = arith.constant 3 : index
    %c4_123 = arith.constant 4 : index
    %274 = vector.load %arg6[%c3_122, %c4_123] : memref<22x22xf32, #tpu.memory_space<vmem>>, vector<16x16xf32>
    %275 = vector.broadcast %273 : f32 to vector<16x16xf32>
    %276 = arith.mulf %275, %274 : vector<16x16xf32>
    %277 = arith.addf %272, %276 : vector<16x16xf32>
    %c52 = arith.constant 52 : index
    %278 = memref.load %arg3[%c52] : memref<99xf32, #tpu.memory_space<smem>>
    %c3_124 = arith.constant 3 : index
    %c5_125 = arith.constant 5 : index
    %279 = vector.load %arg5[%c3_124, %c5_125] : memref<22x22xf32, #tpu.memory_space<vmem>>, vector<16x16xf32>
    %280 = vector.broadcast %278 : f32 to vector<16x16xf32>
    %281 = arith.mulf %280, %279 : vector<16x16xf32>
    %282 = arith.addf %277, %281 : vector<16x16xf32>
    %c53 = arith.constant 53 : index
    %283 = memref.load %arg3[%c53] : memref<99xf32, #tpu.memory_space<smem>>
    %c3_126 = arith.constant 3 : index
    %c5_127 = arith.constant 5 : index
    %284 = vector.load %arg6[%c3_126, %c5_127] : memref<22x22xf32, #tpu.memory_space<vmem>>, vector<16x16xf32>
    %285 = vector.broadcast %283 : f32 to vector<16x16xf32>
    %286 = arith.mulf %285, %284 : vector<16x16xf32>
    %287 = arith.addf %282, %286 : vector<16x16xf32>
    %c54 = arith.constant 54 : index
    %288 = memref.load %arg3[%c54] : memref<99xf32, #tpu.memory_space<smem>>
    %c3_128 = arith.constant 3 : index
    %c6_129 = arith.constant 6 : index
    %289 = vector.load %arg5[%c3_128, %c6_129] : memref<22x22xf32, #tpu.memory_space<vmem>>, vector<16x16xf32>
    %290 = vector.broadcast %288 : f32 to vector<16x16xf32>
    %291 = arith.mulf %290, %289 : vector<16x16xf32>
    %292 = arith.addf %287, %291 : vector<16x16xf32>
    %c55 = arith.constant 55 : index
    %293 = memref.load %arg3[%c55] : memref<99xf32, #tpu.memory_space<smem>>
    %c3_130 = arith.constant 3 : index
    %c6_131 = arith.constant 6 : index
    %294 = vector.load %arg6[%c3_130, %c6_131] : memref<22x22xf32, #tpu.memory_space<vmem>>, vector<16x16xf32>
    %295 = vector.broadcast %293 : f32 to vector<16x16xf32>
    %296 = arith.mulf %295, %294 : vector<16x16xf32>
    %297 = arith.addf %292, %296 : vector<16x16xf32>
    %c56 = arith.constant 56 : index
    %298 = memref.load %arg3[%c56] : memref<99xf32, #tpu.memory_space<smem>>
    %c4_132 = arith.constant 4 : index
    %c0_133 = arith.constant 0 : index
    %299 = vector.load %arg5[%c4_132, %c0_133] : memref<22x22xf32, #tpu.memory_space<vmem>>, vector<16x16xf32>
    %300 = vector.broadcast %298 : f32 to vector<16x16xf32>
    %301 = arith.mulf %300, %299 : vector<16x16xf32>
    %302 = arith.addf %297, %301 : vector<16x16xf32>
    %c57 = arith.constant 57 : index
    %303 = memref.load %arg3[%c57] : memref<99xf32, #tpu.memory_space<smem>>
    %c4_134 = arith.constant 4 : index
    %c0_135 = arith.constant 0 : index
    %304 = vector.load %arg6[%c4_134, %c0_135] : memref<22x22xf32, #tpu.memory_space<vmem>>, vector<16x16xf32>
    %305 = vector.broadcast %303 : f32 to vector<16x16xf32>
    %306 = arith.mulf %305, %304 : vector<16x16xf32>
    %307 = arith.addf %302, %306 : vector<16x16xf32>
    %c58 = arith.constant 58 : index
    %308 = memref.load %arg3[%c58] : memref<99xf32, #tpu.memory_space<smem>>
    %c4_136 = arith.constant 4 : index
    %c1_137 = arith.constant 1 : index
    %309 = vector.load %arg5[%c4_136, %c1_137] : memref<22x22xf32, #tpu.memory_space<vmem>>, vector<16x16xf32>
    %310 = vector.broadcast %308 : f32 to vector<16x16xf32>
    %311 = arith.mulf %310, %309 : vector<16x16xf32>
    %312 = arith.addf %307, %311 : vector<16x16xf32>
    %c59 = arith.constant 59 : index
    %313 = memref.load %arg3[%c59] : memref<99xf32, #tpu.memory_space<smem>>
    %c4_138 = arith.constant 4 : index
    %c1_139 = arith.constant 1 : index
    %314 = vector.load %arg6[%c4_138, %c1_139] : memref<22x22xf32, #tpu.memory_space<vmem>>, vector<16x16xf32>
    %315 = vector.broadcast %313 : f32 to vector<16x16xf32>
    %316 = arith.mulf %315, %314 : vector<16x16xf32>
    %317 = arith.addf %312, %316 : vector<16x16xf32>
    %c60 = arith.constant 60 : index
    %318 = memref.load %arg3[%c60] : memref<99xf32, #tpu.memory_space<smem>>
    %c4_140 = arith.constant 4 : index
    %c2_141 = arith.constant 2 : index
    %319 = vector.load %arg5[%c4_140, %c2_141] : memref<22x22xf32, #tpu.memory_space<vmem>>, vector<16x16xf32>
    %320 = vector.broadcast %318 : f32 to vector<16x16xf32>
    %321 = arith.mulf %320, %319 : vector<16x16xf32>
    %322 = arith.addf %317, %321 : vector<16x16xf32>
    %c61 = arith.constant 61 : index
    %323 = memref.load %arg3[%c61] : memref<99xf32, #tpu.memory_space<smem>>
    %c4_142 = arith.constant 4 : index
    %c2_143 = arith.constant 2 : index
    %324 = vector.load %arg6[%c4_142, %c2_143] : memref<22x22xf32, #tpu.memory_space<vmem>>, vector<16x16xf32>
    %325 = vector.broadcast %323 : f32 to vector<16x16xf32>
    %326 = arith.mulf %325, %324 : vector<16x16xf32>
    %327 = arith.addf %322, %326 : vector<16x16xf32>
    %c62 = arith.constant 62 : index
    %328 = memref.load %arg3[%c62] : memref<99xf32, #tpu.memory_space<smem>>
    %c4_144 = arith.constant 4 : index
    %c3_145 = arith.constant 3 : index
    %329 = vector.load %arg5[%c4_144, %c3_145] : memref<22x22xf32, #tpu.memory_space<vmem>>, vector<16x16xf32>
    %330 = vector.broadcast %328 : f32 to vector<16x16xf32>
    %331 = arith.mulf %330, %329 : vector<16x16xf32>
    %332 = arith.addf %327, %331 : vector<16x16xf32>
    %c63 = arith.constant 63 : index
    %333 = memref.load %arg3[%c63] : memref<99xf32, #tpu.memory_space<smem>>
    %c4_146 = arith.constant 4 : index
    %c3_147 = arith.constant 3 : index
    %334 = vector.load %arg6[%c4_146, %c3_147] : memref<22x22xf32, #tpu.memory_space<vmem>>, vector<16x16xf32>
    %335 = vector.broadcast %333 : f32 to vector<16x16xf32>
    %336 = arith.mulf %335, %334 : vector<16x16xf32>
    %337 = arith.addf %332, %336 : vector<16x16xf32>
    %c64 = arith.constant 64 : index
    %338 = memref.load %arg3[%c64] : memref<99xf32, #tpu.memory_space<smem>>
    %c4_148 = arith.constant 4 : index
    %c4_149 = arith.constant 4 : index
    %339 = vector.load %arg5[%c4_148, %c4_149] : memref<22x22xf32, #tpu.memory_space<vmem>>, vector<16x16xf32>
    %340 = vector.broadcast %338 : f32 to vector<16x16xf32>
    %341 = arith.mulf %340, %339 : vector<16x16xf32>
    %342 = arith.addf %337, %341 : vector<16x16xf32>
    %c65 = arith.constant 65 : index
    %343 = memref.load %arg3[%c65] : memref<99xf32, #tpu.memory_space<smem>>
    %c4_150 = arith.constant 4 : index
    %c4_151 = arith.constant 4 : index
    %344 = vector.load %arg6[%c4_150, %c4_151] : memref<22x22xf32, #tpu.memory_space<vmem>>, vector<16x16xf32>
    %345 = vector.broadcast %343 : f32 to vector<16x16xf32>
    %346 = arith.mulf %345, %344 : vector<16x16xf32>
    %347 = arith.addf %342, %346 : vector<16x16xf32>
    %c66 = arith.constant 66 : index
    %348 = memref.load %arg3[%c66] : memref<99xf32, #tpu.memory_space<smem>>
    %c4_152 = arith.constant 4 : index
    %c5_153 = arith.constant 5 : index
    %349 = vector.load %arg5[%c4_152, %c5_153] : memref<22x22xf32, #tpu.memory_space<vmem>>, vector<16x16xf32>
    %350 = vector.broadcast %348 : f32 to vector<16x16xf32>
    %351 = arith.mulf %350, %349 : vector<16x16xf32>
    %352 = arith.addf %347, %351 : vector<16x16xf32>
    %c67 = arith.constant 67 : index
    %353 = memref.load %arg3[%c67] : memref<99xf32, #tpu.memory_space<smem>>
    %c4_154 = arith.constant 4 : index
    %c5_155 = arith.constant 5 : index
    %354 = vector.load %arg6[%c4_154, %c5_155] : memref<22x22xf32, #tpu.memory_space<vmem>>, vector<16x16xf32>
    %355 = vector.broadcast %353 : f32 to vector<16x16xf32>
    %356 = arith.mulf %355, %354 : vector<16x16xf32>
    %357 = arith.addf %352, %356 : vector<16x16xf32>
    %c68 = arith.constant 68 : index
    %358 = memref.load %arg3[%c68] : memref<99xf32, #tpu.memory_space<smem>>
    %c4_156 = arith.constant 4 : index
    %c6_157 = arith.constant 6 : index
    %359 = vector.load %arg5[%c4_156, %c6_157] : memref<22x22xf32, #tpu.memory_space<vmem>>, vector<16x16xf32>
    %360 = vector.broadcast %358 : f32 to vector<16x16xf32>
    %361 = arith.mulf %360, %359 : vector<16x16xf32>
    %362 = arith.addf %357, %361 : vector<16x16xf32>
    %c69 = arith.constant 69 : index
    %363 = memref.load %arg3[%c69] : memref<99xf32, #tpu.memory_space<smem>>
    %c4_158 = arith.constant 4 : index
    %c6_159 = arith.constant 6 : index
    %364 = vector.load %arg6[%c4_158, %c6_159] : memref<22x22xf32, #tpu.memory_space<vmem>>, vector<16x16xf32>
    %365 = vector.broadcast %363 : f32 to vector<16x16xf32>
    %366 = arith.mulf %365, %364 : vector<16x16xf32>
    %367 = arith.addf %362, %366 : vector<16x16xf32>
    %c70 = arith.constant 70 : index
    %368 = memref.load %arg3[%c70] : memref<99xf32, #tpu.memory_space<smem>>
    %c5_160 = arith.constant 5 : index
    %c0_161 = arith.constant 0 : index
    %369 = vector.load %arg5[%c5_160, %c0_161] : memref<22x22xf32, #tpu.memory_space<vmem>>, vector<16x16xf32>
    %370 = vector.broadcast %368 : f32 to vector<16x16xf32>
    %371 = arith.mulf %370, %369 : vector<16x16xf32>
    %372 = arith.addf %367, %371 : vector<16x16xf32>
    %c71 = arith.constant 71 : index
    %373 = memref.load %arg3[%c71] : memref<99xf32, #tpu.memory_space<smem>>
    %c5_162 = arith.constant 5 : index
    %c0_163 = arith.constant 0 : index
    %374 = vector.load %arg6[%c5_162, %c0_163] : memref<22x22xf32, #tpu.memory_space<vmem>>, vector<16x16xf32>
    %375 = vector.broadcast %373 : f32 to vector<16x16xf32>
    %376 = arith.mulf %375, %374 : vector<16x16xf32>
    %377 = arith.addf %372, %376 : vector<16x16xf32>
    %c72 = arith.constant 72 : index
    %378 = memref.load %arg3[%c72] : memref<99xf32, #tpu.memory_space<smem>>
    %c5_164 = arith.constant 5 : index
    %c1_165 = arith.constant 1 : index
    %379 = vector.load %arg5[%c5_164, %c1_165] : memref<22x22xf32, #tpu.memory_space<vmem>>, vector<16x16xf32>
    %380 = vector.broadcast %378 : f32 to vector<16x16xf32>
    %381 = arith.mulf %380, %379 : vector<16x16xf32>
    %382 = arith.addf %377, %381 : vector<16x16xf32>
    %c73 = arith.constant 73 : index
    %383 = memref.load %arg3[%c73] : memref<99xf32, #tpu.memory_space<smem>>
    %c5_166 = arith.constant 5 : index
    %c1_167 = arith.constant 1 : index
    %384 = vector.load %arg6[%c5_166, %c1_167] : memref<22x22xf32, #tpu.memory_space<vmem>>, vector<16x16xf32>
    %385 = vector.broadcast %383 : f32 to vector<16x16xf32>
    %386 = arith.mulf %385, %384 : vector<16x16xf32>
    %387 = arith.addf %382, %386 : vector<16x16xf32>
    %c74 = arith.constant 74 : index
    %388 = memref.load %arg3[%c74] : memref<99xf32, #tpu.memory_space<smem>>
    %c5_168 = arith.constant 5 : index
    %c2_169 = arith.constant 2 : index
    %389 = vector.load %arg5[%c5_168, %c2_169] : memref<22x22xf32, #tpu.memory_space<vmem>>, vector<16x16xf32>
    %390 = vector.broadcast %388 : f32 to vector<16x16xf32>
    %391 = arith.mulf %390, %389 : vector<16x16xf32>
    %392 = arith.addf %387, %391 : vector<16x16xf32>
    %c75 = arith.constant 75 : index
    %393 = memref.load %arg3[%c75] : memref<99xf32, #tpu.memory_space<smem>>
    %c5_170 = arith.constant 5 : index
    %c2_171 = arith.constant 2 : index
    %394 = vector.load %arg6[%c5_170, %c2_171] : memref<22x22xf32, #tpu.memory_space<vmem>>, vector<16x16xf32>
    %395 = vector.broadcast %393 : f32 to vector<16x16xf32>
    %396 = arith.mulf %395, %394 : vector<16x16xf32>
    %397 = arith.addf %392, %396 : vector<16x16xf32>
    %c76 = arith.constant 76 : index
    %398 = memref.load %arg3[%c76] : memref<99xf32, #tpu.memory_space<smem>>
    %c5_172 = arith.constant 5 : index
    %c3_173 = arith.constant 3 : index
    %399 = vector.load %arg5[%c5_172, %c3_173] : memref<22x22xf32, #tpu.memory_space<vmem>>, vector<16x16xf32>
    %400 = vector.broadcast %398 : f32 to vector<16x16xf32>
    %401 = arith.mulf %400, %399 : vector<16x16xf32>
    %402 = arith.addf %397, %401 : vector<16x16xf32>
    %c77 = arith.constant 77 : index
    %403 = memref.load %arg3[%c77] : memref<99xf32, #tpu.memory_space<smem>>
    %c5_174 = arith.constant 5 : index
    %c3_175 = arith.constant 3 : index
    %404 = vector.load %arg6[%c5_174, %c3_175] : memref<22x22xf32, #tpu.memory_space<vmem>>, vector<16x16xf32>
    %405 = vector.broadcast %403 : f32 to vector<16x16xf32>
    %406 = arith.mulf %405, %404 : vector<16x16xf32>
    %407 = arith.addf %402, %406 : vector<16x16xf32>
    %c78 = arith.constant 78 : index
    %408 = memref.load %arg3[%c78] : memref<99xf32, #tpu.memory_space<smem>>
    %c5_176 = arith.constant 5 : index
    %c4_177 = arith.constant 4 : index
    %409 = vector.load %arg5[%c5_176, %c4_177] : memref<22x22xf32, #tpu.memory_space<vmem>>, vector<16x16xf32>
    %410 = vector.broadcast %408 : f32 to vector<16x16xf32>
    %411 = arith.mulf %410, %409 : vector<16x16xf32>
    %412 = arith.addf %407, %411 : vector<16x16xf32>
    %c79 = arith.constant 79 : index
    %413 = memref.load %arg3[%c79] : memref<99xf32, #tpu.memory_space<smem>>
    %c5_178 = arith.constant 5 : index
    %c4_179 = arith.constant 4 : index
    %414 = vector.load %arg6[%c5_178, %c4_179] : memref<22x22xf32, #tpu.memory_space<vmem>>, vector<16x16xf32>
    %415 = vector.broadcast %413 : f32 to vector<16x16xf32>
    %416 = arith.mulf %415, %414 : vector<16x16xf32>
    %417 = arith.addf %412, %416 : vector<16x16xf32>
    %c80 = arith.constant 80 : index
    %418 = memref.load %arg3[%c80] : memref<99xf32, #tpu.memory_space<smem>>
    %c5_180 = arith.constant 5 : index
    %c5_181 = arith.constant 5 : index
    %419 = vector.load %arg5[%c5_180, %c5_181] : memref<22x22xf32, #tpu.memory_space<vmem>>, vector<16x16xf32>
    %420 = vector.broadcast %418 : f32 to vector<16x16xf32>
    %421 = arith.mulf %420, %419 : vector<16x16xf32>
    %422 = arith.addf %417, %421 : vector<16x16xf32>
    %c81 = arith.constant 81 : index
    %423 = memref.load %arg3[%c81] : memref<99xf32, #tpu.memory_space<smem>>
    %c5_182 = arith.constant 5 : index
    %c5_183 = arith.constant 5 : index
    %424 = vector.load %arg6[%c5_182, %c5_183] : memref<22x22xf32, #tpu.memory_space<vmem>>, vector<16x16xf32>
    %425 = vector.broadcast %423 : f32 to vector<16x16xf32>
    %426 = arith.mulf %425, %424 : vector<16x16xf32>
    %427 = arith.addf %422, %426 : vector<16x16xf32>
    %c82 = arith.constant 82 : index
    %428 = memref.load %arg3[%c82] : memref<99xf32, #tpu.memory_space<smem>>
    %c5_184 = arith.constant 5 : index
    %c6_185 = arith.constant 6 : index
    %429 = vector.load %arg5[%c5_184, %c6_185] : memref<22x22xf32, #tpu.memory_space<vmem>>, vector<16x16xf32>
    %430 = vector.broadcast %428 : f32 to vector<16x16xf32>
    %431 = arith.mulf %430, %429 : vector<16x16xf32>
    %432 = arith.addf %427, %431 : vector<16x16xf32>
    %c83 = arith.constant 83 : index
    %433 = memref.load %arg3[%c83] : memref<99xf32, #tpu.memory_space<smem>>
    %c5_186 = arith.constant 5 : index
    %c6_187 = arith.constant 6 : index
    %434 = vector.load %arg6[%c5_186, %c6_187] : memref<22x22xf32, #tpu.memory_space<vmem>>, vector<16x16xf32>
    %435 = vector.broadcast %433 : f32 to vector<16x16xf32>
    %436 = arith.mulf %435, %434 : vector<16x16xf32>
    %437 = arith.addf %432, %436 : vector<16x16xf32>
    %c84 = arith.constant 84 : index
    %438 = memref.load %arg3[%c84] : memref<99xf32, #tpu.memory_space<smem>>
    %c6_188 = arith.constant 6 : index
    %c0_189 = arith.constant 0 : index
    %439 = vector.load %arg5[%c6_188, %c0_189] : memref<22x22xf32, #tpu.memory_space<vmem>>, vector<16x16xf32>
    %440 = vector.broadcast %438 : f32 to vector<16x16xf32>
    %441 = arith.mulf %440, %439 : vector<16x16xf32>
    %442 = arith.addf %437, %441 : vector<16x16xf32>
    %c85 = arith.constant 85 : index
    %443 = memref.load %arg3[%c85] : memref<99xf32, #tpu.memory_space<smem>>
    %c6_190 = arith.constant 6 : index
    %c0_191 = arith.constant 0 : index
    %444 = vector.load %arg6[%c6_190, %c0_191] : memref<22x22xf32, #tpu.memory_space<vmem>>, vector<16x16xf32>
    %445 = vector.broadcast %443 : f32 to vector<16x16xf32>
    %446 = arith.mulf %445, %444 : vector<16x16xf32>
    %447 = arith.addf %442, %446 : vector<16x16xf32>
    %c86 = arith.constant 86 : index
    %448 = memref.load %arg3[%c86] : memref<99xf32, #tpu.memory_space<smem>>
    %c6_192 = arith.constant 6 : index
    %c1_193 = arith.constant 1 : index
    %449 = vector.load %arg5[%c6_192, %c1_193] : memref<22x22xf32, #tpu.memory_space<vmem>>, vector<16x16xf32>
    %450 = vector.broadcast %448 : f32 to vector<16x16xf32>
    %451 = arith.mulf %450, %449 : vector<16x16xf32>
    %452 = arith.addf %447, %451 : vector<16x16xf32>
    %c87 = arith.constant 87 : index
    %453 = memref.load %arg3[%c87] : memref<99xf32, #tpu.memory_space<smem>>
    %c6_194 = arith.constant 6 : index
    %c1_195 = arith.constant 1 : index
    %454 = vector.load %arg6[%c6_194, %c1_195] : memref<22x22xf32, #tpu.memory_space<vmem>>, vector<16x16xf32>
    %455 = vector.broadcast %453 : f32 to vector<16x16xf32>
    %456 = arith.mulf %455, %454 : vector<16x16xf32>
    %457 = arith.addf %452, %456 : vector<16x16xf32>
    %c88 = arith.constant 88 : index
    %458 = memref.load %arg3[%c88] : memref<99xf32, #tpu.memory_space<smem>>
    %c6_196 = arith.constant 6 : index
    %c2_197 = arith.constant 2 : index
    %459 = vector.load %arg5[%c6_196, %c2_197] : memref<22x22xf32, #tpu.memory_space<vmem>>, vector<16x16xf32>
    %460 = vector.broadcast %458 : f32 to vector<16x16xf32>
    %461 = arith.mulf %460, %459 : vector<16x16xf32>
    %462 = arith.addf %457, %461 : vector<16x16xf32>
    %c89 = arith.constant 89 : index
    %463 = memref.load %arg3[%c89] : memref<99xf32, #tpu.memory_space<smem>>
    %c6_198 = arith.constant 6 : index
    %c2_199 = arith.constant 2 : index
    %464 = vector.load %arg6[%c6_198, %c2_199] : memref<22x22xf32, #tpu.memory_space<vmem>>, vector<16x16xf32>
    %465 = vector.broadcast %463 : f32 to vector<16x16xf32>
    %466 = arith.mulf %465, %464 : vector<16x16xf32>
    %467 = arith.addf %462, %466 : vector<16x16xf32>
    %c90 = arith.constant 90 : index
    %468 = memref.load %arg3[%c90] : memref<99xf32, #tpu.memory_space<smem>>
    %c6_200 = arith.constant 6 : index
    %c3_201 = arith.constant 3 : index
    %469 = vector.load %arg5[%c6_200, %c3_201] : memref<22x22xf32, #tpu.memory_space<vmem>>, vector<16x16xf32>
    %470 = vector.broadcast %468 : f32 to vector<16x16xf32>
    %471 = arith.mulf %470, %469 : vector<16x16xf32>
    %472 = arith.addf %467, %471 : vector<16x16xf32>
    %c91 = arith.constant 91 : index
    %473 = memref.load %arg3[%c91] : memref<99xf32, #tpu.memory_space<smem>>
    %c6_202 = arith.constant 6 : index
    %c3_203 = arith.constant 3 : index
    %474 = vector.load %arg6[%c6_202, %c3_203] : memref<22x22xf32, #tpu.memory_space<vmem>>, vector<16x16xf32>
    %475 = vector.broadcast %473 : f32 to vector<16x16xf32>
    %476 = arith.mulf %475, %474 : vector<16x16xf32>
    %477 = arith.addf %472, %476 : vector<16x16xf32>
    %c92 = arith.constant 92 : index
    %478 = memref.load %arg3[%c92] : memref<99xf32, #tpu.memory_space<smem>>
    %c6_204 = arith.constant 6 : index
    %c4_205 = arith.constant 4 : index
    %479 = vector.load %arg5[%c6_204, %c4_205] : memref<22x22xf32, #tpu.memory_space<vmem>>, vector<16x16xf32>
    %480 = vector.broadcast %478 : f32 to vector<16x16xf32>
    %481 = arith.mulf %480, %479 : vector<16x16xf32>
    %482 = arith.addf %477, %481 : vector<16x16xf32>
    %c93 = arith.constant 93 : index
    %483 = memref.load %arg3[%c93] : memref<99xf32, #tpu.memory_space<smem>>
    %c6_206 = arith.constant 6 : index
    %c4_207 = arith.constant 4 : index
    %484 = vector.load %arg6[%c6_206, %c4_207] : memref<22x22xf32, #tpu.memory_space<vmem>>, vector<16x16xf32>
    %485 = vector.broadcast %483 : f32 to vector<16x16xf32>
    %486 = arith.mulf %485, %484 : vector<16x16xf32>
    %487 = arith.addf %482, %486 : vector<16x16xf32>
    %c94 = arith.constant 94 : index
    %488 = memref.load %arg3[%c94] : memref<99xf32, #tpu.memory_space<smem>>
    %c6_208 = arith.constant 6 : index
    %c5_209 = arith.constant 5 : index
    %489 = vector.load %arg5[%c6_208, %c5_209] : memref<22x22xf32, #tpu.memory_space<vmem>>, vector<16x16xf32>
    %490 = vector.broadcast %488 : f32 to vector<16x16xf32>
    %491 = arith.mulf %490, %489 : vector<16x16xf32>
    %492 = arith.addf %487, %491 : vector<16x16xf32>
    %c95 = arith.constant 95 : index
    %493 = memref.load %arg3[%c95] : memref<99xf32, #tpu.memory_space<smem>>
    %c6_210 = arith.constant 6 : index
    %c5_211 = arith.constant 5 : index
    %494 = vector.load %arg6[%c6_210, %c5_211] : memref<22x22xf32, #tpu.memory_space<vmem>>, vector<16x16xf32>
    %495 = vector.broadcast %493 : f32 to vector<16x16xf32>
    %496 = arith.mulf %495, %494 : vector<16x16xf32>
    %497 = arith.addf %492, %496 : vector<16x16xf32>
    %c96 = arith.constant 96 : index
    %498 = memref.load %arg3[%c96] : memref<99xf32, #tpu.memory_space<smem>>
    %c6_212 = arith.constant 6 : index
    %c6_213 = arith.constant 6 : index
    %499 = vector.load %arg5[%c6_212, %c6_213] : memref<22x22xf32, #tpu.memory_space<vmem>>, vector<16x16xf32>
    %500 = vector.broadcast %498 : f32 to vector<16x16xf32>
    %501 = arith.mulf %500, %499 : vector<16x16xf32>
    %502 = arith.addf %497, %501 : vector<16x16xf32>
    %c97 = arith.constant 97 : index
    %503 = memref.load %arg3[%c97] : memref<99xf32, #tpu.memory_space<smem>>
    %c6_214 = arith.constant 6 : index
    %c6_215 = arith.constant 6 : index
    %504 = vector.load %arg6[%c6_214, %c6_215] : memref<22x22xf32, #tpu.memory_space<vmem>>, vector<16x16xf32>
    %505 = vector.broadcast %503 : f32 to vector<16x16xf32>
    %506 = arith.mulf %505, %504 : vector<16x16xf32>
    %507 = arith.addf %502, %506 : vector<16x16xf32>
    %c98 = arith.constant 98 : index
    %508 = memref.load %arg3[%c98] : memref<99xf32, #tpu.memory_space<smem>>
    %509 = vector.broadcast %508 : f32 to vector<16x16xf32>
    %510 = arith.addf %507, %509 : vector<16x16xf32>
    %511 = arith.negf %510 : vector<16x16xf32>
    %512 = math.exp %511 : vector<16x16xf32>
    %cst_216 = arith.constant 1.000000e+00 : f32
    %513 = vector.broadcast %cst_216 : f32 to vector<16x16xf32>
    %514 = arith.addf %513, %512 : vector<16x16xf32>
    %515 = arith.divf %513, %514 : vector<16x16xf32>
    %516 = vector.shape_cast %515 : vector<16x16xf32> to vector<16x16x1xf32>
    %517 = vector.broadcast %516 : vector<16x16x1xf32> to vector<16x16x128xf32>
    %518 = arith.mulf %6, %517 : vector<16x16x128xf32>
    %c0_217 = arith.constant 0 : index
    %c0_218 = arith.constant 0 : index
    %c0_219 = arith.constant 0 : index
    %c0_220 = arith.constant 0 : index
    %519 = vector.load %arg4[%c0_217, %c0_218, %c0_219, %c0_220] : memref<1x16x16x128xf32, #tpu.memory_space<vmem>>, vector<1x16x16x128xf32>
    %520 = vector.shape_cast %519 : vector<1x16x16x128xf32> to vector<16x16x128xf32>
    %521 = vector.shape_cast %518 : vector<16x16x128xf32> to vector<1x16x16x128xf32>
    tpu.vector_store %arg4[%c0_217, %c0_218, %c0_219, %c0_220], %521 {strides = array<i32>} : memref<1x16x16x128xf32, #tpu.memory_space<vmem>>, vector<1x16x16x128xf32>,
    return
  }
  func.func @transform_0(%arg0: i32) -> (i32, i32, i32, i32) {
    %c0_i32 = arith.constant 0 : i32
    %c0_i32_0 = arith.constant 0 : i32
    %c0_i32_1 = arith.constant 0 : i32
    %c0_i32_2 = arith.constant 0 : i32
    return %arg0, %c0_i32, %c0_i32_0, %c0_i32_1 : i32, i32, i32, i32
  }
  func.func @transform_1(%arg0: i32) -> (i32, i32, i32) {
    %c0_i32 = arith.constant 0 : i32
    %c0_i32_0 = arith.constant 0 : i32
    %c0_i32_1 = arith.constant 0 : i32
    return %arg0, %c0_i32, %c0_i32_0 : i32, i32, i32
  }
  func.func @transform_2(%arg0: i32) -> i32 {
    %c0_i32 = arith.constant 0 : i32
    %c0_i32_0 = arith.constant 0 : i32
    return %c0_i32 : i32
  }
  func.func @transform_3(%arg0: i32) -> (i32, i32, i32, i32) {
    %c0_i32 = arith.constant 0 : i32
    %c0_i32_0 = arith.constant 0 : i32
    %c0_i32_1 = arith.constant 0 : i32
    %c0_i32_2 = arith.constant 0 : i32
    return %arg0, %c0_i32, %c0_i32_0, %c0_i32_1 : i32, i32, i32, i32
  }
}

</mosaic_0001>

<bundles_post_ra>
// kernel: _lambda_.2
= control target key start
LH: loop header
LB: loop body
LE: loop exit
PB: predicated region body
PF: predicated region fallthrough
CT: control target
= control target key end

     0   :  { %8 = vsyncpa [#allocation5], 0  ;;  %s1382_s0 = inlined_call_operand.hbm [shape: f32[2,256,128], index: 0, kind: input, shape index: {}]   ;;  %s1383_s1 = inlined_call_operand.hbm [shape: f32[128,8], index: 1, kind: input, shape index: {}]   ;;  %s1384_s2 = inlined_call_operand.vmem [shape: f32[8,128], index: 2, kind: input, shape index: {}]   ;;  %s1385_s3 = inlined_call_operand.vmem [shape: f32[2,1,128], index: 3, kind: output, shape index: {}]  }
   0x1   :  { %10 = vsyncpa [#allocation5 + $0x1], 0 }
   0x2   :  { %11 = vsyncpa [#allocation7], 0  ;;  %s1057_s12 = smov 0   ;;  %s1059_s13 = smov 0  }
   0x3   :  { %s1061_s14 = smov 0   ;;  %s1063_s15 = smov 0  }
   0x4   :  { %s1065_s16 = smov 0   ;;  %s1067_s17 = smov 0  }
   0x5 LB: > { %s664_s18 = sadd.s32 4294967295, %s1027_s17   ;;  %p51_p0 = scmp.ne.s32.totalorder %s1011_s13, %s1007_s12  ;;  %s1027_s17 = sphi %s1067_s17, %s17_s17   ;;  %s1023_s16 = sphi %s1065_s16, %s1402_s16   ;;  %s1019_s15 = sphi %s1063_s15, %s1401_s15   ;;  %s1015_s14 = sphi %s1061_s14, %s1400_s14   ;;  %s1011_s13 = sphi %s1059_s13, %s1399_s13   ;;  %s1007_s12 = sphi %s1057_s12, %s1398_s12  }
   0x6   : > { %p1087_p1 = scmp.eq.s32.totalorder %s664_s18, 0  ;;  %p666_p2 = scmp.ge.s32.totalorder %s1027_s17, 1 }
   0x7   : > { %p130_p3 = scmp.lt.s32.totalorder %s1027_s17, 3  ;;  %s1029_s22 = smov [#allocation6]  }
   0x8   : > { %s1390_s19 = scalar_select %p1087_p1, 1, 0 }
   0x9   : > { %p1095_p4 = por %p1087_p1, %p51_p0  ;;  %p1099_p5 = pnand %p666_p2, %p130_p3 }
   0xa   : > { %s142_s23 = sshll.u32 %s1029_s22, 4  ;;  %s29_s25 = sadd.s32 1, %s1023_s16  ;;  %s143_s23 = int_to_ptr.vmem [resolvable:$true] %s142_s23 }
   0xb   : > { %s1391_s20 = scalar_select %p1095_p4, 1, 0 }
   0xc   : > { %s1392_s21 = scalar_select %p1099_p5, 1, 0 }
   0xd   : > { %p845_p6 = pneg %p1099_p5  ;;  %s915_s28 = scalar_lea.hbm %s1383_s1, 2048 }
   0xe   : > { %p916_p8 = scmp.ne.s32.totalorder %s1383_s1, %s915_s28  ;;  %p922_p12 = scmp.lt.u32.totalorder %s915_s28, %s1383_s1 }
   0xf   : > { %p1107_p7 = pnand %p845_p6, %p1087_p1 }
  0x11   : > { %p917_p9 = pneg %p1107_p7 }
  0x13   : > { %p918_p10 = pnand %p917_p9, %p916_p8 }
  0x15   : > { %p919_p11 = pneg %p918_p10 }
  0x17   : > { %p924_p13 = pnand %p922_p12, %p919_p11 }
  0x19   : > { %927 = shalt.err (!%p924_p13)
}
  0x1a   : > { %s928_s6 = scalar_lea.vmem %s143_s23, 2048  ;;  %p936_p6 = scmp.lt.s32.totalorder %s143_s23, %s143_s23 }
  0x1b   : > { %p929_p0 = scmp.ne.s32.totalorder %s143_s23, %s928_s6  ;;  %p937_p1 = scmp.lt.s32.totalorder %s928_s6, %s928_s6 }
  0x1d   : > { %p931_p2 = pnand %p929_p0, %p917_p9  ;;  %p938_p4 = por %p937_p1, %p936_p6 }
  0x1f   : > { %p932_p3 = pneg %p931_p2 }
  0x21   : > { %p939_p5 = pnand %p938_p4, %p932_p3 }
  0x23   : > { %942 = shalt.err (!%p939_p5)
}
  0x24   : > { %s1030_s7 = smov 128   ;;  %s1031_s8 = smov 8  }
  0x25   : > { %848 = dma.hbm_to_vmem [thread:$0]  (!%p1107_p7), %s1383_s1, 2048, %s143_s23, [#allocation7], %s1030_s7, %s1030_s7, %s1031_s8  }
  0x26   : > { %p31_p1 = scmp.ge.s32.totalorder %s29_s25, 2  ;;  %s38_s11 = sadd.s32 1, %s1015_s14 }
  0x27   : > { %p45_p4 = scmp.ne.s32.totalorder %s1015_s14, %s1011_s13  ;;  %p46_p5 = scmp.eq.s32.totalorder %s1027_s17, 0 }
  0x28   : > { %s1404_s25 = smov (%p31_p1, %s29_s25), 0  ;;  %p854_p9 = scmp.lt.s32.totalorder %s1027_s17, 2 }
  0x29   : > { %p47_p8 = por %p46_p5, %p45_p4  ;;  %s33_s12 = ssub.s32 %s1023_s16, %s1404_s25 }
  0x2a   : > { %s159_s18 = sand.u32 1, %s1015_s14   ;;  %p36_p10 = scmp.eq.s32.totalorder %s33_s12, 0 }
  0x2b   : > { %s669_s22 = sshll.u32 %s159_s18, 8  ;;  %s679_s24 = sshll.u32 %s1023_s16, 12 }
  0x2c   : > { %s1143_s26 = scalar_select %p36_p10, %s1015_s14, %s38_s11  }
  0x2d   : > { %s1148_s23 = scalar_lea.hbm %s1382_s0, %s679_s24  ;;  %s163_s29 = scalar_lea.vmem [#allocation4], %s669_s22 }
  0x2e   : > { %s172_s30 = sshll.u32 %s163_s29, 4  ;;  %p1150_p7 = pnand %p854_p9, %p47_p8  ;;  %s1154_s30 = int_to_ptr.vmem [resolvable:$true] %s172_s30 }
  0x2f   : > { %s1156_s5 = scalar_lea.sflag [#allocation5], %s159_s18  ;;  %s943_s6 = scalar_lea.hbm %s1148_s23, 4096 }
  0x30   : > { %p944_p11 = scmp.ne.s32.totalorder %s1148_s23, %s943_s6  ;;  %p945_p12 = pneg %p1150_p7 }
  0x31   : > { %s948_s11 = scalar_lea.hbm %s1382_s0, 8192  ;;  %p949_p2 = scmp.lt.u32.totalorder %s1148_s23, %s1382_s0 }
  0x32   : > { %p946_p13 = pnand %p945_p12, %p944_p11  ;;  %p950_p3 = scmp.lt.u32.totalorder %s948_s11, %s943_s6 }
  0x33   : > { %p952_p1 = scmp.lt.u32.totalorder %s943_s6, %s1148_s23 }
  0x34   : > { %p947_p0 = pneg %p946_p13  ;;  %p951_p6 = por %p950_p3, %p949_p2 }
  0x36   : > { %p953_p4 = por %p952_p1, %p951_p6 }
  0x38   : > { %p954_p5 = pnand %p953_p4, %p947_p0 }
  0x3a   : > { %957 = shalt.err (!%p954_p5)
}
  0x3b   : > { %s958_s18 = scalar_lea.vmem %s1154_s30, 4096  ;;  %s1032_s24 = smov [#allocation4]  }
  0x3c   : > { %p959_p8 = scmp.ne.s32.totalorder %s1154_s30, %s958_s18  ;;  %s963_s27 = sshll.u32 %s1032_s24, 4  ;;  %s964_s27 = int_to_ptr.vmem [resolvable:$false] %s963_s27 }
  0x3d   : > { %s965_s28 = scalar_lea.vmem %s964_s27, 8192  ;;  %p966_p11 = scmp.lt.s32.totalorder %s1154_s30, %s964_s27 }
  0x3e   : > { %p961_p9 = pnand %p959_p8, %p945_p12  ;;  %p967_p13 = scmp.lt.s32.totalorder %s965_s28, %s958_s18 }
  0x40   : > { %p962_p10 = pneg %p961_p9  ;;  %p968_p2 = por %p967_p13, %p966_p11 }
  0x42   : > { %p969_p3 = pnand %p968_p2, %p962_p10 }
  0x44   : > { %972 = shalt.err (!%p969_p3)
}
  0x45   : > { %852 = dma.hbm_to_vmem [thread:$0]  (!%p1150_p7), %s1148_s23, 4096, %s1154_s30, %s1156_s5, %s1030_s7, %s1030_s7, %s1031_s8  }
  0x46   : > { %p1395_p12 = scmp.ne.s32.totalorder %s1392_s21, 0 }
  0x47   : > { %s186_s29 = sand.u32 (!%p1395_p12), 1, %s1011_s13   ;;  %p1396_p0 = scmp.ne.s32.totalorder (!%p1395_p12), %s1391_s20, 0 }
  0x48   : > { %184 = sbr.rel (%p1395_p12) target bundleno = 629 (0x275), region = 32  ;;  %s673_s6 = sshll.u32 (!%p1395_p12), %s186_s29, 8 }
  0x49   : > { %s187_s9 = scalar_lea.sflag (!%p1395_p12), [#allocation5], %s186_s29  ;;  %s1190_s10 = scalar_lea.vmem (!%p1395_p12), [#allocation4], %s673_s6 }
  0x4f   : > { %998 = dma.done.wait (%p1396_p0), %s187_s9, 4096  }
  0x50   : > { %1000 = vsyncadd (%p1396_p0), %s187_s9, 4294963200  ;;  %p1397_p6 = scmp.ne.s32.totalorder %s1390_s19, 0 }
  0x52   : > { %1002 = dma.done.wait (%p1397_p6), [#allocation7], 2048  }
  0x53   : > { %1004 = vsyncadd (%p1397_p6), [#allocation7], 4294965248  ;;  %v1033_v0 = vmov 0.0|0.0   ;;  %v1034_v1 = vmov 0.0   ;;  %v1035_v2 = vmov -inf   ;;  %vm1036_vm0 = vmmov 0  }
  0x54   : > { %815 = vmatprep.subr.bf16.mxu1 %v1033_v0  ;;  %791 = vmatprep.subr.bf16.mxu0 %v1033_v0  ;;  %223 = vst [vmem:[#allocation2] sm:$0x1] %v1034_v1  ;;  %224 = vst [vmem:[#allocation3] sm:$0x1] %v1035_v2  ;;  %v343_v3 = vld [vmem:[#allocation6] sm:$0xff]  ;;  %v344_v4 = vld [vmem:[#allocation6 + $0x8] sm:$0xff] }
  0x55   : > { %783 = vmatprep.mubr.msk.f32.mxu1 %vm1036_vm0, %v1034_v1  ;;  %748 = vmatprep.mubr.msk.f32.mxu0 %vm1036_vm0, %v1034_v1  ;;  %v345_v5 = vld [vmem:[#allocation6 + $0x10] sm:$0xff]  ;;  %v792_v6 = vpack.c.bf16 %v344_v4, %v343_v3  ;;  %v346_v7 = vld [vmem:[#allocation6 + $0x18] sm:$0xff]  ;;  %v347_v9 = vld [vmem:[#allocation6 + $0x20] sm:$0xff]  ;;  %vm503_vm1 = vcmask 64512   ;;  %p216_p7 = scmp.lt.s32.totalorder %s1019_s15, 1 }
  0x56   : > { %v795_v8 = vpack.c.bf16 %v346_v7, %v345_v5  ;;  %v348_v10 = vld [vmem:[#allocation6 + $0x28] sm:$0xff]  ;;  %v225_v11 = vld [vmem:[%s1190_s10] sm:$0xff]  ;;  %v349_v13 = vld [vmem:[#allocation6 + $0x30] sm:$0xff] }
  0x57   : > { %817 = vmatpush3.bf16.msra.mxu1 %v792_v6  ;;  %793 = vmatpush3.bf16.msra.mxu0 %v792_v6  ;;  %v226_v12 = vld [vmem:[%s1190_s10 + $0x8] sm:$0xff]  ;;  %v227_v14 = vld [vmem:[%s1190_s10 + $0x10] sm:$0xff]  ;;  %v229_v15 = vld [vmem:[%s1190_s10 + $0x20] sm:$0xff]  ;;  %v798_v17 = vpack.c.bf16 %v348_v10, %v347_v9  ;;  %s1406_s15 = smov (!%p216_p7, %s1019_s15), 1 }
  0x58   : > { %818 = vmatprep.subr.bf16.mxu1 %v1033_v0  ;;  %794 = vmatprep.subr.bf16.mxu0 %v1033_v0  ;;  %v258_v16 = vadd.f32 %v226_v12, %v225_v11  ;;  %v228_v18 = vld [vmem:[%s1190_s10 + $0x18] sm:$0xff]  ;;  %v230_v19 = vld [vmem:[%s1190_s10 + $0x28] sm:$0xff]  ;;  %v231_v20 = vld [vmem:[%s1190_s10 + $0x30] sm:$0xff]  ;;  %v298_v21 = vmax.f32 %v225_v11, %v229_v15  ;;  %s218_s8 = scalar_lea.vmem %s1385_s3, %s1406_s15 }
  0x59   : > { %v350_v22 = vld [vmem:[#allocation6 + $0x38] sm:$0xff]  ;;  %v1222_v24 = vld [vmem:[%s1190_s10 + $0x40] sm:$0xff]  ;;  %v299_v26 = vmax.f32 %v226_v12, %v230_v19  ;;  %v300_v27 = vmax.f32 %v227_v14, %v231_v20  ;;  %v1225_v28 = vld [vmem:[%s1190_s10 + $0x48] sm:$0xff] }
  0x5a   : > { %v1219_v23 = vld [vmem:[%s1190_s10 + $0x38] sm:$0xff]  ;;  %v259_v25 = vadd.f32 %v258_v16, %v227_v14  ;;  %v1228_v29 = vld [vmem:[%s1190_s10 + $0x50] sm:$0xff]  ;;  %v302_v31 = vmax.f32 %v298_v21, %v1222_v24  ;;  %v1236_v33 = vld [vmem:[%s1190_s10 + $0x60] sm:$0xff]  ;;  %v801_v37 = vpack.c.bf16 %v350_v22, %v349_v13 }
  0x5b   : > { %820 = vmatpush3.bf16.msra.mxu1 %v795_v8  ;;  %796 = vmatpush3.bf16.msra.mxu0 %v795_v8  ;;  %v301_v30 = vmax.f32 %v228_v18, %v1219_v23  ;;  %v1233_v32 = vld [vmem:[%s1190_s10 + $0x58] sm:$0xff]  ;;  %v303_v35 = vmax.f32 %v299_v26, %v1225_v28  ;;  %v304_v36 = vmax.f32 %v300_v27, %v1228_v29  ;;  %v351_v38 = vld [vmem:[#allocation6 + $0x40] sm:$0xff]  ;;  %v1241_v39 = vld [vmem:[%s1190_s10 + $0x68] sm:$0xff] }
  0x5c   : > { %821 = vmatprep.subr.bf16.mxu1 %v1033_v0  ;;  %797 = vmatprep.subr.bf16.mxu0 %v1033_v0  ;;  %v260_v34 = vadd.f32 %v259_v25, %v228_v18  ;;  %v1244_v40 = vld [vmem:[%s1190_s10 + $0x70] sm:$0xff]  ;;  %v306_v42 = vmax.f32 %v302_v31, %v1236_v33  ;;  %v352_v43 = vld [vmem:[#allocation6 + $0x48] sm:$0xff]  ;;  %v1251_v44 = vld [vmem:[%s1190_s10 + $0x78] sm:$0xff] }
  0x5d   : > { %v305_v41 = vmax.f32 %v301_v30, %v1233_v32  ;;  %v1254_v45 = vld [vmem:[%s1190_s10 + $0x80] sm:$0xff]  ;;  %v307_v47 = vmax.f32 %v303_v35, %v1241_v39  ;;  %v308_v48 = vmax.f32 %v304_v36, %v1244_v40  ;;  %v1259_v49 = vld [vmem:[%s1190_s10 + $0x88] sm:$0xff]  ;;  %v1262_v50 = vld [vmem:[%s1190_s10 + $0x90] sm:$0xff]  ;;  %v804_v59 = vpack.c.bf16 %v352_v43, %v351_v38 }
  0x5e   : > { %v261_v46 = vadd.f32 %v260_v34, %v229_v15  ;;  %v310_v52 = vmax.f32 %v306_v42, %v1254_v45  ;;  %v353_v53 = vld [vmem:[#allocation6 + $0x50] sm:$0xff]  ;;  %v1267_v54 = vld [vmem:[%s1190_s10 + $0x98] sm:$0xff]  ;;  %v1270_v55 = vld [vmem:[%s1190_s10 + $0xa0] sm:$0xff] }
  0x5f   : > { %823 = vmatpush3.bf16.msra.mxu1 %v798_v17  ;;  %799 = vmatpush3.bf16.msra.mxu0 %v798_v17  ;;  %v309_v51 = vmax.f32 %v305_v41, %v1251_v44  ;;  %v311_v57 = vmax.f32 %v307_v47, %v1259_v49  ;;  %v312_v58 = vmax.f32 %v308_v48, %v1262_v50  ;;  %v354_v60 = vld [vmem:[#allocation6 + $0x58] sm:$0xff]  ;;  %v1275_v61 = vld [vmem:[%s1190_s10 + $0xa8] sm:$0xff]  ;;  %v1278_v62 = vld [vmem:[%s1190_s10 + $0xb0] sm:$0xff] }
  0x60   : > { %824 = vmatprep.subr.bf16.mxu1 %v1033_v0  ;;  %800 = vmatprep.subr.bf16.mxu0 %v1033_v0  ;;  %v262_v56 = vadd.f32 %v261_v46, %v230_v19  ;;  %v314_v2 = vmax.f32 %v310_v52, %v1270_v55  ;;  %v1285_v3 = vld [vmem:[%s1190_s10 + $0xb8] sm:$0xff]  ;;  %v1288_v4 = vld [vmem:[%s1190_s10 + $0xc0] sm:$0xff]  ;;  %v1291_v5 = vld [vmem:[%s1190_s10 + $0xc8] sm:$0xff] }
  0x61   : > { %v313_v63 = vmax.f32 %v309_v51, %v1267_v54  ;;  %v315_v7 = vmax.f32 %v311_v57, %v1275_v61  ;;  %v316_v8 = vmax.f32 %v312_v58, %v1278_v62  ;;  %v1296_v9 = vld [vmem:[%s1190_s10 + $0xd0] sm:$0xff]  ;;  %v1299_v10 = vld [vmem:[%s1190_s10 + $0xe8] sm:$0xff]  ;;  %v1307_v14 = vld [vmem:[%s1190_s10 + $0xd8] sm:$0xff] }
  0x62   : > { %v263_v6 = vadd.f32 %v262_v56, %v231_v20  ;;  %v1302_v11 = vld [vmem:[%s1190_s10 + $0xf0] sm:$0xff]  ;;  %v318_v13 = vmax.f32 %v314_v2, %v1288_v4  ;;  %v1310_v15 = vld [vmem:[%s1190_s10 + $0xe0] sm:$0xff]  ;;  %v1313_v16 = vld [vmem:[%s1190_s10 + $0xf8] sm:$0xff]  ;;  %v807_v20 = vpack.c.bf16 %v354_v60, %v353_v53 }
  0x63   : > { %826 = vmatpush3.bf16.msra.mxu1 %v801_v37  ;;  %802 = vmatpush3.bf16.msra.mxu0 %v801_v37  ;;  %v317_v12 = vmax.f32 %v313_v63, %v1285_v3  ;;  %v319_v18 = vmax.f32 %v315_v7, %v1291_v5  ;;  %v320_v19 = vmax.f32 %v316_v8, %v1296_v9  ;;  %v355_v25 = vld [vmem:[#allocation6 + $0x60] sm:$0xff]  ;;  %v356_v26 = vld [vmem:[#allocation6 + $0x68] sm:$0xff]  ;;  %v357_v38 = vld [vmem:[#allocation6 + $0x70] sm:$0xff] }
  0x64   : > { %827 = vmatprep.subr.bf16.mxu1 %v1033_v0  ;;  %803 = vmatprep.subr.bf16.mxu0 %v1033_v0  ;;  %v264_v17 = vadd.f32 %v263_v6, %v1219_v23  ;;  %v322_v22 = vmax.f32 %v318_v13, %v1310_v15  ;;  %v810_v36 = vpack.c.bf16 %v356_v26, %v355_v25  ;;  %v358_v41 = vld [vmem:[#allocation6 + $0x78] sm:$0xff] }
  0x65   : > { %v321_v21 = vmax.f32 %v317_v12, %v1307_v14  ;;  %v323_v23 = vmax.f32 %v319_v18, %v1299_v10  ;;  %v324_v30 = vmax.f32 %v320_v19, %v1302_v11  ;;  %v813_v46 = vpack.c.bf16 %v358_v41, %v357_v38  ;;  %v297_v58 = vld [vmem:[#allocation3] sm:$0x1] }
  0x66   : > { %v265_v27 = vadd.f32 %v264_v17, %v1222_v24 }
  0x67   : > { %829 = vmatpush3.bf16.msra.mxu1 %v804_v59  ;;  %805 = vmatpush3.bf16.msra.mxu0 %v804_v59  ;;  %v325_v31 = vmax.f32 %v321_v21, %v1313_v16  ;;  %v326_v35 = vmax.f32 %v322_v22, %v323_v23 }
  0x68   : > { %830 = vmatprep.subr.bf16.mxu1 %v1033_v0  ;;  %806 = vmatprep.subr.bf16.mxu0 %v1033_v0  ;;  %v266_v34 = vadd.f32 %v265_v27, %v1225_v28 }
  0x69   : > { %v327_v37 = vmax.f32 %v324_v30, %v325_v31 }
  0x6a   : > { %v267_v24 = vadd.f32 %v266_v34, %v1228_v29 }
  0x6b   : > { %832 = vmatpush3.bf16.msra.mxu1 %v807_v20  ;;  %808 = vmatpush3.bf16.msra.mxu0 %v807_v20  ;;  %v328_v42 = vmax.f32 %v326_v35, %v327_v37 }
  0x6c   : > { %833 = vmatprep.subr.bf16.mxu1 %v1033_v0  ;;  %809 = vmatprep.subr.bf16.mxu0 %v1033_v0  ;;  %v268_v43 = vadd.f32 %v267_v24, %v1233_v32 }
  0x6d   : > { %v329_v28 = vrot.slane %v328_v42, 4 }
  0x6e   : > { %v269_v47 = vadd.f32 %v268_v43, %v1236_v33 }
  0x6f   : > { %835 = vmatpush3.bf16.msra.mxu1 %v810_v36  ;;  %811 = vmatpush3.bf16.msra.mxu0 %v810_v36  ;;  %v330_v48 = vmax.f32 %v328_v42, %v329_v28 }
  0x70   : > { %836 = vmatprep.subr.bf16.mxu1 %v1033_v0  ;;  %812 = vmatprep.subr.bf16.mxu0 %v1033_v0  ;;  %v270_v51 = vadd.f32 %v269_v47, %v1241_v39 }
  0x71   : > { %v331_v52 = vrot.slane %v330_v48, 2 }
  0x72   : > { %v271_v29 = vadd.f32 %v270_v51, %v1244_v40 }
  0x73   : > { %838 = vmatpush3.bf16.msra.mxu1 %v813_v46  ;;  %814 = vmatpush3.bf16.msra.mxu0 %v813_v46  ;;  %v332_v32 = vmax.f32 %v330_v48, %v331_v52 }
  0x74   : > { %786 = vmatprep.subr.mxu0 %v1034_v1  ;;  %v272_v53 = vadd.f32 %v271_v29, %v1251_v44 }
  0x75   : > { %v333_v56 = vrot.slane %v332_v32, 1 }
  0x76   : > { %v273_v57 = vadd.f32 %v272_v53, %v1254_v45 }
  0x77   : > { %v334_v0 = vmax.f32 %v332_v32, %v333_v56 }
  0x78   : > { %v274_v33 = vadd.f32 %v273_v57, %v1259_v49 }
  0x79   : > { %v335_v59 = vmax.f32 %v297_v58, %v334_v0 }
  0x7a   : > { %v275_v39 = vadd.f32 %v274_v33, %v1262_v50 }
  0x7b   : > { %336 = vst [vmem:[#allocation3] sm:$0x1] %v335_v59 }
  0x7c   : > { %v276_v60 = vadd.f32 %v275_v39, %v1267_v54 }
  0x7e   : > { %v277_v40 = vadd.f32 %v276_v60, %v1270_v55 }
  0x80   : > { %v278_v63 = vadd.f32 %v277_v40, %v1275_v61 }
  0x82   : > { %v279_v2 = vadd.f32 %v278_v63, %v1278_v62  ;;  %v342_v44 = vld [vmem:[#allocation3] sm:$0x1] }
  0x83   : > { %784 = vmatmul.mubr.f32.vlgmr.msra.gmra.mrb[0].mxu1 %v342_v44 }
  0x84   : > { %v280_v45 = vadd.f32 %v279_v2, %v1285_v3 }
  0x86   : > { %v281_v6 = vadd.f32 %v280_v45, %v1288_v4  ;;  %v257_v4 = vld [vmem:[#allocation2] sm:$0x1] }
  0x88   : > { %v282_v49 = vadd.f32 %v281_v6, %v1291_v5 }
  0x8a   : > { %v283_v7 = vadd.f32 %v282_v49, %v1296_v9 }
  0x8c   : > { %v284_v50 = vadd.f32 %v283_v7, %v1307_v14 }
  0x8e   : > { %v285_v54 = vadd.f32 %v284_v50, %v1310_v15 }
  0x90   : > { %v286_v55 = vadd.f32 %v285_v54, %v1299_v10  ;;  %v359_v10 = vld [vmem:[%s1384_s2] sm:$0xff] }
  0x92   : > { %v287_v61 = vadd.f32 %v286_v55, %v1302_v11 }
  0x94   : > { %v288_v62 = vadd.f32 %v287_v61, %v1313_v16 }
  0x96   : > { %v289_v8 = vrot.slane %v288_v62, 4 }
  0x98   : > { %v290_v12 = vadd.f32 %v289_v8, %v288_v62 }
  0x9a   : > { %v291_v13 = vrot.slane %v290_v12, 2 }
  0x9c   : > { %v292_v3 = vadd.f32 %v291_v13, %v290_v12 }
  0x9e   : > { %v293_v17 = vrot.slane %v292_v3, 1 }
  0xa0   : > { %v294_v18 = vadd.f32 %v293_v17, %v292_v3 }
  0xa2   : > { %v295_v5 = vadd.f32 %v294_v18, %v257_v4 }
  0xa4   : > { %296 = vst [vmem:[#allocation2] sm:$0x1] %v295_v5 }
  0xab   : > { %v340_v9 = vld [vmem:[#allocation2] sm:$0x1] }
  0xac   : > { %v341_v19 = vmul.f32 0.00390625, %v340_v9 }
  0xae   : > { %749 = vmatmul.mubr.f32.vlgmr.msra.gmra.mrb[0].mxu0 %v341_v19 }
  0xaf   : > { %788 = vmatprep.mubr.msk.f32.mxu0 %vm1036_vm0, %v1034_v1  ;;  %787 = vmatpush3.msra.mxu0 %v359_v10 }
 0x156   : > { %v497_v11 = vpop.f32.mrb[0].mxu1 }
 0x157   : > { %v785_v14 = vpop.f32.mrb[1].mxu1  ;;  %v501_v15 = vmax.f32 %v497_v11, 0.0 }
 0x181   : > { %v426_v16 = vpop.f32.mrb[0].mxu0 }
 0x182   : > { %v430_v20 = vmax.f32 %v426_v16, 0.0  ;;  %v750_v21 = vpop.f32.mrb[1].mxu0 }
 0x184   : > { %v502_v22 = vadd.f32 %v501_v15, %v430_v20 }
 0x186   : > { %789 = vmatmul.mubr.msk.f32.vlgmr.msra.gmra.mrb[2].mxu0 %vm503_vm1, %v502_v22 }
 0x259   : > { %v573_v25 = vpop.f32.mrb[2].mxu0 }
 0x25a   : > { %v676_v26 = vmul.f32 -1.442695, %v573_v25  ;;  %v790_v27 = vpop.f32.mrb[3].mxu0 }
 0x25c   : > { %911 = vpow2.f32 %v676_v26 }
 0x266   : > { %v912_v1 = vpop.eup %911 }
 0x267   : > { %v580_v23 = vadd.f32 1.0, %v912_v1 }
 0x269   : > { %913 = vrcp.f32 %v580_v23 }
 0x273   : > { %v914_v30 = vpop.eup %913 }
 0x274   : > { %583 = vst [vmem:[%s218_s8] sm:$0x1] %v914_v30 }
 0x275 PF: > { %s17_s17 = sadd.s32 1, %s1027_s17   ;;  %s1398_s12 = smov %s1011_s13 }
 0x276   : > { %p14_p1 = scmp.ge.s32.totalorder %s17_s17, 4   ;;  %s1399_s13 = smov %s1015_s14 }
 0x277   : > { %s1400_s14 = smov %s1143_s26  ;;  %s1401_s15 = smov %s1023_s16 }
 0x278   : > { %s1402_s16 = smov %s1404_s25  ;;  %16 = sbr.rel (!%p14_p1) target bundleno = 5 (0x5), region = 84 }
 0x27f   :  { %601 = vsyncpa [#allocation5], 1 }
 0x280   :  { %603 = vsyncpa [#allocation5 + $0x1], 1 }
 0x281   :  { %604 = vsyncpa [#allocation7], 1 }

// kernel: _lambda_.3
= control target key start
LH: loop header
LB: loop body
LE: loop exit
PB: predicated region body
PF: predicated region fallthrough
CT: control target
= control target key end

     0   :  { %s4357_s0 = inlined_call_operand.vmem [shape: f32[2,16,16,128], index: 0, kind: input, shape index: {}]   ;;  %s4358_s1 = inlined_call_operand.vmem [shape: f32[2,1,128], index: 1, kind: input, shape index: {}]   ;;  %s4359_s2 = inlined_call_operand.vmem [shape: f32[99], index: 2, kind: input, shape index: {}]   ;;  %s4360_s3 = inlined_call_operand.hbm [shape: f32[2,16,16,128], index: 3, kind: output, shape index: {}]  }
   0x1   :  { %4435 = sst [smem:[#allocation19_spill]] %s4357_s0 }
   0x2   :  { %4436 = sst [smem:[#allocation20_spill]] %s4358_s1 }
   0x3   :  { %4437 = sst [smem:[#allocation21_spill]] %s4359_s2 }
   0x4   :  { %8 = vsyncpa [#allocation6], 0 }
   0x5   :  { %9 = vsyncpa [#allocation5], 0 }
   0x6   :  { %11 = vsyncpa [#allocation5 + $0x1], 0  ;;  %s2777_s12 = smov 0   ;;  %s2779_s13 = smov 0  }
   0x7   :  { %s2781_s14 = smov 0   ;;  %s2783_s15 = smov 0  }
   0x8 LB: > { %s2798_s16 = sadd.s32 4294967295, %s2744_s15   ;;  %s2479_s17 = sadd.s32 4294967294, %s2744_s15   ;;  %s2744_s15 = sphi %s2783_s15, %s4525_s15   ;;  %s2740_s14 = sphi %s2781_s14, %s4524_s14   ;;  %s2736_s13 = sphi %s2779_s13, %s4523_s13   ;;  %s2732_s12 = sphi %s2777_s12, %s4522_s12  }
   0x9   : > { %s2802_s18 = sadd.s32 1, %s2744_s15   ;;  %s97_s19 = sadd.s32 1, %s2740_s14 }
   0xa   : > { %s94_s20 = ssub.s32 %s2744_s15, %s2802_s18  ;;  %p107_p0 = scmp.ne.s32.totalorder %s2740_s14, %s2736_s13 }
   0xb   : > { %p95_p1 = scmp.eq.s32.totalorder %s94_s20, 0  ;;  %p108_p2 = scmp.eq.s32.totalorder %s2798_s16, 1 }
   0xc   : > { %p113_p3 = scmp.ne.s32.totalorder %s2736_s13, %s2732_s12  ;;  %p114_p4 = scmp.eq.s32.totalorder %s2479_s17, 1 }
   0xd   : > { %s2813_s21 = scalar_select %p95_p1, %s2740_s14, %s97_s19  }
   0xe   : > { %p2815_p5 = por %p108_p2, %p107_p0  ;;  %p2819_p6 = por %p114_p4, %p113_p3 }
   0xf   : > { %4438 = sst [smem:[#allocation10_spill]] %s2813_s21  ;;  %p2480_p7 = scmp.ge.s32.totalorder %s2744_s15, 1 }
  0x10   : > { %p121_p8 = scmp.lt.s32.totalorder %s2744_s15, 3  ;;  %p2610_p9 = scmp.eq.s32.totalorder %s2798_s16, 0 }
  0x11   : > { %s4442_s2 = sld [smem:[#allocation21_spill]] }
  0x12   : > { %p2826_p10 = pnand %p2480_p7, %p121_p8 }
  0x14   : > { %p2602_p11 = pneg %p2826_p10 }
  0x16   : > { %p2603_p12 = pnand %p2610_p9, %p2602_p11 }
  0x17   : > { %s134_s27 = sshll.u32 %s4442_s2, 4  ;;  %s135_s27 = int_to_ptr.vmem [resolvable:$true] %s134_s27 }
  0x18   : > { %s2663_s28 = scalar_lea.vmem %s135_s27, 16  ;;  %p2665_p0 = pneg %p2603_p12 }
  0x19   : > { %p2664_p13 = scmp.ne.s32.totalorder %s135_s27, %s2663_s28  ;;  %p2671_p3 = scmp.lt.s32.totalorder %s135_s27, %s135_s27 }
  0x1a   : > { %p2672_p4 = scmp.lt.s32.totalorder %s2663_s28, %s2663_s28 }
  0x1b   : > { %p2666_p1 = pnand %p2665_p0, %p2664_p13 }
  0x1c   : > { %p2673_p7 = por %p2672_p4, %p2671_p3 }
  0x1d   : > { %p2667_p2 = pneg %p2666_p1 }
  0x1f   : > { %p2674_p8 = pnand %p2673_p7, %p2667_p2 }
  0x21   : > { %2677 = shalt.err (!%p2674_p8)
}
  0x22   : > { %s2746_s29 = smov [#allocation4]   ;;  %161 = sbr.rel (%p2826_p10) target bundleno = 974 (0x3ce), region = 32 }
  0x23   : > { %2605 = dma.vmem_to_smem (!%p2603_p12), %s135_s27, 16, %s2746_s29, [#allocation6]  }
  0x29   : > { %2723 = dma.done.wait (%p2610_p9), [#allocation6], 16  }
  0x2a   : > { %2725 = vsyncadd (%p2610_p9), [#allocation6], 4294967280 }
  0x2b   : > { %167 = sfence }
  0x2c   : > { %p189_p11 = scmp.lt.s32.totalorder %s2798_s16, 1  ;;  %s4443_s1 = sld [smem:[#allocation20_spill]]  ;;  %vm429_vm0 = vcmask 179200   ;;  %v2747_v55 = vmov 0.0   ;;  %vm432_vm1 = vcmask 177152   ;;  %vm481_vm2 = vcmask 154712  }
  0x2d   : > { %s4444_s0 = sld [smem:[#allocation19_spill]]  ;;  %430 = vst.msk [vmem:[#allocation2] sm:$0xff] %vm429_vm0, %v2747_v55  ;;  %431 = vst.msk [vmem:[#allocation2 + $0x8] sm:$0xff] %vm429_vm0, %v2747_v55  ;;  %vm618_vm3 = vcmask 1041409   ;;  %vm620_vm4 = vcmask 1042434   ;;  %vm622_vm5 = vcmask 1043459  }
  0x2e   : > { %s190_s30 = scalar_select %p189_p11, %s2798_s16, 1  ;;  %434 = vst.msk [vmem:[#allocation3] sm:$0xff] %vm429_vm0, %v2747_v55  ;;  %435 = vst.msk [vmem:[#allocation3 + $0x8] sm:$0xff] %vm429_vm0, %v2747_v55  ;;  %vm624_vm6 = vcmask 1044484   ;;  %vm626_vm7 = vcmask 1045509   ;;  %vm628_vm8 = vcmask 1046534  }
  0x2f   : > { %433 = vst.msk [vmem:[#allocation2 + $0x10] sm:$0x3f] %vm432_vm1, %v2747_v55  ;;  %436 = vst.msk [vmem:[#allocation3 + $0x10] sm:$0x3f] %vm432_vm1, %v2747_v55  ;;  %vm630_vm9 = vcmask 1047559   ;;  %vm641_vm10 = vcmask 154648  }
  0x30   : > { %s2594_s4 = sshll.u32 %s190_s30, 8  ;;  %s3146_s11 = sld [smem:[#allocation4]] }
  0x31   : > { %s3149_s17 = sld [smem:[#allocation4 + $0x1]]  ;;  %s3153_s19 = sld [smem:[#allocation4 + $0x5]] }
  0x32   : > { %s196_s7 = scalar_lea.vmem %s4443_s1, %s190_s30  ;;  %s3155_s20 = sld [smem:[#allocation4 + $0x3]] }
  0x33   : > { %s2851_s10 = scalar_lea.vmem %s4444_s0, %s2594_s4  ;;  %v2853_v0 = vld [vmem:[%s196_s7] ss:$0 sm:$0xff]  ;;  %s3163_s24 = sld [smem:[#allocation4 + $0x7]] }
  0x34   : > { %v199_v1 = vld [vmem:[%s2851_s10 + $0x10] sm:$0xff]  ;;  %v197_v2 = vld [vmem:[%s2851_s10] sm:$0xff]  ;;  %v200_v3 = vld [vmem:[%s2851_s10 + $0x18] sm:$0xff]  ;;  %s3171_s25 = sld [smem:[#allocation4 + $0x9]]  ;;  %s3190_s26 = sld [smem:[#allocation4 + $0x2]] }
  0x35   : > { %v2859_v4 = vmul.f32 %v2853_v0, %v199_v1  ;;  %v2862_v5 = vmul.f32 %v2853_v0, %v197_v2  ;;  %v198_v6 = vld [vmem:[%s2851_s10 + $0x8] sm:$0xff]  ;;  %v2868_v7 = vmul.f32 %v2853_v0, %v200_v3  ;;  %v201_v10 = vld [vmem:[%s2851_s10 + $0x20] sm:$0xff]  ;;  %v204_v13 = vld [vmem:[%s2851_s10 + $0x38] sm:$0xff]  ;;  %s4369_s27 = smov 126   ;;  %s4379_s28 = smov 127  }
  0x36   : > { %v2871_v8 = vmul.f32 %v2853_v0, %v198_v6  ;;  %v202_v9 = vld [vmem:[%s2851_s10 + $0x28] sm:$0xff]  ;;  %v2881_v12 = vmul.f32 %v2853_v0, %v201_v10  ;;  %v203_v14 = vld [vmem:[%s2851_s10 + $0x30] sm:$0xff]  ;;  %v2888_v15 = vmul.f32 %v2853_v0, %v204_v13  ;;  %v205_v18 = vld [vmem:[%s2851_s10 + $0x40] sm:$0xff]  ;;  %v469_v10 = vlaneseq  ;;  %s3198_s29 = sld [smem:[#allocation4 + $0x4]]  ;;  %s4364_s30 = smov 125  }
  0x37   : > { %272 = vadd.xlane.f32.xlu1 %v2859_v4  ;;  %268 = vadd.xlane.f32.xlu0 %v2862_v5  ;;  %v2878_v11 = vmul.f32 %v2853_v0, %v202_v9  ;;  %v2891_v16 = vmul.f32 %v2853_v0, %v203_v14  ;;  %v206_v17 = vld [vmem:[%s2851_s10 + $0x48] sm:$0xff]  ;;  %v2901_v20 = vmul.f32 %v2853_v0, %v205_v18  ;;  %v208_v21 = vld [vmem:[%s2851_s10 + $0x58] sm:$0xff]  ;;  %v207_v22 = vld [vmem:[%s2851_s10 + $0x50] sm:$0xff]  ;;  %s3207_s4 = sld [smem:[#allocation4 + $0x6]]  ;;  %s4366_s5 = smov 124  }
  0x38   : > { %v2898_v19 = vmul.f32 %v2853_v0, %v206_v17  ;;  %v2908_v23 = vmul.f32 %v2853_v0, %v208_v21  ;;  %v2911_v24 = vmul.f32 %v2853_v0, %v207_v22  ;;  %v210_v25 = vld [vmem:[%s2851_s10 + $0x68] sm:$0xff]  ;;  %v209_v26 = vld [vmem:[%s2851_s10 + $0x60] sm:$0xff]  ;;  %v212_v29 = vld [vmem:[%s2851_s10 + $0x78] sm:$0xff]  ;;  %v470_v17 = vand.u32 127, %v469_v10  ;;  %s3227_s6 = sld [smem:[#allocation4 + $0x8]]  ;;  %s3243_s7 = sld [smem:[#allocation4 + $0xa]] }
  0x39   : > { %v2918_v27 = vmul.f32 %v2853_v0, %v210_v25  ;;  %v2921_v28 = vmul.f32 %v2853_v0, %v209_v26  ;;  %v211_v30 = vld [vmem:[%s2851_s10 + $0x70] sm:$0xff]  ;;  %v2928_v31 = vmul.f32 %v2853_v0, %v212_v29  ;;  %v214_v33 = vld [vmem:[%s2851_s10 + $0x88] sm:$0xff]  ;;  %v213_v34 = vld [vmem:[%s2851_s10 + $0x80] sm:$0xff]  ;;  %v3047_v26 = vshrl.u32 %v469_v10, 7  ;;  %s3258_s8 = sld [smem:[#allocation4 + $0xb]]  ;;  %s3267_s9 = sld [smem:[#allocation4 + $0xc]] }
  0x3a   : > { %v2931_v32 = vmul.f32 %v2853_v0, %v211_v30  ;;  %v2938_v35 = vmul.f32 %v2853_v0, %v214_v33  ;;  %v2941_v36 = vmul.f32 %v2853_v0, %v213_v34  ;;  %v216_v37 = vld [vmem:[%s2851_s10 + $0x98] sm:$0xff]  ;;  %v215_v38 = vld [vmem:[%s2851_s10 + $0x90] sm:$0xff]  ;;  %v218_v41 = vld [vmem:[%s2851_s10 + $0xa8] sm:$0xff]  ;;  %v476_v18 = vadd.s32 4294967285, %v470_v17  ;;  %s3581_s0 = sld [smem:[#allocation4 + $0x31]]  ;;  %s3645_s1 = sld [smem:[#allocation4 + $0x36]] }
  0x3b   : > { %274 = vadd.xlane.f32.xlu1 %v2868_v7  ;;  %270 = vadd.xlane.f32.xlu0 %v2871_v8  ;;  %v2948_v39 = vmul.f32 %v2853_v0, %v216_v37  ;;  %v2951_v40 = vmul.f32 %v2853_v0, %v215_v38  ;;  %v217_v42 = vld [vmem:[%s2851_s10 + $0xa0] sm:$0xff]  ;;  %v2958_v43 = vmul.f32 %v2853_v0, %v218_v41  ;;  %v220_v45 = vld [vmem:[%s2851_s10 + $0xb8] sm:$0xff]  ;;  %v219_v46 = vld [vmem:[%s2851_s10 + $0xb0] sm:$0xff]  ;;  %v471_v25 = vadd.s32 4294967293, %v470_v17  ;;  %s3671_s2 = sld [smem:[#allocation4 + $0x3a]]  ;;  %s3724_s21 = sld [smem:[#allocation4 + $0x1c]] }
  0x3c   : > { %v2961_v44 = vmul.f32 %v2853_v0, %v217_v42  ;;  %v2968_v47 = vmul.f32 %v2853_v0, %v220_v45  ;;  %v2971_v48 = vmul.f32 %v2853_v0, %v219_v46  ;;  %v222_v49 = vld [vmem:[%s2851_s10 + $0xc8] sm:$0xff]  ;;  %v221_v50 = vld [vmem:[%s2851_s10 + $0xc0] sm:$0xff]  ;;  %v224_v53 = vld [vmem:[%s2851_s10 + $0xd8] sm:$0xff]  ;;  %v3050_v29 = vsub.s32 %v476_v18, %v3047_v26 }
  0x3d   : > { %v2978_v51 = vmul.f32 %v2853_v0, %v222_v49  ;;  %v2981_v52 = vmul.f32 %v2853_v0, %v221_v50  ;;  %v223_v54 = vld [vmem:[%s2851_s10 + $0xd0] sm:$0xff]  ;;  %v2988_v56 = vmul.f32 %v2853_v0, %v224_v53  ;;  %v226_v58 = vld [vmem:[%s2851_s10 + $0xe8] sm:$0xff]  ;;  %v225_v59 = vld [vmem:[%s2851_s10 + $0xe0] sm:$0xff]  ;;  %v3053_v38 = vsub.s32 %v471_v25, %v3047_v26 }
  0x3e   : > { %v2991_v57 = vmul.f32 %v2853_v0, %v223_v54  ;;  %v2998_v60 = vmul.f32 %v2853_v0, %v226_v58  ;;  %v3001_v61 = vmul.f32 %v2853_v0, %v225_v59  ;;  %v228_v62 = vld [vmem:[%s2851_s10 + $0xf8] sm:$0xff]  ;;  %v227_v63 = vld [vmem:[%s2851_s10 + $0xf0] sm:$0xff]  ;;  %s3276_s10 = sld [smem:[#allocation4 + $0xd]] }
  0x3f   : > { %278 = vadd.xlane.f32.xlu1 %v2878_v11  ;;  %276 = vadd.xlane.f32.xlu0 %v2881_v12  ;;  %4445 = vst [vmem:[#allocation11_spill] sm:$0xff] %v2978_v51  ;;  %4446 = vst [vmem:[#allocation12_spill] sm:$0xff] %v2981_v52  ;;  %v3008_v1 = vmul.f32 %v2853_v0, %v228_v62  ;;  %v3011_v2 = vmul.f32 %v2853_v0, %v227_v63 }
  0x40   : > { %4447 = vst [vmem:[#allocation13_spill] sm:$0xff] %v2988_v56  ;;  %4448 = vst [vmem:[#allocation14_spill] sm:$0xff] %v2991_v57 }
  0x41   : > { %4449 = vst [vmem:[#allocation15_spill] sm:$0xff] %v2998_v60  ;;  %4450 = vst [vmem:[#allocation16_spill] sm:$0xff] %v3001_v61 }
  0x42   : > { %4451 = vst [vmem:[#allocation17_spill] sm:$0xff] %v3008_v1  ;;  %4452 = vst [vmem:[#allocation18_spill] sm:$0xff] %v3011_v2 }
  0x43   : > { %282 = vadd.xlane.f32.xlu1 %v2888_v15  ;;  %280 = vadd.xlane.f32.xlu0 %v2891_v16 }
  0x47   : > { %286 = vadd.xlane.f32.xlu1 %v2898_v19  ;;  %284 = vadd.xlane.f32.xlu0 %v2901_v20 }
  0x4b   : > { %290 = vadd.xlane.f32.xlu1 %v2908_v23  ;;  %288 = vadd.xlane.f32.xlu0 %v2911_v24 }
  0x4f   : > { %294 = vadd.xlane.f32.xlu1 %v2918_v27  ;;  %292 = vadd.xlane.f32.xlu0 %v2921_v28 }
  0x53   : > { %298 = vadd.xlane.f32.xlu1 %v2928_v31  ;;  %296 = vadd.xlane.f32.xlu0 %v2931_v32 }
  0x57   : > { %302 = vadd.xlane.f32.xlu1 %v2938_v35  ;;  %300 = vadd.xlane.f32.xlu0 %v2941_v36 }
  0x5b   : > { %306 = vadd.xlane.f32.xlu1 %v2948_v39  ;;  %304 = vadd.xlane.f32.xlu0 %v2951_v40 }
  0x5f   : > { %310 = vadd.xlane.f32.xlu1 %v2958_v43  ;;  %308 = vadd.xlane.f32.xlu0 %v2961_v44 }
  0x63   : > { %314 = vadd.xlane.f32.xlu1 %v2968_v47  ;;  %312 = vadd.xlane.f32.xlu0 %v2971_v48 }
  0x67   : > { %318 = vadd.xlane.f32.xlu1 %v2978_v51  ;;  %316 = vadd.xlane.f32.xlu0 %v2981_v52 }
  0x6b   : > { %322 = vadd.xlane.f32.xlu1 %v2988_v56  ;;  %320 = vadd.xlane.f32.xlu0 %v2991_v57 }
  0x6f   : > { %326 = vadd.xlane.f32.xlu1 %v2998_v60  ;;  %324 = vadd.xlane.f32.xlu0 %v3001_v61 }
  0x73   : > { %330 = vadd.xlane.f32.xlu1 %v3008_v1  ;;  %328 = vadd.xlane.f32.xlu0 %v3011_v2 }
  0x77   : > { %367 = vmax.xlane.f32.xlu1 %v2871_v8  ;;  %365 = vmax.xlane.f32.xlu0 %v2862_v5 }
  0x7b   : > { %371 = vmax.xlane.f32.xlu1 %v2868_v7  ;;  %369 = vmax.xlane.f32.xlu0 %v2859_v4 }
  0x7f   : > { %375 = vmax.xlane.f32.xlu1 %v2878_v11  ;;  %373 = vmax.xlane.f32.xlu0 %v2881_v12 }
  0x83   : > { %379 = vmax.xlane.f32.xlu1 %v2888_v15  ;;  %377 = vmax.xlane.f32.xlu0 %v2891_v16 }
  0x87   : > { %383 = vmax.xlane.f32.xlu1 %v2898_v19  ;;  %381 = vmax.xlane.f32.xlu0 %v2901_v20 }
  0x8b   : > { %387 = vmax.xlane.f32.xlu1 %v2908_v23  ;;  %385 = vmax.xlane.f32.xlu0 %v2911_v24 }
  0x8f   : > { %391 = vmax.xlane.f32.xlu1 %v2918_v27  ;;  %389 = vmax.xlane.f32.xlu0 %v2921_v28 }
  0x93   : > { %395 = vmax.xlane.f32.xlu1 %v2928_v31  ;;  %393 = vmax.xlane.f32.xlu0 %v2931_v32 }
  0x97   : > { %399 = vmax.xlane.f32.xlu1 %v2938_v35  ;;  %397 = vmax.xlane.f32.xlu0 %v2941_v36 }
  0x9b   : > { %403 = vmax.xlane.f32.xlu1 %v2948_v39  ;;  %401 = vmax.xlane.f32.xlu0 %v2951_v40 }
  0x9f   : > { %407 = vmax.xlane.f32.xlu1 %v2958_v43  ;;  %405 = vmax.xlane.f32.xlu0 %v2961_v44 }
  0xa3   : > { %411 = vmax.xlane.f32.xlu1 %v2968_v47  ;;  %409 = vmax.xlane.f32.xlu0 %v2971_v48 }
  0xa7   : > { %415 = vmax.xlane.f32.xlu1 %v2978_v51  ;;  %413 = vmax.xlane.f32.xlu0 %v2981_v52 }
  0xab   : > { %419 = vmax.xlane.f32.xlu1 %v2988_v56  ;;  %417 = vmax.xlane.f32.xlu0 %v2991_v57 }
  0xaf   : > { %423 = vmax.xlane.f32.xlu1 %v2998_v60  ;;  %421 = vmax.xlane.f32.xlu0 %v3001_v61 }
  0xb3   : > { %427 = vmax.xlane.f32.xlu1 %v3008_v1  ;;  %425 = vmax.xlane.f32.xlu0 %v3011_v2 }
  0xc4   : > { %v273_v0 = vpop.xlane.xlu1 %272  ;;  %v269_v3 = vpop.xlane.xlu0 %268 }
  0xc5   : > { %v335_v41 = vmul.f32 0.0078125, %v273_v0  ;;  %v333_v42 = vmul.f32 0.0078125, %v269_v3 }
  0xc7   : > { %v475_v0 = vrot.slane %v333_v42, %v3053_v38 }
  0xc8   : > { %v275_v6 = vpop.xlane.xlu1 %274  ;;  %v271_v9 = vpop.xlane.xlu0 %270 }
  0xc9   : > { %v336_v30 = vmul.f32 0.0078125, %v275_v6  ;;  %v334_v33 = vmul.f32 0.0078125, %v271_v9  ;;  %v486_v9 = vrot.slane %v335_v41, %v3053_v38 }
  0xcb   : > { %v490_v53 = vrot.slane %v336_v30, %v3050_v29  ;;  %v480_v54 = vrot.slane %v334_v33, %v3050_v29 }
  0xcc   : > { %v279_v13 = vpop.xlane.xlu1 %278  ;;  %v277_v14 = vpop.xlane.xlu0 %276 }
  0xcd   : > { %v338_v45 = vmul.f32 0.0078125, %v279_v13  ;;  %v337_v46 = vmul.f32 0.0078125, %v277_v14  ;;  %v491_v17 = vsel %vm481_vm2, %v490_v53, %v486_v9  ;;  %v482_v18 = vsel %vm481_vm2, %v480_v54, %v475_v0 }
  0xcf   : > { %v499_v3 = vrot.slane %v338_v45, %v3050_v29  ;;  %v495_v10 = vrot.slane %v337_v46, %v3053_v38 }
  0xd0   : > { %v283_v21 = vpop.xlane.xlu1 %282  ;;  %v281_v22 = vpop.xlane.xlu0 %280 }
  0xd1   : > { %v340_v49 = vmul.f32 0.0078125, %v283_v21  ;;  %v339_v50 = vmul.f32 0.0078125, %v281_v22  ;;  %v500_v42 = vsel %vm481_vm2, %v499_v3, %v495_v10 }
  0xd3   : > { %v508_v13 = vrot.slane %v340_v49, %v3050_v29  ;;  %v504_v14 = vrot.slane %v339_v50, %v3053_v38  ;;  %v619_v50 = vsel %vm618_vm3, %v491_v17, %v482_v18 }
  0xd4   : > { %v287_v34 = vpop.xlane.xlu1 %286  ;;  %v285_v37 = vpop.xlane.xlu0 %284 }
  0xd5   : > { %v342_v55 = vmul.f32 0.0078125, %v287_v34  ;;  %v341_v58 = vmul.f32 0.0078125, %v285_v37  ;;  %v509_v45 = vsel %vm481_vm2, %v508_v13, %v504_v14 }
  0xd7   : > { %v517_v21 = vrot.slane %v342_v55, %v3050_v29  ;;  %v513_v22 = vrot.slane %v341_v58, %v3053_v38  ;;  %v621_v58 = vsel %vm620_vm4, %v500_v42, %v619_v50 }
  0xd8   : > { %v291_v59 = vpop.xlane.xlu1 %290  ;;  %v289_v62 = vpop.xlane.xlu0 %288 }
  0xd9   : > { %v344_v63 = vmul.f32 0.0078125, %v291_v59  ;;  %v343_v6 = vmul.f32 0.0078125, %v289_v62  ;;  %v518_v53 = vsel %vm481_vm2, %v517_v21, %v513_v22 }
  0xdb   : > { %v526_v33 = vrot.slane %v344_v63, %v3050_v29  ;;  %v522_v34 = vrot.slane %v343_v6, %v3053_v38  ;;  %v623_v6 = vsel %vm622_vm5, %v509_v45, %v621_v58 }
  0xdc   : > { %v295_v25 = vpop.xlane.xlu1 %294  ;;  %v293_v30 = vpop.xlane.xlu0 %292  ;;  %v625_v0 = vsel %vm624_vm6, %v518_v53, %v623_v6 }
  0xdd   : > { %v346_v37 = vmul.f32 0.0078125, %v295_v25  ;;  %v345_v41 = vmul.f32 0.0078125, %v293_v30  ;;  %v527_v59 = vsel %vm481_vm2, %v526_v33, %v522_v34 }
  0xde   : > { %v627_v13 = vsel %vm626_vm7, %v527_v59, %v625_v0 }
  0xdf   : > { %v535_v46 = vrot.slane %v346_v37, %v3050_v29  ;;  %v531_v49 = vrot.slane %v345_v41, %v3053_v38 }
  0xe0   : > { %v299_v54 = vpop.xlane.xlu1 %298  ;;  %v297_v55 = vpop.xlane.xlu0 %296 }
  0xe1   : > { %v348_v62 = vmul.f32 0.0078125, %v299_v54  ;;  %v347_v63 = vmul.f32 0.0078125, %v297_v55  ;;  %v536_v9 = vsel %vm481_vm2, %v535_v46, %v531_v49 }
  0xe2   : > { %v629_v18 = vsel %vm628_vm8, %v536_v9, %v627_v13 }
  0xe3   : > { %v544_v3 = vrot.slane %v348_v62, %v3050_v29  ;;  %v540_v10 = vrot.slane %v347_v63, %v3053_v38 }
  0xe4   : > { %v303_v14 = vpop.xlane.xlu1 %302  ;;  %v301_v17 = vpop.xlane.xlu0 %300 }
  0xe5   : > { %v545_v21 = vsel %vm481_vm2, %v544_v3, %v540_v10  ;;  %v350_v54 = vmul.f32 0.0078125, %v303_v14  ;;  %v349_v55 = vmul.f32 0.0078125, %v301_v17 }
  0xe6   : > { %v631_v22 = vsel %vm630_vm9, %v545_v21, %v629_v18 }
  0xe7   : > { %642 = vst.msk [vmem:[#allocation2 + $0x3] sm:$0xff] %vm641_vm10, %v631_v22  ;;  %v553_v22 = vrot.slane %v350_v54, %v3050_v29  ;;  %v549_v14 = vrot.slane %v349_v55, %v3053_v38 }
  0xe8   : > { %v307_v25 = vpop.xlane.xlu1 %306  ;;  %v305_v30 = vpop.xlane.xlu0 %304 }
  0xe9   : > { %v352_v42 = vmul.f32 0.0078125, %v307_v25  ;;  %v351_v45 = vmul.f32 0.0078125, %v305_v30 }
  0xeb   : > { %v562_v62 = vrot.slane %v352_v42, %v3050_v29  ;;  %v558_v63 = vrot.slane %v351_v45, %v3053_v38 }
  0xec   : > { %v311_v33 = vpop.xlane.xlu1 %310  ;;  %v309_v34 = vpop.xlane.xlu0 %308 }
  0xed   : > { %v354_v50 = vmul.f32 0.0078125, %v311_v33  ;;  %v353_v53 = vmul.f32 0.0078125, %v309_v34  ;;  %v563_v30 = vsel %vm481_vm2, %v562_v62, %v558_v63 }
  0xef   : > { %v571_v18 = vrot.slane %v354_v50, %v3050_v29  ;;  %v567_v21 = vrot.slane %v353_v53, %v3053_v38  ;;  %v554_v53 = vsel %vm481_vm2, %v553_v22, %v549_v14 }
  0xf0   : > { %v315_v37 = vpop.xlane.xlu1 %314  ;;  %v313_v41 = vpop.xlane.xlu0 %312 }
  0xf1   : > { %v356_v58 = vmul.f32 0.0078125, %v315_v37  ;;  %v355_v59 = vmul.f32 0.0078125, %v313_v41  ;;  %v572_v50 = vsel %vm481_vm2, %v571_v18, %v567_v21 }
  0xf3   : > { %v580_v17 = vrot.slane %v356_v58, %v3050_v29  ;;  %v576_v25 = vrot.slane %v355_v59, %v3053_v38  ;;  %v632_v59 = vsel %vm618_vm3, %v563_v30, %v554_v53 }
  0xf4   : > { %v319_v46 = vpop.xlane.xlu1 %318  ;;  %v317_v49 = vpop.xlane.xlu0 %316 }
  0xf5   : > { %v358_v6 = vmul.f32 0.0078125, %v319_v46  ;;  %v357_v9 = vmul.f32 0.0078125, %v317_v49  ;;  %v581_v54 = vsel %vm481_vm2, %v580_v17, %v576_v25 }
  0xf7   : > { %v589_v33 = vrot.slane %v358_v6, %v3050_v29  ;;  %v585_v34 = vrot.slane %v357_v9, %v3053_v38  ;;  %v633_v9 = vsel %vm620_vm4, %v572_v50, %v632_v59 }
  0xf8   : > { %v323_v0 = vpop.xlane.xlu1 %322  ;;  %v321_v3 = vpop.xlane.xlu0 %320 }
  0xf9   : > { %v360_v10 = vmul.f32 0.0078125, %v323_v0  ;;  %v359_v13 = vmul.f32 0.0078125, %v321_v3  ;;  %v590_v62 = vsel %vm481_vm2, %v589_v33, %v585_v34 }
  0xfb   : > { %v598_v42 = vrot.slane %v360_v10, %v3050_v29  ;;  %v594_v45 = vrot.slane %v359_v13, %v3053_v38  ;;  %v634_v13 = vsel %vm622_vm5, %v581_v54, %v633_v9 }
  0xfc   : > { %v327_v37 = vpop.xlane.xlu1 %326  ;;  %v325_v41 = vpop.xlane.xlu0 %324  ;;  %v635_v21 = vsel %vm624_vm6, %v590_v62, %v634_v13 }
  0xfd   : > { %v362_v46 = vmul.f32 0.0078125, %v327_v37  ;;  %v361_v49 = vmul.f32 0.0078125, %v325_v41  ;;  %v599_v0 = vsel %vm481_vm2, %v598_v42, %v594_v45 }
  0xfe   : > { %v636_v17 = vsel %vm626_vm7, %v599_v0, %v635_v21 }
  0xff   : > { %v607_v55 = vrot.slane %v362_v46, %v3050_v29  ;;  %v603_v58 = vrot.slane %v361_v49, %v3053_v38 }
 0x100   : > { %v331_v63 = vpop.xlane.xlu1 %330  ;;  %v329_v6 = vpop.xlane.xlu0 %328 }
 0x101   : > { %v364_v3 = vmul.f32 0.0078125, %v331_v63  ;;  %v363_v10 = vmul.f32 0.0078125, %v329_v6  ;;  %v608_v18 = vsel %vm481_vm2, %v607_v55, %v603_v58 }
 0x102   : > { %v637_v33 = vsel %vm628_vm8, %v608_v18, %v636_v17 }
 0x103   : > { %v616_v22 = vrot.slane %v364_v3, %v3050_v29  ;;  %v612_v14 = vrot.slane %v363_v10, %v3053_v38 }
 0x104   : > { %v368_v25 = vpop.xlane.xlu1 %367  ;;  %v366_v30 = vpop.xlane.xlu0 %365 }
 0x105   : > { %v617_v34 = vsel %vm481_vm2, %v616_v22, %v612_v14  ;;  %v683_v9 = vrot.slane %v368_v25, %v3050_v29  ;;  %v679_v0 = vrot.slane %v366_v30, %v3053_v38 }
 0x106   : > { %v638_v37 = vsel %vm630_vm9, %v617_v34, %v637_v33 }
 0x107   : > { %643 = vst.msk [vmem:[#allocation2 + $0xb] sm:$0xff] %vm641_vm10, %v638_v37  ;;  %v684_v30 = vsel %vm481_vm2, %v683_v9, %v679_v0 }
 0x108   : > { %v372_v41 = vpop.xlane.xlu1 %371  ;;  %v370_v42 = vpop.xlane.xlu0 %369 }
 0x109   : > { %v692_v55 = vrot.slane %v372_v41, %v3050_v29  ;;  %v688_v58 = vrot.slane %v370_v42, %v3053_v38 }
 0x10b   : > { %v693_v21 = vsel %vm481_vm2, %v692_v55, %v688_v58 }
 0x10c   : > { %v376_v45 = vpop.xlane.xlu1 %375  ;;  %v374_v46 = vpop.xlane.xlu0 %373  ;;  %v820_v42 = vsel %vm618_vm3, %v693_v21, %v684_v30  ;;  %v841_v21 = vstv %s3146_s11  ;;  %s3306_s11 = sld [smem:[#allocation4 + $0x11]] }
 0x10d   : > { %v701_v59 = vrot.slane %v376_v45, %v3050_v29  ;;  %v697_v62 = vrot.slane %v374_v46, %v3053_v38 }
 0x10f   : > { %v702_v17 = vsel %vm481_vm2, %v701_v59, %v697_v62 }
 0x110   : > { %v380_v49 = vpop.xlane.xlu1 %379  ;;  %v378_v50 = vpop.xlane.xlu0 %377  ;;  %v821_v46 = vsel %vm620_vm4, %v702_v17, %v820_v42  ;;  %v897_v17 = vstv %s3153_s19  ;;  %s4454_s19 = smov 125  }
 0x111   : > { %v710_v3 = vrot.slane %v380_v49, %v3050_v29  ;;  %v706_v10 = vrot.slane %v378_v50, %v3053_v38 }
 0x113   : > { %v711_v34 = vsel %vm481_vm2, %v710_v3, %v706_v10 }
 0x114   : > { %v384_v53 = vpop.xlane.xlu1 %383  ;;  %v382_v54 = vpop.xlane.xlu0 %381  ;;  %v822_v50 = vsel %vm622_vm5, %v711_v34, %v821_v46 }
 0x115   : > { %v719_v13 = vrot.slane %v384_v53, %v3050_v29  ;;  %v715_v18 = vrot.slane %v382_v54, %v3053_v38 }
 0x117   : > { %v720_v45 = vsel %vm481_vm2, %v719_v13, %v715_v18 }
 0x118   : > { %v388_v63 = vpop.xlane.xlu1 %387  ;;  %v386_v6 = vpop.xlane.xlu0 %385  ;;  %v823_v58 = vsel %vm624_vm6, %v720_v45, %v822_v50 }
 0x119   : > { %v728_v22 = vrot.slane %v388_v63, %v3050_v29  ;;  %v724_v14 = vrot.slane %v386_v6, %v3053_v38 }
 0x11b   : > { %v729_v49 = vsel %vm481_vm2, %v728_v22, %v724_v14  ;;  %v3166_v22 = vld [vmem:[#allocation2] sm:$0xff]  ;;  %v849_v14 = vstv %s3149_s17  ;;  %s4373_s17 = smov 122  }
 0x11c   : > { %v392_v33 = vpop.xlane.xlu1 %391  ;;  %v390_v25 = vpop.xlane.xlu0 %389  ;;  %v824_v63 = vsel %vm626_vm7, %v729_v49, %v823_v58  ;;  %v4362_v49 = vstv %s3163_s24 }
 0x11d   : > { %v737_v37 = vrot.slane %v392_v33, %v3050_v29  ;;  %v733_v41 = vrot.slane %v390_v25, %v3053_v38  ;;  %v869_v33 = vstv %s3155_s20  ;;  %s3317_s20 = sld [smem:[#allocation4 + $0x12]] }
 0x11f   : > { %v738_v53 = vsel %vm481_vm2, %v737_v37, %v733_v41  ;;  %v842_v37 = vmul.f32 %v841_v21, %v3166_v22 }
 0x120   : > { %v396_v54 = vpop.xlane.xlu1 %395  ;;  %v394_v55 = vpop.xlane.xlu0 %393  ;;  %v825_v6 = vsel %vm628_vm8, %v738_v53, %v824_v63 }
 0x121   : > { %v746_v59 = vrot.slane %v396_v54, %v3050_v29  ;;  %v742_v62 = vrot.slane %v394_v55, %v3053_v38  ;;  %v4361_v55 = vstv %s3171_s25 }
 0x123   : > { %v747_v9 = vsel %vm481_vm2, %v746_v59, %v742_v62 }
 0x124   : > { %v826_v0 = vsel %vm630_vm9, %v747_v9, %v825_v6  ;;  %v3158_v3 = vpop.xlane.xlu1 %399  ;;  %v3160_v10 = vpop.xlane.xlu0 %397  ;;  %v4363_v9 = vstv %s3190_s26 }
 0x125   : > { %836 = vst.msk [vmem:[#allocation3 + $0x3] sm:$0xff] %vm641_vm10, %v826_v0 }
 0x128   : > { %v404_v13 = vpop.xlane.xlu1 %403  ;;  %v402_v18 = vpop.xlane.xlu0 %401 }
 0x129   : > { %v764_v63 = vrot.slane %v404_v13, %v3050_v29  ;;  %v760_v6 = vrot.slane %v402_v18, %v3053_v38  ;;  %v751_v13 = vrot.slane %v3160_v10, %v3053_v38  ;;  %v883_v10 = vstv %s3198_s29  ;;  %s3355_s29 = sld [smem:[#allocation4 + $0x16]] }
 0x12c   : > { %v3173_v25 = vld [vmem:[#allocation3] sm:$0xff]  ;;  %v408_v30 = vpop.xlane.xlu1 %407  ;;  %v406_v34 = vpop.xlane.xlu0 %405 }
 0x12d   : > { %v850_v41 = vmul.f32 %v849_v14, %v3173_v25  ;;  %v898_v42 = vmul.f32 %v897_v17, %v3173_v25  ;;  %v870_v45 = vmul.f32 %v869_v33, %v3173_v25  ;;  %v926_v54 = vmul.f32 %v4362_v49, %v3173_v25 }
 0x12e   : > { %v954_v62 = vmul.f32 %v4361_v55, %v3173_v25  ;;  %v773_v0 = vrot.slane %v408_v30, %v3050_v29 }
 0x12f   : > { %v3187_v46 = vadd.f32 %v850_v41, %v842_v37  ;;  %902 = vrot.lane.b32.xlu0 %v898_v42, %s4369_s27  ;;  %874 = vrot.lane.b32.xlu1 %v870_v45, %s4379_s28  ;;  %v769_v37 = vrot.slane %v406_v34, %v3053_v38  ;;  %v755_v45 = vrot.slane %v3158_v3, %v3050_v29 }
 0x130   : > { %v412_v50 = vpop.xlane.xlu1 %411  ;;  %v410_v53 = vpop.xlane.xlu0 %409  ;;  %v856_v34 = vmul.f32 %v4363_v9, %v3166_v22 }
 0x131   : > { %v782_v18 = vrot.slane %v412_v50, %v3050_v29  ;;  %v774_v50 = vsel %vm481_vm2, %v773_v0, %v769_v37  ;;  %v884_v0 = vmul.f32 %v883_v10, %v3166_v22 }
 0x133   : > { %930 = vrot.lane.b32.xlu0 %v926_v54, %s4364_s30  ;;  %v778_v54 = vrot.slane %v410_v53, %v3053_v38 }
 0x134   : > { %v416_v58 = vpop.xlane.xlu1 %415  ;;  %v414_v59 = vpop.xlane.xlu0 %413 }
 0x135   : > { %v791_v30 = vrot.slane %v416_v58, %v3050_v29  ;;  %v787_v55 = vrot.slane %v414_v59, %v3053_v38  ;;  %v756_v59 = vsel %vm481_vm2, %v755_v45, %v751_v13  ;;  %v783_v9 = vsel %vm481_vm2, %v782_v18, %v778_v54 }
 0x136   : > { %v911_v45 = vstv %s3207_s4  ;;  %s3364_s4 = sld [smem:[#allocation4 + $0x17]] }
 0x137   : > { %958 = vrot.lane.b32.xlu0 %v954_v62, %s4366_s5  ;;  %v765_v62 = vsel %vm481_vm2, %v764_v63, %v760_v6 }
 0x138   : > { %v420_v41 = vpop.xlane.xlu1 %419  ;;  %v418_v42 = vpop.xlane.xlu0 %417 }
 0x139   : > { %v800_v49 = vrot.slane %v420_v41, %v3050_v29  ;;  %v796_v3 = vrot.slane %v418_v42, %v3053_v38  ;;  %v827_v41 = vsel %vm618_vm3, %v765_v62, %v756_v59  ;;  %v792_v42 = vsel %vm481_vm2, %v791_v30, %v787_v55 }
 0x13a   : > { %v828_v37 = vsel %vm620_vm4, %v774_v50, %v827_v41  ;;  %v967_v59 = vstv %s3243_s7  ;;  %v981_v41 = vstv %s3258_s8  ;;  %s3389_s7 = sld [smem:[#allocation4 + $0x1a]]  ;;  %s3398_s8 = sld [smem:[#allocation4 + $0x1b]] }
 0x13b   : > { %860 = vrot.lane.b32.xlu0 %v856_v34, %s4379_s28  ;;  %v801_v34 = vsel %vm481_vm2, %v800_v49, %v796_v3  ;;  %v829_v13 = vsel %vm622_vm5, %v783_v9, %v828_v37  ;;  %v912_v9 = vmul.f32 %v911_v45, %v3166_v22 }
 0x13c   : > { %v424_v53 = vpop.xlane.xlu1 %423  ;;  %v422_v58 = vpop.xlane.xlu0 %421  ;;  %v830_v30 = vsel %vm624_vm6, %v792_v42, %v829_v13  ;;  %v982_v13 = vmul.f32 %v981_v41, %v3173_v25 }
 0x13d   : > { %v809_v63 = vrot.slane %v424_v53, %v3050_v29  ;;  %v805_v6 = vrot.slane %v422_v58, %v3053_v38  ;;  %v831_v3 = vsel %vm626_vm7, %v801_v34, %v830_v30  ;;  %v939_v58 = vstv %s3227_s6  ;;  %s3382_s6 = sld [smem:[#allocation4 + $0x19]] }
 0x13f   : > { %v810_v18 = vsel %vm481_vm2, %v809_v63, %v805_v6  ;;  %888 = vrot.lane.b32.xlu0 %v884_v0, %s4369_s27  ;;  %v3270_v63 = vld [vmem:[#allocation2 + $0x8] sm:$0xff]  ;;  %v968_v6 = vmul.f32 %v967_v59, %v3166_v22 }
 0x140   : > { %v428_v55 = vpop.xlane.xlu1 %427  ;;  %v426_v54 = vpop.xlane.xlu0 %425  ;;  %v832_v50 = vsel %vm628_vm8, %v810_v18, %v831_v3  ;;  %v843_v0 = vmul.f32 %v841_v21, %v3270_v63 }
 0x141   : > { %v818_v62 = vrot.slane %v428_v55, %v3050_v29  ;;  %v814_v49 = vrot.slane %v426_v54, %v3053_v38  ;;  %v940_v38 = vmul.f32 %v939_v58, %v3166_v22  ;;  %v995_v55 = vstv %s3267_s9  ;;  %s3328_s9 = sld [smem:[#allocation4 + $0x13]] }
 0x142   : > { %v4453_v54 = vstv %s3163_s24  ;;  %s4456_s24 = smov 124  }
 0x143   : > { %v819_v53 = vsel %vm481_vm2, %v818_v62, %v814_v49  ;;  %916 = vrot.lane.b32.xlu0 %v912_v9, %s4364_s30  ;;  %s4371_s30 = smov 123   ;;  %v3313_v49 = vld [vmem:[#allocation2 + $0x1] sm:$0xff] }
 0x144   : > { %v833_v29 = vsel %vm630_vm9, %v819_v53, %v832_v50  ;;  %v3324_v50 = vld [vmem:[#allocation3 + $0x1] sm:$0xff]  ;;  %v4457_v53 = vstv %s3190_s26  ;;  %s3346_s26 = sld [smem:[#allocation4 + $0x15]] }
 0x145   : > { %837 = vst.msk [vmem:[#allocation3 + $0xb] sm:$0xff] %vm641_vm10, %v833_v29  ;;  %v857_v29 = vmul.f32 %v4457_v53, %v3270_v63 }
 0x147   : > { %944 = vrot.lane.b32.xlu0 %v940_v38, %s4366_s5  ;;  %s3297_s5 = sld [smem:[#allocation4 + $0x10]] }
 0x14b   : > { %972 = vrot.lane.b32.xlu0 %v968_v6, %s4371_s30  ;;  %v1067_v6 = vstv %s3317_s20  ;;  %s3423_s20 = sld [smem:[#allocation4 + $0x20]] }
 0x14c   : > { %v3278_v42 = vld [vmem:[#allocation3 + $0x8] sm:$0xff] }
 0x14d   : > { %v851_v37 = vmul.f32 %v849_v14, %v3278_v42  ;;  %v871_v34 = vmul.f32 %v869_v33, %v3278_v42  ;;  %v899_v21 = vmul.f32 %v897_v17, %v3278_v42  ;;  %v996_v14 = vmul.f32 %v995_v55, %v3166_v22 }
 0x14e   : > { %v1009_v33 = vstv %s3276_s10  ;;  %v927_v30 = vmul.f32 %v4453_v54, %v3278_v42  ;;  %v1039_v22 = vstv %s3297_s5  ;;  %v4455_v17 = vstv %s3171_s25  ;;  %s3337_s25 = sld [smem:[#allocation4 + $0x14]]  ;;  %s3373_s5 = sld [smem:[#allocation4 + $0x18]] }
 0x14f   : > { %v3293_v18 = vadd.f32 %v851_v37, %v843_v0  ;;  %876 = vrot.lane.b32.xlu1 %v871_v34, %s4379_s28  ;;  %986 = vrot.lane.b32.xlu0 %v982_v13, %s4371_s30  ;;  %v1010_v62 = vmul.f32 %v1009_v33, %v3173_v25  ;;  %v955_v3 = vmul.f32 %v4455_v17, %v3278_v42  ;;  %v1053_v25 = vstv %s3306_s11  ;;  %s3407_s10 = sld [smem:[#allocation4 + $0x1e]]  ;;  %s3414_s11 = sld [smem:[#allocation4 + $0x1f]] }
 0x150   : > { %v1040_v9 = vmul.f32 %v1039_v22, %v3313_v49  ;;  %v1054_v38 = vmul.f32 %v1053_v25, %v3324_v50  ;;  %v885_v0 = vmul.f32 %v883_v10, %v3270_v63  ;;  %v1068_v37 = vmul.f32 %v1067_v6, %v3313_v49 }
 0x151   : > { %v1081_v34 = vstv %s3328_s9  ;;  %v913_v13 = vmul.f32 %v911_v45, %v3270_v63  ;;  %v969_v45 = vmul.f32 %v967_v59, %v3270_v63  ;;  %v1123_v17 = vstv %s3355_s29  ;;  %s3432_s9 = sld [smem:[#allocation4 + $0x21]]  ;;  %s3459_s29 = sld [smem:[#allocation4 + $0x24]] }
 0x152   : > { %v997_v59 = vmul.f32 %v995_v55, %v3270_v63  ;;  %v3402_v55 = vld [vmem:[#allocation3 + $0x9] sm:$0xff] }
 0x153   : > { %904 = vrot.lane.b32.xlu1 %v899_v21, %s4369_s27  ;;  %1000 = vrot.lane.b32.xlu0 %v996_v14, %s4373_s17  ;;  %v1082_v21 = vmul.f32 %v1081_v34, %v3324_v50  ;;  %v941_v14 = vmul.f32 %v939_v58, %v3270_v63  ;;  %v983_v58 = vmul.f32 %v981_v41, %v3278_v42 }
 0x154   : > { %v1095_v10 = vstv %s3337_s25  ;;  %v1011_v41 = vmul.f32 %v1009_v33, %v3278_v42  ;;  %v1179_v42 = vstv %s3389_s7  ;;  %v1055_v33 = vmul.f32 %v1053_v25, %v3402_v55  ;;  %s3441_s25 = sld [smem:[#allocation4 + $0x22]]  ;;  %s3495_s7 = sld [smem:[#allocation4 + $0x28]] }
 0x155   : > { %v1096_v54 = vmul.f32 %v1095_v10, %v3313_v49  ;;  %v1223_v25 = vstv %s3407_s10  ;;  %s3518_s10 = sld [smem:[#allocation4 + $0x2c]] }
 0x157   : > { %932 = vrot.lane.b32.xlu1 %v927_v30, %s4454_s19  ;;  %1014 = vrot.lane.b32.xlu0 %v1010_v62, %s4373_s17  ;;  %v1109_v30 = vstv %s3346_s26  ;;  %s3450_s26 = sld [smem:[#allocation4 + $0x23]] }
 0x158   : > { %v1110_v62 = vmul.f32 %v1109_v30, %v3324_v50 }
 0x15b   : > { %960 = vrot.lane.b32.xlu1 %v955_v3, %s4456_s24  ;;  %1044 = vrot.lane.b32.xlu0 %v1040_v9, %s4379_s28  ;;  %v1124_v3 = vmul.f32 %v1123_v17, %v3313_v49  ;;  %v1137_v9 = vstv %s3364_s4  ;;  %s3468_s4 = sld [smem:[#allocation4 + $0x25]] }
 0x15c   : > { %v1138_v53 = vmul.f32 %v1137_v9, %v3324_v50 }
 0x15f   : > { %862 = vrot.lane.b32.xlu1 %v857_v29, %s4379_s28  ;;  %1058 = vrot.lane.b32.xlu0 %v1054_v38, %s4379_s28  ;;  %v1151_v29 = vstv %s3373_s5  ;;  %v3393_v38 = vld [vmem:[#allocation2 + $0x9] sm:$0xff]  ;;  %s3477_s5 = sld [smem:[#allocation4 + $0x26]] }
 0x160   : > { %v1041_v63 = vmul.f32 %v1039_v22, %v3393_v38  ;;  %v1069_v22 = vmul.f32 %v1067_v6, %v3393_v38  ;;  %v1237_v6 = vstv %s3414_s11  ;;  %s4458_s11 = smov 126  }
 0x163   : > { %890 = vrot.lane.b32.xlu1 %v885_v0, %s4369_s27  ;;  %1072 = vrot.lane.b32.xlu0 %v1068_v37, %s4369_s27  ;;  %v1152_v0 = vmul.f32 %v1151_v29, %v3313_v49  ;;  %v1165_v37 = vstv %s3382_s6  ;;  %s3486_s6 = sld [smem:[#allocation4 + $0x27]] }
 0x167   : > { %918 = vrot.lane.b32.xlu1 %v913_v13, %s4454_s19  ;;  %1086 = vrot.lane.b32.xlu0 %v1082_v21, %s4369_s27  ;;  %v1166_v13 = vmul.f32 %v1165_v37, %v3324_v50  ;;  %v1180_v21 = vmul.f32 %v1179_v42, %v3313_v49 }
 0x16b   : > { %946 = vrot.lane.b32.xlu1 %v941_v14, %s4456_s24  ;;  %1100 = vrot.lane.b32.xlu0 %v1096_v54, %s4454_s19  ;;  %v1193_v14 = vstv %s3398_s8  ;;  %s3506_s8 = sld [smem:[#allocation4 + $0x29]] }
 0x16c   : > { %v1194_v54 = vmul.f32 %v1193_v14, %v3324_v50 }
 0x16f   : > { %974 = vrot.lane.b32.xlu1 %v969_v45, %s4371_s30  ;;  %1114 = vrot.lane.b32.xlu0 %v1110_v62, %s4454_s19  ;;  %v3419_v45 = vld [vmem:[#allocation2 + $0x2] sm:$0xff]  ;;  %v1083_v62 = vmul.f32 %v1081_v34, %v3402_v55  ;;  %v1251_v34 = vstv %s3423_s20  ;;  %s3555_s20 = sld [smem:[#allocation4 + $0x2f]] }
 0x173   : > { %988 = vrot.lane.b32.xlu1 %v983_v58, %s4371_s30  ;;  %1128 = vrot.lane.b32.xlu0 %v1124_v3, %s4456_s24  ;;  %v1224_v58 = vmul.f32 %v1223_v25, %v3419_v45  ;;  %v3428_v3 = vld [vmem:[#allocation3 + $0x2] sm:$0xff] }
 0x177   : > { %1002 = vrot.lane.b32.xlu1 %v997_v59, %s4373_s17  ;;  %1142 = vrot.lane.b32.xlu0 %v1138_v53, %s4456_s24  ;;  %v1097_v59 = vmul.f32 %v1095_v10, %v3393_v38  ;;  %v1238_v53 = vmul.f32 %v1237_v6, %v3428_v3  ;;  %v1265_v10 = vstv %s3432_s9  ;;  %s3566_s9 = sld [smem:[#allocation4 + $0x30]] }
 0x17b   : > { %1016 = vrot.lane.b32.xlu1 %v1011_v41, %s4373_s17  ;;  %1156 = vrot.lane.b32.xlu0 %v1152_v0, %s4371_s30  ;;  %v1111_v41 = vmul.f32 %v1109_v30, %v3402_v55  ;;  %v1252_v0 = vmul.f32 %v1251_v34, %v3419_v45  ;;  %v1279_v30 = vstv %s3441_s25  ;;  %s3574_s25 = sld [smem:[#allocation4 + $0xf]] }
 0x17f   : > { %1046 = vrot.lane.b32.xlu1 %v1041_v63, %s4379_s28  ;;  %1170 = vrot.lane.b32.xlu0 %v1166_v13, %s4371_s30  ;;  %v1125_v63 = vmul.f32 %v1123_v17, %v3393_v38  ;;  %v1266_v13 = vmul.f32 %v1265_v10, %v3428_v3  ;;  %v1293_v17 = vstv %s3450_s26  ;;  %s3592_s26 = sld [smem:[#allocation4 + $0x32]] }
 0x183   : > { %1060 = vrot.lane.b32.xlu1 %v1055_v33, %s4379_s28  ;;  %1184 = vrot.lane.b32.xlu0 %v1180_v21, %s4373_s17  ;;  %v1139_v33 = vmul.f32 %v1137_v9, %v3402_v55  ;;  %v1280_v21 = vmul.f32 %v1279_v30, %v3419_v45  ;;  %v1307_v9 = vstv %s3459_s29  ;;  %s3608_s29 = sld [smem:[#allocation4 + $0x33]] }
 0x187   : > { %1074 = vrot.lane.b32.xlu1 %v1069_v22, %s4369_s27  ;;  %1198 = vrot.lane.b32.xlu0 %v1194_v54, %s4373_s17  ;;  %v1153_v22 = vmul.f32 %v1151_v29, %v3393_v38  ;;  %v1294_v54 = vmul.f32 %v1293_v17, %v3428_v3  ;;  %v1321_v29 = vstv %s3468_s4  ;;  %s4459_s4 = smov 123  }
 0x18b   : > { %1088 = vrot.lane.b32.xlu1 %v1083_v62, %s4369_s27  ;;  %1228 = vrot.lane.b32.xlu0 %v1224_v58, %s4379_s28  ;;  %v1167_v62 = vmul.f32 %v1165_v37, %v3402_v55  ;;  %v1335_v37 = vstv %s3477_s5  ;;  %s3634_s5 = sld [smem:[#allocation4 + $0x35]] }
 0x18f   : > { %1102 = vrot.lane.b32.xlu1 %v1097_v59, %s4454_s19  ;;  %1242 = vrot.lane.b32.xlu0 %v1238_v53, %s4379_s28  ;;  %v1308_v59 = vmul.f32 %v1307_v9, %v3419_v45  ;;  %v1181_v53 = vmul.f32 %v1179_v42, %v3393_v38  ;;  %v1336_v42 = vmul.f32 %v1335_v37, %v3419_v45 }
 0x193   : > { %1116 = vrot.lane.b32.xlu1 %v1111_v41, %s4454_s19  ;;  %1256 = vrot.lane.b32.xlu0 %v1252_v0, %s4369_s27  ;;  %v1322_v0 = vmul.f32 %v1321_v29, %v3428_v3 }
 0x197   : > { %1130 = vrot.lane.b32.xlu1 %v1125_v63, %s4456_s24  ;;  %1270 = vrot.lane.b32.xlu0 %v1266_v13, %s4369_s27  ;;  %v1195_v63 = vmul.f32 %v1193_v14, %v3402_v55  ;;  %v3499_v13 = vld [vmem:[#allocation2 + $0xa] sm:$0xff]  ;;  %s3529_s27 = sld [smem:[#allocation4 + $0x2d]] }
 0x19b   : > { %1144 = vrot.lane.b32.xlu1 %v1139_v33, %s4456_s24  ;;  %1284 = vrot.lane.b32.xlu0 %v1280_v21, %s4454_s19  ;;  %v4368_v21 = vstv %s3486_s6 }
 0x19f   : > { %1158 = vrot.lane.b32.xlu1 %v1153_v22, %s4371_s30  ;;  %1298 = vrot.lane.b32.xlu0 %v1294_v54, %s4454_s19  ;;  %v1225_v22 = vmul.f32 %v1223_v25, %v3499_v13  ;;  %v3510_v54 = vld [vmem:[#allocation3 + $0xa] sm:$0xff] }
 0x1a1   : > { %v903_v58 = vpop.permute.xlu0 %902 }
 0x1a3   : > { %1172 = vrot.lane.b32.xlu1 %v1167_v62, %s4371_s30  ;;  %1312 = vrot.lane.b32.xlu0 %v1308_v59, %s4456_s24  ;;  %v1350_v62 = vmul.f32 %v4368_v21, %v3428_v3 }
 0x1a5   : > { %v931_v41 = vpop.permute.xlu0 %930 }
 0x1a7   : > { %1186 = vrot.lane.b32.xlu1 %v1181_v53, %s4373_s17  ;;  %1326 = vrot.lane.b32.xlu0 %v1322_v0, %s4456_s24  ;;  %v1363_v53 = vstv %s3495_s7  ;;  %v875_v0 = vpop.permute.xlu1 %874  ;;  %s3658_s7 = sld [smem:[#allocation4 + $0x37]] }
 0x1a8   : > { %v1364_v21 = vmul.f32 %v1363_v53, %v3419_v45 }
 0x1a9   : > { %v959_v33 = vpop.permute.xlu0 %958 }
 0x1ab   : > { %1200 = vrot.lane.b32.xlu1 %v1195_v63, %s4373_s17  ;;  %1340 = vrot.lane.b32.xlu0 %v1336_v42, %s4371_s30  ;;  %v1239_v63 = vmul.f32 %v1237_v6, %v3510_v54 }
 0x1ad   : > { %v861_v14 = vpop.permute.xlu0 %860 }
 0x1ae   : > { %v866_v59 = vadd.f32 %v861_v14, %v3187_v46 }
 0x1af   : > { %1230 = vrot.lane.b32.xlu1 %v1225_v22, %s4379_s28  ;;  %1354 = vrot.lane.b32.xlu0 %v1350_v62, %s4371_s30  ;;  %v1377_v22 = vstv %s3506_s8  ;;  %v1253_v62 = vmul.f32 %v1251_v34, %v3499_v13  ;;  %s3542_s30 = sld [smem:[#allocation4 + $0x2e]]  ;;  %v1267_v34 = vmul.f32 %v1265_v10, %v3510_v54  ;;  %v1281_v10 = vmul.f32 %v1279_v30, %v3499_v13  ;;  %s4462_s8 = smov 127  }
 0x1b0   : > { %v880_v25 = vadd.f32 %v875_v0, %v866_v59  ;;  %v1378_v59 = vmul.f32 %v1377_v22, %v3428_v3  ;;  %v1295_v30 = vmul.f32 %v1293_v17, %v3510_v54  ;;  %v1309_v17 = vmul.f32 %v1307_v9, %v3499_v13 }
 0x1b1   : > { %v889_v42 = vpop.permute.xlu0 %888  ;;  %v1323_v9 = vmul.f32 %v1321_v29, %v3510_v54 }
 0x1b2   : > { %v894_v46 = vadd.f32 %v889_v42, %v880_v25  ;;  %v3539_v25 = vld [vmem:[#allocation2 + $0x3] sm:$0xff] }
 0x1b3   : > { %1244 = vrot.lane.b32.xlu1 %v1239_v63, %s4379_s28  ;;  %1368 = vrot.lane.b32.xlu0 %v1364_v21, %s4373_s17  ;;  %v1407_v63 = vstv %s3518_s10  ;;  %s3682_s10 = sld [smem:[#allocation4 + $0x3b]] }
 0x1b4   : > { %v908_v14 = vadd.f32 %v903_v58, %v894_v46  ;;  %v1408_v42 = vmul.f32 %v1407_v63, %v3539_v25  ;;  %v3552_v46 = vld [vmem:[#allocation3 + $0x3] sm:$0xff] }
 0x1b5   : > { %v917_v6 = vpop.permute.xlu0 %916 }
 0x1b6   : > { %v922_v0 = vadd.f32 %v917_v6, %v908_v14  ;;  %v4376_v14 = vstv %s3529_s27 }
 0x1b7   : > { %1258 = vrot.lane.b32.xlu1 %v1253_v62, %s4458_s11  ;;  %1382 = vrot.lane.b32.xlu0 %v1378_v59, %s4373_s17  ;;  %v1422_v6 = vmul.f32 %v4376_v14, %v3552_v46  ;;  %v4375_v59 = vstv %s3542_s30  ;;  %s3568_s17 = sld [smem:[#allocation4 + $0xe]]  ;;  %v4386_v14 = vstv %s3574_s25 }
 0x1b8   : > { %v936_v58 = vadd.f32 %v931_v41, %v922_v0  ;;  %v1034_v29 = vmul.f32 %v4386_v14, %v3324_v50 }
 0x1b9   : > { %v945_v21 = vpop.permute.xlu0 %944 }
 0x1ba   : > { %v950_v62 = vadd.f32 %v945_v21, %v936_v58  ;;  %v1436_v21 = vmul.f32 %v4375_v59, %v3539_v25  ;;  %v4378_v59 = vstv %s3566_s9 }
 0x1bb   : > { %1272 = vrot.lane.b32.xlu1 %v1267_v34, %s4458_s11  ;;  %1412 = vrot.lane.b32.xlu0 %v1408_v42, %s4379_s28  ;;  %v4377_v42 = vstv %s3555_s20 }
 0x1bc   : > { %v964_v0 = vadd.f32 %v959_v33, %v950_v62 }
 0x1bd   : > { %v973_v41 = vpop.permute.xlu0 %972 }
 0x1be   : > { %v978_v33 = vadd.f32 %v973_v41, %v964_v0 }
 0x1bf   : > { %1286 = vrot.lane.b32.xlu1 %v1281_v10, %s4454_s19  ;;  %1426 = vrot.lane.b32.xlu0 %v1422_v6, %s4379_s28  ;;  %v1450_v6 = vmul.f32 %v4377_v42, %v3552_v46  ;;  %s3622_s28 = sld [smem:[#allocation4 + $0x34]] }
 0x1c1   : > { %v877_v58 = vpop.permute.xlu1 %876  ;;  %v987_v34 = vpop.permute.xlu0 %986 }
 0x1c3   : > { %1300 = vrot.lane.b32.xlu1 %v1295_v30, %s4454_s19  ;;  %1440 = vrot.lane.b32.xlu0 %v1436_v21, %s4458_s11  ;;  %v992_v30 = vadd.f32 %v987_v34, %v978_v33  ;;  %v4387_v21 = vstv %s3568_s17  ;;  %v1464_v34 = vmul.f32 %v4378_v59, %v3539_v25  ;;  %v1337_v59 = vmul.f32 %v1335_v37, %v3499_v13 }
 0x1c4   : > { %v1026_v33 = vmul.f32 %v4387_v21, %v3313_v49 }
 0x1c5   : > { %v905_v62 = vpop.permute.xlu1 %904  ;;  %v1001_v10 = vpop.permute.xlu0 %1000 }
 0x1c6   : > { %v1006_v41 = vadd.f32 %v1001_v10, %v992_v30 }
 0x1c7   : > { %1314 = vrot.lane.b32.xlu1 %v1309_v17, %s4456_s24  ;;  %1454 = vrot.lane.b32.xlu0 %v1450_v6, %s4458_s11  ;;  %v4385_v6 = vstv %s3581_s0 }
 0x1c9   : > { %v933_v0 = vpop.permute.xlu1 %932  ;;  %v1015_v42 = vpop.permute.xlu0 %1014 }
 0x1ca   : > { %v1020_v17 = vadd.f32 %v1015_v42, %v1006_v41  ;;  %v1478_v42 = vmul.f32 %v4385_v6, %v3552_v46 }
 0x1cb   : > { %1328 = vrot.lane.b32.xlu1 %v1323_v9, %s4456_s24  ;;  %1468 = vrot.lane.b32.xlu0 %v1464_v34, %s4454_s19  ;;  %v4381_v9 = vstv %s3592_s26  ;;  %v4460_v34 = vstv %s3486_s6  ;;  %s4461_s6 = smov 122  }
 0x1cc   : > { %v1028_v10 = vadd.f32 %v1026_v33, %v1020_v17  ;;  %v1351_v33 = vmul.f32 %v4460_v34, %v3510_v54  ;;  %v1365_v34 = vmul.f32 %v1363_v53, %v3499_v13  ;;  %v1379_v53 = vmul.f32 %v1377_v22, %v3510_v54 }
 0x1cd   : > { %v961_v30 = vpop.permute.xlu1 %960  ;;  %v1045_v49 = vpop.permute.xlu0 %1044 }
 0x1ce   : > { %v1036_v41 = vadd.f32 %v1034_v29, %v1028_v10  ;;  %v1492_v29 = vmul.f32 %v4381_v9, %v3539_v25 }
 0x1cf   : > { %1342 = vrot.lane.b32.xlu1 %v1337_v59, %s4459_s4  ;;  %1482 = vrot.lane.b32.xlu0 %v1478_v42, %s4454_s19  ;;  %v4382_v59 = vstv %s3608_s29 }
 0x1d0   : > { %v1506_v9 = vmul.f32 %v4382_v59, %v3552_v46  ;;  %v3654_v59 = vld [vmem:[#allocation2 + $0xb] sm:$0xff]  ;;  %v1050_v6 = vadd.f32 %v1045_v49, %v1036_v41  ;;  %v4390_v41 = vstv %s3671_s2 }
 0x1d1   : > { %v863_v50 = vpop.permute.xlu1 %862  ;;  %v1059_v17 = vpop.permute.xlu0 %1058  ;;  %v1409_v22 = vmul.f32 %v1407_v63, %v3654_v59  ;;  %v3692_v49 = vld [vmem:[#allocation2 + $0x4] sm:$0xff] }
 0x1d2   : > { %v867_v37 = vadd.f32 %v863_v50, %v3293_v18 }
 0x1d3   : > { %1356 = vrot.lane.b32.xlu1 %v1351_v33, %s4459_s4  ;;  %1496 = vrot.lane.b32.xlu0 %v1492_v29, %s4456_s24  ;;  %v4383_v33 = vstv %s3622_s28 }
 0x1d4   : > { %v881_v10 = vadd.f32 %v877_v58, %v867_v37 }
 0x1d5   : > { %v891_v42 = vpop.permute.xlu1 %890  ;;  %v1073_v50 = vpop.permute.xlu0 %1072 }
 0x1d6   : > { %v895_v18 = vadd.f32 %v891_v42, %v881_v10  ;;  %v1520_v42 = vmul.f32 %v4383_v33, %v3539_v25 }
 0x1d7   : > { %1370 = vrot.lane.b32.xlu1 %v1365_v34, %s4461_s6  ;;  %1510 = vrot.lane.b32.xlu0 %v1506_v9, %s4456_s24  ;;  %v4384_v34 = vstv %s3634_s5 }
 0x1d8   : > { %v909_v58 = vadd.f32 %v905_v62, %v895_v18 }
 0x1d9   : > { %v919_v37 = vpop.permute.xlu1 %918  ;;  %v1087_v10 = vpop.permute.xlu0 %1086 }
 0x1da   : > { %v923_v29 = vadd.f32 %v919_v37, %v909_v58  ;;  %v1534_v58 = vmul.f32 %v4384_v34, %v3552_v46  ;;  %v3667_v37 = vld [vmem:[#allocation3 + $0xb] sm:$0xff] }
 0x1db   : > { %1384 = vrot.lane.b32.xlu1 %v1379_v53, %s4461_s6  ;;  %1524 = vrot.lane.b32.xlu0 %v1520_v42, %s4459_s4  ;;  %v4388_v53 = vstv %s3645_s1  ;;  %v4463_v42 = vstv %s3529_s27  ;;  %s3695_s27 = sld [smem:[#allocation4 + $0x3c]] }
 0x1dc   : > { %v937_v62 = vadd.f32 %v933_v0, %v923_v29  ;;  %v1423_v63 = vmul.f32 %v4463_v42, %v3667_v37  ;;  %v1548_v34 = vmul.f32 %v4388_v53, %v3539_v25  ;;  %v1064_v53 = vadd.f32 %v1059_v17, %v1050_v6 }
 0x1dd   : > { %v947_v9 = vpop.permute.xlu1 %946  ;;  %v1101_v18 = vpop.permute.xlu0 %1100  ;;  %v1592_v17 = vmul.f32 %v4390_v41, %v3692_v49 }
 0x1de   : > { %v951_v0 = vadd.f32 %v947_v9, %v937_v62  ;;  %v4464_v9 = vstv %s3542_s30  ;;  %s3708_s30 = sld [smem:[#allocation4 + $0x3d]] }
 0x1df   : > { %1414 = vrot.lane.b32.xlu1 %v1409_v22, %s4462_s8  ;;  %1538 = vrot.lane.b32.xlu0 %v1534_v58, %s4459_s4  ;;  %v4389_v22 = vstv %s3658_s7  ;;  %v1437_v58 = vmul.f32 %v4464_v9, %v3654_v59 }
 0x1e0   : > { %v965_v14 = vadd.f32 %v961_v30, %v951_v0  ;;  %v1562_v21 = vmul.f32 %v4389_v22, %v3552_v46 }
 0x1e1   : > { %v975_v29 = vpop.permute.xlu1 %974  ;;  %v1115_v33 = vpop.permute.xlu0 %1114 }
 0x1e2   : > { %v979_v30 = vadd.f32 %v975_v29, %v965_v14  ;;  %v3705_v14 = vld [vmem:[#allocation3 + $0x4] sm:$0xff] }
 0x1e3   : > { %1428 = vrot.lane.b32.xlu1 %v1423_v63, %s4462_s8  ;;  %1552 = vrot.lane.b32.xlu0 %v1548_v34, %s4461_s6  ;;  %v1078_v34 = vadd.f32 %v1073_v50, %v1064_v53  ;;  %v4465_v63 = vstv %s3555_s20  ;;  %s3722_s20 = sld [smem:[#allocation4 + $0x3e]] }
 0x1e4   : > { %v1451_v9 = vmul.f32 %v4465_v63, %v3667_v37 }
 0x1e5   : > { %v989_v62 = vpop.permute.xlu1 %988  ;;  %v1129_v42 = vpop.permute.xlu0 %1128 }
 0x1e6   : > { %v993_v22 = vadd.f32 %v989_v62, %v979_v30  ;;  %v4466_v62 = vstv %s3566_s9  ;;  %s3740_s9 = sld [smem:[#allocation4 + $0x3f]] }
 0x1e7   : > { %1442 = vrot.lane.b32.xlu1 %v1437_v58, %s4458_s11  ;;  %1566 = vrot.lane.b32.xlu0 %v1562_v21, %s4461_s6  ;;  %v1092_v58 = vadd.f32 %v1087_v10, %v1078_v34  ;;  %v1605_v21 = vstv %s3682_s10  ;;  %v1465_v30 = vmul.f32 %v4466_v62, %v3654_v59  ;;  %v4467_v10 = vstv %s3568_s17  ;;  %s3733_s17 = sld [smem:[#allocation4 + $0x1d]]  ;;  %s3866_s10 = sld [smem:[#allocation4 + $0x4b]] }
 0x1e8   : > { %v1027_v34 = vmul.f32 %v4467_v10, %v3393_v38  ;;  %v1606_v41 = vmul.f32 %v1605_v21, %v3705_v14 }
 0x1e9   : > { %v1003_v0 = vpop.permute.xlu1 %1002  ;;  %v1143_v6 = vpop.permute.xlu0 %1142  ;;  %v1106_v53 = vadd.f32 %v1101_v18, %v1092_v58  ;;  %v4468_v18 = vstv %s3574_s25  ;;  %s3767_s25 = sld [smem:[#allocation4 + $0x41]] }
 0x1ea   : > { %v1007_v50 = vadd.f32 %v1003_v0, %v993_v22  ;;  %v4400_v22 = vstv %s3695_s27  ;;  %v1035_v0 = vmul.f32 %v4468_v18, %v3402_v55  ;;  %v4396_v18 = vstv %s3722_s20 }
 0x1eb   : > { %1456 = vrot.lane.b32.xlu1 %v1451_v9, %s4458_s11  ;;  %1596 = vrot.lane.b32.xlu0 %v1592_v17, %s4462_s8  ;;  %v1120_v2 = vadd.f32 %v1115_v33, %v1106_v53  ;;  %v4469_v33 = vstv %s3581_s0  ;;  %v1620_v62 = vmul.f32 %v4400_v22, %v3692_v49  ;;  %s3751_s0 = sld [smem:[#allocation4 + $0x40]]  ;;  %v3825_v22 = vld [vmem:[#allocation3 + $0xc] sm:$0xff] }
 0x1ed   : > { %v1017_v29 = vpop.permute.xlu1 %1016  ;;  %v1157_v9 = vpop.permute.xlu0 %1156  ;;  %v1134_v38 = vadd.f32 %v1129_v42, %v1120_v2 }
 0x1ee   : > { %v1021_v63 = vadd.f32 %v1017_v29, %v1007_v50  ;;  %v1479_v50 = vmul.f32 %v4469_v33, %v3667_v37 }
 0x1ef   : > { %1470 = vrot.lane.b32.xlu1 %v1465_v30, %s4454_s19  ;;  %1610 = vrot.lane.b32.xlu0 %v1606_v41, %s4462_s8  ;;  %v1148_v55 = vadd.f32 %v1143_v6, %v1134_v38  ;;  %v4398_v30 = vstv %s3708_s30  ;;  %v4470_v41 = vstv %s3592_s26  ;;  %s3781_s26 = sld [smem:[#allocation4 + $0x42]] }
 0x1f0   : > { %v1029_v17 = vadd.f32 %v1027_v34, %v1021_v63  ;;  %v1493_v10 = vmul.f32 %v4470_v41, %v3654_v59  ;;  %v1634_v6 = vmul.f32 %v4398_v30, %v3705_v14  ;;  %v4471_v38 = vstv %s3608_s29  ;;  %s3803_s29 = sld [smem:[#allocation4 + $0x44]] }
 0x1f1   : > { %v1047_v58 = vpop.permute.xlu1 %1046  ;;  %v1171_v29 = vpop.permute.xlu0 %1170  ;;  %v1162_v2 = vadd.f32 %v1157_v9, %v1148_v55  ;;  %v1507_v33 = vmul.f32 %v4471_v38, %v3667_v37  ;;  %v4392_v41 = vstv %s3740_s9 }
 0x1f2   : > { %v1037_v53 = vadd.f32 %v1035_v0, %v1029_v17  ;;  %v4395_v0 = vstv %s3724_s21 }
 0x1f3   : > { %1484 = vrot.lane.b32.xlu1 %v1479_v50, %s4454_s19  ;;  %1624 = vrot.lane.b32.xlu0 %v1620_v62, %s4458_s11  ;;  %v1176_v63 = vadd.f32 %v1171_v29, %v1162_v2  ;;  %v4393_v50 = vstv %s3733_s17  ;;  %v1648_v29 = vmul.f32 %v4396_v18, %v3692_v49  ;;  %v1210_v55 = vmul.f32 %v4395_v0, %v3419_v45 }
 0x1f5   : > { %v1061_v42 = vpop.permute.xlu1 %1060  ;;  %v1185_v34 = vpop.permute.xlu0 %1184 }
 0x1f6   : > { %v1190_v9 = vadd.f32 %v1185_v34, %v1176_v63  ;;  %v4472_v63 = vstv %s3622_s28  ;;  %s3792_s28 = sld [smem:[#allocation4 + $0x43]] }
 0x1f7   : > { %1498 = vrot.lane.b32.xlu1 %v1493_v10, %s4456_s24  ;;  %1638 = vrot.lane.b32.xlu0 %v1634_v6, %s4458_s11  ;;  %v1218_v10 = vmul.f32 %v4393_v50, %v3428_v3  ;;  %v1521_v38 = vmul.f32 %v4472_v63, %v3654_v59 }
 0x1f9   : > { %v1075_v17 = vpop.permute.xlu1 %1074  ;;  %v1199_v62 = vpop.permute.xlu0 %1198 }
 0x1fa   : > { %v1204_v2 = vadd.f32 %v1199_v62, %v1190_v9  ;;  %v1662_v9 = vmul.f32 %v4392_v41, %v3705_v14  ;;  %v4394_v62 = vstv %s3751_s0  ;;  %v1051_v41 = vadd.f32 %v1047_v58, %v1037_v53 }
 0x1fb   : > { %1512 = vrot.lane.b32.xlu1 %v1507_v33, %s4456_s24  ;;  %1652 = vrot.lane.b32.xlu0 %v1648_v29, %s4454_s19  ;;  %v4473_v29 = vstv %s3634_s5  ;;  %v1676_v63 = vmul.f32 %v4394_v62, %v3692_v49  ;;  %v4475_v62 = vstv %s3658_s7  ;;  %s3829_s5 = sld [smem:[#allocation4 + $0x48]]  ;;  %s3853_s7 = sld [smem:[#allocation4 + $0x4a]] }
 0x1fc   : > { %v1212_v34 = vadd.f32 %v1210_v55, %v1204_v2  ;;  %v1535_v55 = vmul.f32 %v4473_v29, %v3667_v37  ;;  %v1563_v0 = vmul.f32 %v4475_v62, %v3667_v37  ;;  %v1065_v18 = vadd.f32 %v1061_v42, %v1051_v41 }
 0x1fd   : > { %v1089_v6 = vpop.permute.xlu1 %1088  ;;  %v1229_v45 = vpop.permute.xlu0 %1228  ;;  %v4476_v42 = vstv %s3671_s2  ;;  %s3840_s2 = sld [smem:[#allocation4 + $0x49]] }
 0x1fe   : > { %v1220_v33 = vadd.f32 %v1218_v10, %v1212_v34  ;;  %v4397_v10 = vstv %s3767_s25 }
 0x1ff   : > { %1526 = vrot.lane.b32.xlu1 %v1521_v38, %s4459_s4  ;;  %1666 = vrot.lane.b32.xlu0 %v1662_v9, %s4454_s19  ;;  %v4474_v38 = vstv %s3645_s1  ;;  %v1690_v50 = vmul.f32 %v4397_v10, %v3705_v14  ;;  %s3816_s1 = sld [smem:[#allocation4 + $0x45]] }
 0x200   : > { %v1549_v9 = vmul.f32 %v4474_v38, %v3654_v59  ;;  %v3812_v38 = vld [vmem:[#allocation2 + $0xc] sm:$0xff] }
 0x201   : > { %v1103_v3 = vpop.permute.xlu1 %1102  ;;  %v1243_v2 = vpop.permute.xlu0 %1242  ;;  %v1593_v41 = vmul.f32 %v4476_v42, %v3812_v38 }
 0x203   : > { %1540 = vrot.lane.b32.xlu1 %v1535_v55, %s4459_s4  ;;  %1680 = vrot.lane.b32.xlu0 %v1676_v63, %s4456_s24  ;;  %v4399_v55 = vstv %s3781_s26 }
 0x204   : > { %v1704_v53 = vmul.f32 %v4399_v55, %v3692_v49 }
 0x205   : > { %v1117_v34 = vpop.permute.xlu1 %1116  ;;  %v1257_v29 = vpop.permute.xlu0 %1256 }
 0x207   : > { %1554 = vrot.lane.b32.xlu1 %v1549_v9, %s4461_s6  ;;  %1694 = vrot.lane.b32.xlu0 %v1690_v50, %s4456_s24  ;;  %v4401_v9 = vstv %s3792_s28  ;;  %v1079_v50 = vadd.f32 %v1075_v17, %v1065_v18 }
 0x208   : > { %v1718_v55 = vmul.f32 %v4401_v9, %v3705_v14  ;;  %v1234_v9 = vadd.f32 %v1229_v45, %v1220_v33  ;;  %v3850_v33 = vld [vmem:[#allocation2 + $0x5] sm:$0xff] }
 0x209   : > { %v1131_v63 = vpop.permute.xlu1 %1130  ;;  %v1271_v58 = vpop.permute.xlu0 %1270  ;;  %v1093_v62 = vadd.f32 %v1089_v6, %v1079_v50  ;;  %v1607_v6 = vmul.f32 %v1605_v21, %v3825_v22 }
 0x20a   : > { %v1248_v45 = vadd.f32 %v1243_v2, %v1234_v9 }
 0x20b   : > { %1568 = vrot.lane.b32.xlu1 %v1563_v0, %s4461_s6  ;;  %1708 = vrot.lane.b32.xlu0 %v1704_v53, %s4459_s4  ;;  %v4402_v0 = vstv %s3803_s29  ;;  %v1107_v18 = vadd.f32 %v1103_v3, %v1093_v62  ;;  %v4477_v62 = vstv %s3695_s27  ;;  %s3880_s27 = sld [smem:[#allocation4 + $0x4c]] }
 0x20c   : > { %v1732_v42 = vmul.f32 %v4402_v0, %v3692_v49  ;;  %v1621_v21 = vmul.f32 %v4477_v62, %v3812_v38 }
 0x20d   : > { %v1145_v10 = vpop.permute.xlu1 %1144  ;;  %v1285_v30 = vpop.permute.xlu0 %1284  ;;  %v1121_v53 = vadd.f32 %v1117_v34, %v1107_v18 }
 0x20f   : > { %1598 = vrot.lane.b32.xlu1 %v1593_v41, %s4462_s8  ;;  %1722 = vrot.lane.b32.xlu0 %v1718_v55, %s4459_s4  ;;  %v4404_v41 = vstv %s3816_s1  ;;  %v1135_v3 = vadd.f32 %v1131_v63, %v1121_v53  ;;  %v4403_v63 = vstv %s3829_s5  ;;  %v1262_v53 = vadd.f32 %v1257_v29, %v1248_v45 }
 0x210   : > { %v1746_v0 = vmul.f32 %v4404_v41, %v3705_v14  ;;  %v1776_v9 = vmul.f32 %v4403_v63, %v3850_v33  ;;  %v4479_v45 = vstv %s3722_s20  ;;  %s3898_s20 = sld [smem:[#allocation4 + $0x4d]] }
 0x211   : > { %v1159_v17 = vpop.permute.xlu1 %1158  ;;  %v1299_v50 = vpop.permute.xlu0 %1298  ;;  %v1149_v34 = vadd.f32 %v1145_v10, %v1135_v3 }
 0x213   : > { %1612 = vrot.lane.b32.xlu1 %v1607_v6, %s4462_s8  ;;  %1736 = vrot.lane.b32.xlu0 %v1732_v42, %s4461_s6  ;;  %v1163_v6 = vadd.f32 %v1159_v17, %v1149_v34  ;;  %v4478_v42 = vstv %s3708_s30  ;;  %v3863_v17 = vld [vmem:[#allocation3 + $0x5] sm:$0xff]  ;;  %s3894_s30 = sld [smem:[#allocation4 + $0x2b]] }
 0x214   : > { %v1635_v3 = vmul.f32 %v4478_v42, %v3825_v22 }
 0x215   : > { %v1173_v55 = vpop.permute.xlu1 %1172  ;;  %v1313_v18 = vpop.permute.xlu0 %1312 }
 0x216   : > { %v1177_v62 = vadd.f32 %v1173_v55, %v1163_v6  ;;  %v1649_v6 = vmul.f32 %v4479_v45, %v3812_v38 }
 0x217   : > { %1626 = vrot.lane.b32.xlu1 %v1621_v21, %s4458_s11  ;;  %1750 = vrot.lane.b32.xlu0 %v1746_v0, %s4461_s6  ;;  %v1276_v21 = vadd.f32 %v1271_v58, %v1262_v53  ;;  %v1789_v0 = vstv %s3840_s2  ;;  %v4480_v58 = vstv %s3724_s21  ;;  %s3886_s21 = sld [smem:[#allocation4 + $0x2a]]  ;;  %s4024_s2 = sld [smem:[#allocation4 + $0x59]] }
 0x218   : > { %v1211_v53 = vmul.f32 %v4480_v58, %v3499_v13  ;;  %v1790_v63 = vmul.f32 %v1789_v0, %v3863_v17 }
 0x219   : > { %v1187_v10 = vpop.permute.xlu1 %1186  ;;  %v1327_v2 = vpop.permute.xlu0 %1326  ;;  %v1290_v34 = vadd.f32 %v1285_v30, %v1276_v21  ;;  %v4481_v30 = vstv %s3733_s17  ;;  %s3909_s17 = sld [smem:[#allocation4 + $0x4e]] }
 0x21a   : > { %v1191_v29 = vadd.f32 %v1187_v10, %v1177_v62  ;;  %v4413_v10 = vstv %s3853_s7  ;;  %v1219_v62 = vmul.f32 %v4481_v30, %v3510_v54  ;;  %v4409_v30 = vstv %s3880_s27 }
 0x21b   : > { %1640 = vrot.lane.b32.xlu1 %v1635_v3, %s4458_s11  ;;  %1780 = vrot.lane.b32.xlu0 %v1776_v9, %s4462_s8  ;;  %v1304_v41 = vadd.f32 %v1299_v50, %v1290_v34  ;;  %v4482_v50 = vstv %s3740_s9  ;;  %v1804_v45 = vmul.f32 %v4413_v10, %v3850_v33  ;;  %s3925_s9 = sld [smem:[#allocation4 + $0x4f]]  ;;  %v3983_v10 = vld [vmem:[#allocation3 + $0xd] sm:$0xff] }
 0x21d   : > { %v1201_v55 = vpop.permute.xlu1 %1200  ;;  %v1341_v3 = vpop.permute.xlu0 %1340  ;;  %v1318_v13 = vadd.f32 %v1313_v18, %v1304_v41 }
 0x21e   : > { %v1205_v42 = vadd.f32 %v1201_v55, %v1191_v29  ;;  %v1663_v29 = vmul.f32 %v4482_v50, %v3825_v22 }
 0x21f   : > { %1654 = vrot.lane.b32.xlu1 %v1649_v6, %s4454_s19  ;;  %1794 = vrot.lane.b32.xlu0 %v1790_v63, %s4462_s8  ;;  %v1332_v54 = vadd.f32 %v1327_v2, %v1318_v13  ;;  %v4411_v63 = vstv %s3866_s10  ;;  %v4483_v6 = vstv %s3751_s0  ;;  %s3939_s0 = sld [smem:[#allocation4 + $0x50]] }
 0x220   : > { %v1213_v9 = vadd.f32 %v1211_v53, %v1205_v42  ;;  %v1677_v58 = vmul.f32 %v4483_v6, %v3812_v38  ;;  %v1818_v2 = vmul.f32 %v4411_v63, %v3863_v17  ;;  %v4484_v13 = vstv %s3767_s25  ;;  %s3950_s25 = sld [smem:[#allocation4 + $0x51]] }
 0x221   : > { %v1231_v21 = vpop.permute.xlu1 %1230  ;;  %v1355_v55 = vpop.permute.xlu0 %1354  ;;  %v1346_v41 = vadd.f32 %v1341_v3, %v1332_v54  ;;  %v4408_v3 = vstv %s3886_s21  ;;  %v1691_v50 = vmul.f32 %v4484_v13, %v3825_v22  ;;  %v4405_v6 = vstv %s3898_s20 }
 0x222   : > { %v1221_v34 = vadd.f32 %v1219_v62, %v1213_v9  ;;  %v1394_v54 = vmul.f32 %v4408_v3, %v3539_v25 }
 0x223   : > { %1668 = vrot.lane.b32.xlu1 %v1663_v29, %s4454_s19  ;;  %1808 = vrot.lane.b32.xlu0 %v1804_v45, %s4458_s11  ;;  %v1360_v42 = vadd.f32 %v1355_v55, %v1346_v41  ;;  %v4406_v29 = vstv %s3894_s30  ;;  %v1832_v55 = vmul.f32 %v4409_v30, %v3850_v33 }
 0x225   : > { %v1245_v18 = vpop.permute.xlu1 %1244  ;;  %v1369_v53 = vpop.permute.xlu0 %1368 }
 0x226   : > { %v1374_v62 = vadd.f32 %v1369_v53, %v1360_v42  ;;  %v4485_v42 = vstv %s3781_s26  ;;  %s3961_s26 = sld [smem:[#allocation4 + $0x52]] }
 0x227   : > { %1682 = vrot.lane.b32.xlu1 %v1677_v58, %s4456_s24  ;;  %1822 = vrot.lane.b32.xlu0 %v1818_v2, %s4458_s11  ;;  %v1402_v58 = vmul.f32 %v4406_v29, %v3552_v46  ;;  %v1705_v13 = vmul.f32 %v4485_v42, %v3812_v38 }
 0x229   : > { %v1259_v9 = vpop.permute.xlu1 %1258  ;;  %v1383_v45 = vpop.permute.xlu0 %1382 }
 0x22a   : > { %v1388_v41 = vadd.f32 %v1383_v45, %v1374_v62  ;;  %v1846_v62 = vmul.f32 %v4405_v6, %v3863_v17  ;;  %v4407_v45 = vstv %s3909_s17  ;;  %v1235_v6 = vadd.f32 %v1231_v21, %v1221_v34 }
 0x22b   : > { %1696 = vrot.lane.b32.xlu1 %v1691_v50, %s4456_s24  ;;  %1836 = vrot.lane.b32.xlu0 %v1832_v55, %s4454_s19  ;;  %v4486_v55 = vstv %s3792_s28  ;;  %v1860_v42 = vmul.f32 %v4407_v45, %v3850_v33  ;;  %v4488_v45 = vstv %s3816_s1  ;;  %s3974_s28 = sld [smem:[#allocation4 + $0x53]]  ;;  %s3998_s1 = sld [smem:[#allocation4 + $0x57]] }
 0x22c   : > { %v1396_v53 = vadd.f32 %v1394_v54, %v1388_v41  ;;  %v1719_v54 = vmul.f32 %v4486_v55, %v3825_v22  ;;  %v1747_v3 = vmul.f32 %v4488_v45, %v3825_v22  ;;  %v1249_v30 = vadd.f32 %v1245_v18, %v1235_v6 }
 0x22d   : > { %v1273_v2 = vpop.permute.xlu1 %1272  ;;  %v1413_v25 = vpop.permute.xlu0 %1412  ;;  %v4489_v18 = vstv %s3829_s5  ;;  %s4011_s5 = sld [smem:[#allocation4 + $0x58]] }
 0x22e   : > { %v1404_v50 = vadd.f32 %v1402_v58, %v1396_v53  ;;  %v4410_v58 = vstv %s3925_s9 }
 0x22f   : > { %1710 = vrot.lane.b32.xlu1 %v1705_v13, %s4459_s4  ;;  %1850 = vrot.lane.b32.xlu0 %v1846_v62, %s4454_s19  ;;  %v4487_v13 = vstv %s3803_s29  ;;  %v1874_v29 = vmul.f32 %v4410_v58, %v3863_v17  ;;  %s3987_s29 = sld [smem:[#allocation4 + $0x56]] }
 0x230   : > { %v1733_v62 = vmul.f32 %v4487_v13, %v3812_v38  ;;  %v3970_v13 = vld [vmem:[#allocation2 + $0xd] sm:$0xff] }
 0x231   : > { %v1287_v46 = vpop.permute.xlu1 %1286  ;;  %v1427_v41 = vpop.permute.xlu0 %1426  ;;  %v1777_v6 = vmul.f32 %v4489_v18, %v3970_v13 }
 0x233   : > { %1724 = vrot.lane.b32.xlu1 %v1719_v54, %s4459_s4  ;;  %1864 = vrot.lane.b32.xlu0 %v1860_v42, %s4456_s24  ;;  %v4412_v54 = vstv %s3939_s0 }
 0x234   : > { %v1888_v34 = vmul.f32 %v4412_v54, %v3850_v33 }
 0x235   : > { %v1301_v53 = vpop.permute.xlu1 %1300  ;;  %v1441_v55 = vpop.permute.xlu0 %1440 }
 0x237   : > { %1738 = vrot.lane.b32.xlu1 %v1733_v62, %s4461_s6  ;;  %1878 = vrot.lane.b32.xlu0 %v1874_v29, %s4456_s24  ;;  %v4414_v62 = vstv %s3950_s25  ;;  %v1263_v29 = vadd.f32 %v1259_v9, %v1249_v30 }
 0x238   : > { %v1902_v54 = vmul.f32 %v4414_v62, %v3863_v17  ;;  %v1418_v62 = vadd.f32 %v1413_v25, %v1404_v50  ;;  %v4008_v50 = vld [vmem:[#allocation2 + $0x6] sm:$0xff] }
 0x239   : > { %v1315_v42 = vpop.permute.xlu1 %1314  ;;  %v1455_v21 = vpop.permute.xlu0 %1454  ;;  %v1277_v45 = vadd.f32 %v1273_v2, %v1263_v29  ;;  %v1791_v2 = vmul.f32 %v1789_v0, %v3983_v10 }
 0x23a   : > { %v1432_v25 = vadd.f32 %v1427_v41, %v1418_v62 }
 0x23b   : > { %1752 = vrot.lane.b32.xlu1 %v1747_v3, %s4461_s6  ;;  %1892 = vrot.lane.b32.xlu0 %v1888_v34, %s4459_s4  ;;  %v4415_v3 = vstv %s3961_s26  ;;  %v1291_v30 = vadd.f32 %v1287_v46, %v1277_v45  ;;  %v4490_v45 = vstv %s3853_s7  ;;  %s4038_s7 = sld [smem:[#allocation4 + $0x5a]] }
 0x23c   : > { %v1916_v18 = vmul.f32 %v4415_v3, %v3850_v33  ;;  %v1805_v0 = vmul.f32 %v4490_v45, %v3970_v13 }
 0x23d   : > { %v1329_v58 = vpop.permute.xlu1 %1328  ;;  %v1469_v63 = vpop.permute.xlu0 %1468  ;;  %v1305_v34 = vadd.f32 %v1301_v53, %v1291_v30 }
 0x23f   : > { %1782 = vrot.lane.b32.xlu1 %v1777_v6, %s4462_s8  ;;  %1906 = vrot.lane.b32.xlu0 %v1902_v54, %s4459_s4  ;;  %v4417_v6 = vstv %s3974_s28  ;;  %v1319_v46 = vadd.f32 %v1315_v42, %v1305_v34  ;;  %v4416_v42 = vstv %s3987_s29  ;;  %v1446_v34 = vadd.f32 %v1441_v55, %v1432_v25 }
 0x240   : > { %v1930_v3 = vmul.f32 %v4417_v6, %v3863_v17  ;;  %v1960_v62 = vmul.f32 %v4416_v42, %v4008_v50  ;;  %v4492_v25 = vstv %s3880_s27  ;;  %s4052_s27 = sld [smem:[#allocation4 + $0x39]] }
 0x241   : > { %v1343_v9 = vpop.permute.xlu1 %1342  ;;  %v1483_v29 = vpop.permute.xlu0 %1482  ;;  %v1333_v53 = vadd.f32 %v1329_v58, %v1319_v46 }
 0x243   : > { %1796 = vrot.lane.b32.xlu1 %v1791_v2, %s4462_s8  ;;  %1920 = vrot.lane.b32.xlu0 %v1916_v18, %s4461_s6  ;;  %v1347_v2 = vadd.f32 %v1343_v9, %v1333_v53  ;;  %v4491_v18 = vstv %s3866_s10  ;;  %v4021_v9 = vld [vmem:[#allocation3 + $0x6] sm:$0xff]  ;;  %s4044_s10 = sld [smem:[#allocation4 + $0x38]] }
 0x244   : > { %v1819_v46 = vmul.f32 %v4491_v18, %v3983_v10 }
 0x245   : > { %v1357_v54 = vpop.permute.xlu1 %1356  ;;  %v1497_v30 = vpop.permute.xlu0 %1496 }
 0x246   : > { %v1361_v45 = vadd.f32 %v1357_v54, %v1347_v2  ;;  %v1833_v2 = vmul.f32 %v4492_v25, %v3970_v13 }
 0x247   : > { %1810 = vrot.lane.b32.xlu1 %v1805_v0, %s4458_s11  ;;  %1934 = vrot.lane.b32.xlu0 %v1930_v3, %s4461_s6  ;;  %v1460_v0 = vadd.f32 %v1455_v21, %v1446_v34  ;;  %v1973_v3 = vstv %s3998_s1  ;;  %v4493_v21 = vstv %s3886_s21  ;;  %s4056_s21 = sld [smem:[#allocation4 + $0x5b]] }
 0x248   : > { %v1395_v34 = vmul.f32 %v4493_v21, %v3654_v59  ;;  %v1974_v42 = vmul.f32 %v1973_v3, %v4021_v9 }
 0x249   : > { %v1371_v58 = vpop.permute.xlu1 %1370  ;;  %v1511_v41 = vpop.permute.xlu0 %1510  ;;  %v1474_v53 = vadd.f32 %v1469_v63, %v1460_v0  ;;  %v4494_v63 = vstv %s3894_s30  ;;  %s4067_s30 = sld [smem:[#allocation4 + $0x5c]] }
 0x24a   : > { %v1375_v55 = vadd.f32 %v1371_v58, %v1361_v45  ;;  %v4426_v58 = vstv %s4011_s5  ;;  %v1403_v45 = vmul.f32 %v4494_v63, %v3667_v37  ;;  %v4422_v63 = vstv %s4038_s7 }
 0x24b   : > { %1824 = vrot.lane.b32.xlu1 %v1819_v46, %s4458_s11  ;;  %1964 = vrot.lane.b32.xlu0 %v1960_v62, %s4462_s8  ;;  %v1488_v6 = vadd.f32 %v1483_v29, %v1474_v53  ;;  %v4495_v29 = vstv %s3898_s20  ;;  %v1988_v25 = vmul.f32 %v4426_v58, %v4008_v50  ;;  %s4083_s20 = sld [smem:[#allocation4 + $0x5d]]  ;;  %v4141_v58 = vld [vmem:[#allocation3 + $0xe] sm:$0xff] }
 0x24d   : > { %v1385_v54 = vpop.permute.xlu1 %1384  ;;  %v1525_v46 = vpop.permute.xlu0 %1524  ;;  %v1502_v59 = vadd.f32 %v1497_v30, %v1488_v6 }
 0x24e   : > { %v1389_v18 = vadd.f32 %v1385_v54, %v1375_v55  ;;  %v1847_v55 = vmul.f32 %v4495_v29, %v3983_v10 }
 0x24f   : > { %1838 = vrot.lane.b32.xlu1 %v1833_v2, %s4454_s19  ;;  %1978 = vrot.lane.b32.xlu0 %v1974_v42, %s4462_s8  ;;  %v1516_v37 = vadd.f32 %v1511_v41, %v1502_v59  ;;  %v4424_v42 = vstv %s4024_s2  ;;  %v4496_v2 = vstv %s3909_s17  ;;  %s4097_s17 = sld [smem:[#allocation4 + $0x5e]] }
 0x250   : > { %v1397_v62 = vadd.f32 %v1395_v34, %v1389_v18  ;;  %v1861_v21 = vmul.f32 %v4496_v2, %v3970_v13  ;;  %v2002_v41 = vmul.f32 %v4424_v42, %v4021_v9  ;;  %v4497_v59 = vstv %s3925_s9  ;;  %s4108_s9 = sld [smem:[#allocation4 + $0x5f]] }
 0x251   : > { %v1415_v0 = vpop.permute.xlu1 %1414  ;;  %v1539_v54 = vpop.permute.xlu0 %1538  ;;  %v1530_v6 = vadd.f32 %v1525_v46, %v1516_v37  ;;  %v4421_v46 = vstv %s4044_s10  ;;  %v1875_v29 = vmul.f32 %v4497_v59, %v3983_v10  ;;  %v4418_v2 = vstv %s4056_s21 }
 0x252   : > { %v1405_v53 = vadd.f32 %v1403_v45, %v1397_v62  ;;  %v1578_v37 = vmul.f32 %v4421_v46, %v3692_v49 }
 0x253   : > { %1852 = vrot.lane.b32.xlu1 %v1847_v55, %s4454_s19  ;;  %1992 = vrot.lane.b32.xlu0 %v1988_v25, %s4458_s11  ;;  %v1544_v18 = vadd.f32 %v1539_v54, %v1530_v6  ;;  %v4419_v55 = vstv %s4052_s27  ;;  %v2016_v54 = vmul.f32 %v4422_v63, %v4008_v50 }
 0x255   : > { %v1429_v30 = vpop.permute.xlu1 %1428  ;;  %v1553_v34 = vpop.permute.xlu0 %1552 }
 0x256   : > { %v1558_v45 = vadd.f32 %v1553_v34, %v1544_v18  ;;  %v4498_v18 = vstv %s3939_s0  ;;  %s4119_s0 = sld [smem:[#allocation4 + $0x60]] }
 0x257   : > { %1866 = vrot.lane.b32.xlu1 %v1861_v21, %s4456_s24  ;;  %2006 = vrot.lane.b32.xlu0 %v2002_v41, %s4458_s11  ;;  %v1586_v21 = vmul.f32 %v4419_v55, %v3705_v14  ;;  %v1889_v59 = vmul.f32 %v4498_v18, %v3970_v13 }
 0x259   : > { %v1443_v62 = vpop.permute.xlu1 %1442  ;;  %v1567_v25 = vpop.permute.xlu0 %1566 }
 0x25a   : > { %v1572_v6 = vadd.f32 %v1567_v25, %v1558_v45  ;;  %v2030_v45 = vmul.f32 %v4418_v2, %v4021_v9  ;;  %v4420_v25 = vstv %s4067_s30  ;;  %v1419_v2 = vadd.f32 %v1415_v0, %v1405_v53 }
 0x25b   : > { %1880 = vrot.lane.b32.xlu1 %v1875_v29, %s4456_s24  ;;  %2020 = vrot.lane.b32.xlu0 %v2016_v54, %s4454_s19  ;;  %v4499_v54 = vstv %s3950_s25  ;;  %v2044_v18 = vmul.f32 %v4420_v25, %v4008_v50  ;;  %v4501_v25 = vstv %s3974_s28  ;;  %s4132_s25 = sld [smem:[#allocation4 + $0x61]] }
 0x25c   : > { %v1580_v34 = vadd.f32 %v1578_v37, %v1572_v6  ;;  %v1903_v37 = vmul.f32 %v4499_v54, %v3983_v10  ;;  %v1931_v46 = vmul.f32 %v4501_v25, %v3983_v10  ;;  %v1433_v63 = vadd.f32 %v1429_v30, %v1419_v2 }
 0x25d   : > { %v1457_v41 = vpop.permute.xlu1 %1456  ;;  %v1597_v49 = vpop.permute.xlu0 %1596  ;;  %v4502_v30 = vstv %s3987_s29  ;;  %s2595_s29 = sshll.u32 %s2798_s16, 12 }
 0x25e   : > { %v1588_v29 = vadd.f32 %v1586_v21, %v1580_v34  ;;  %v4423_v21 = vstv %s4083_s20 }
 0x25f   : > { %1894 = vrot.lane.b32.xlu1 %v1889_v59, %s4459_s4  ;;  %2034 = vrot.lane.b32.xlu0 %v2030_v45, %s4454_s19  ;;  %v4500_v59 = vstv %s3961_s26  ;;  %v2058_v55 = vmul.f32 %v4423_v21, %v4021_v9 }
 0x260   : > { %v1917_v45 = vmul.f32 %v4500_v59, %v3970_v13  ;;  %v4128_v59 = vld [vmem:[#allocation2 + $0xe] sm:$0xff] }
 0x261   : > { %v1471_v14 = vpop.permute.xlu1 %1470  ;;  %v1611_v6 = vpop.permute.xlu0 %1610  ;;  %v1961_v2 = vmul.f32 %v4502_v30, %v4128_v59  ;;  %v2113_v1 = vstv %s4132_s25 }
 0x263   : > { %1908 = vrot.lane.b32.xlu1 %v1903_v37, %s4459_s4  ;;  %2048 = vrot.lane.b32.xlu0 %v2044_v18, %s4456_s24  ;;  %v4425_v37 = vstv %s4097_s17 }
 0x264   : > { %v2072_v53 = vmul.f32 %v4425_v37, %v4008_v50 }
 0x265   : > { %v1485_v34 = vpop.permute.xlu1 %1484  ;;  %v1625_v54 = vpop.permute.xlu0 %1624 }
 0x267   : > { %1922 = vrot.lane.b32.xlu1 %v1917_v45, %s4461_s6  ;;  %2062 = vrot.lane.b32.xlu0 %v2058_v55, %s4456_s24  ;;  %v4427_v45 = vstv %s4108_s9  ;;  %v1447_v55 = vadd.f32 %v1443_v62, %v1433_v63 }
 0x268   : > { %v2086_v37 = vmul.f32 %v4427_v45, %v4021_v9  ;;  %v1602_v45 = vadd.f32 %v1597_v49, %v1588_v29 }
 0x269   : > { %v1499_v18 = vpop.permute.xlu1 %1498  ;;  %v1639_v0 = vpop.permute.xlu0 %1638  ;;  %v1461_v25 = vadd.f32 %v1457_v41, %v1447_v55 }
 0x26b   : > { %1936 = vrot.lane.b32.xlu1 %v1931_v46, %s4461_s6  ;;  %2076 = vrot.lane.b32.xlu0 %v2072_v53, %s4459_s4  ;;  %v2099_v46 = vstv %s4119_s0  ;;  %v1475_v63 = vadd.f32 %v1471_v14, %v1461_v25  ;;  %v1975_v53 = vmul.f32 %v1973_v3, %v4141_v58  ;;  %v2114_v3 = vmul.f32 %v2113_v1, %v4021_v9 }
 0x26c   : > { %v2100_v55 = vmul.f32 %v2099_v46, %v4008_v50 }
 0x26d   : > { %v1513_v21 = vpop.permute.xlu1 %1512  ;;  %v1653_v42 = vpop.permute.xlu0 %1652  ;;  %v1489_v30 = vadd.f32 %v1485_v34, %v1475_v63  ;;  %v1616_v34 = vadd.f32 %v1611_v6, %v1602_v45  ;;  %v4504_v63 = vstv %s4024_s2  ;;  %v4505_v45 = vstv %s4038_s7  ;;  %s4306_s7 = scalar_lea.hbm %s4360_s3, %s2595_s29 }
 0x26f   : > { %1966 = vrot.lane.b32.xlu1 %v1961_v2, %s4462_s8  ;;  %2090 = vrot.lane.b32.xlu0 %v2086_v37, %s4459_s4  ;;  %v1503_v2 = vadd.f32 %v1499_v18, %v1489_v30  ;;  %v4503_v37 = vstv %s4011_s5  ;;  %v1630_v29 = vadd.f32 %v1625_v54, %v1616_v34 }
 0x270   : > { %v1989_v25 = vmul.f32 %v4503_v37, %v4128_v59 }
 0x271   : > { %v1527_v62 = vpop.permute.xlu1 %1526  ;;  %v1667_v41 = vpop.permute.xlu0 %1666  ;;  %v1517_v61 = vadd.f32 %v1513_v21, %v1503_v2 }
 0x273   : > { %1980 = vrot.lane.b32.xlu1 %v1975_v53, %s4462_s8  ;;  %2104 = vrot.lane.b32.xlu0 %v2100_v55, %s4461_s6  ;;  %v1531_v49 = vadd.f32 %v1527_v62, %v1517_v61  ;;  %v2003_v53 = vmul.f32 %v4504_v63, %v4141_v58  ;;  %v1644_v55 = vadd.f32 %v1639_v0, %v1630_v29  ;;  %v4506_v62 = vstv %s4044_s10  ;;  %s4182_s8 = sld [smem:[#allocation4 + $0x47]] }
 0x274   : > { %v2017_v61 = vmul.f32 %v4505_v45, %v4128_v59  ;;  %v1579_v54 = vmul.f32 %v4506_v62, %v3812_v38  ;;  %v4507_v0 = vstv %s4052_s27  ;;  %v4510_v62 = vstv %s4083_s20  ;;  %s2754_s27 = smov [#allocation7]  }
 0x275   : > { %v1541_v14 = vpop.permute.xlu1 %1540  ;;  %v1681_v60 = vpop.permute.xlu0 %1680  ;;  %v1658_v37 = vadd.f32 %v1653_v42, %v1644_v55  ;;  %v4509_v55 = vstv %s4067_s30 }
 0x276   : > { %v1545_v30 = vadd.f32 %v1541_v14, %v1531_v49  ;;  %v1587_v14 = vmul.f32 %v4507_v0, %v3825_v22 }
 0x277   : > { %1994 = vrot.lane.b32.xlu1 %v1989_v25, %s4458_s11  ;;  %2118 = vrot.lane.b32.xlu0 %v2114_v3, %s4461_s6  ;;  %v1672_v34 = vadd.f32 %v1667_v41, %v1658_v37 }
 0x279   : > { %v1555_v18 = vpop.permute.xlu1 %1554  ;;  %v1695_v21 = vpop.permute.xlu0 %1694  ;;  %v1686_v42 = vadd.f32 %v1681_v60, %v1672_v34 }
 0x27a   : > { %v1559_v2 = vadd.f32 %v1555_v18, %v1545_v30  ;;  %v4508_v18 = vstv %s4056_s21  ;;  %s2682_s21 = sshll.u32 %s2754_s27, 4  ;;  %s2683_s21 = int_to_ptr.vmem [resolvable:$false] %s2682_s21 }
 0x27b   : > { %2008 = vrot.lane.b32.xlu1 %v2003_v53, %s4458_s11  ;;  %s4177_s11 = sld [smem:[#allocation4 + $0x46]]  ;;  %v2031_v63 = vmul.f32 %v4508_v18, %v4141_v58  ;;  %v1700_v41 = vadd.f32 %v1695_v21, %v1686_v42  ;;  %v4511_v42 = vstv %s4097_s17  ;;  %s2684_s30 = scalar_lea.vmem %s2683_s21, 8192 }
 0x27c   : > { %v2073_v18 = vmul.f32 %v4511_v42, %v4128_v59 }
 0x27d   : > { %v1569_v6 = vpop.permute.xlu1 %1568  ;;  %v1709_v3 = vpop.permute.xlu0 %1708 }
 0x27e   : > { %v1573_v25 = vadd.f32 %v1569_v6, %v1559_v2  ;;  %v1714_v30 = vadd.f32 %v1709_v3, %v1700_v41  ;;  %v2045_v2 = vmul.f32 %v4509_v55, %v4128_v59 }
 0x27f   : > { %2022 = vrot.lane.b32.xlu1 %v2017_v61, %s4454_s19 }
 0x280   : > { %v1581_v49 = vadd.f32 %v1579_v54, %v1573_v25  ;;  %v2059_v54 = vmul.f32 %v4510_v62, %v4141_v58  ;;  %v1769_v25 = vstv %s4182_s8  ;;  %v2115_v62 = vmul.f32 %v2113_v1, %v4141_v58 }
 0x281   : > { %v1599_v29 = vpop.permute.xlu1 %1598  ;;  %v1723_v53 = vpop.permute.xlu0 %1722  ;;  %v1761_v6 = vstv %s4177_s11 }
 0x282   : > { %v1589_v38 = vadd.f32 %v1587_v14, %v1581_v49  ;;  %v1728_v37 = vadd.f32 %v1723_v53, %v1714_v30  ;;  %v1762_v3 = vmul.f32 %v1761_v6, %v3850_v33  ;;  %v1770_v49 = vmul.f32 %v1769_v25, %v3863_v17 }
 0x283   : > { %2036 = vrot.lane.b32.xlu1 %v2031_v63, %s4454_s19  ;;  %v4512_v30 = vstv %s4108_s9  ;;  %s4215_s19 = sld [smem:[#allocation4 + $0x54]] }
 0x284   : > { %v2087_v55 = vmul.f32 %v4512_v30, %v4141_v58 }
 0x285   : > { %v1613_v22 = vpop.permute.xlu1 %1612  ;;  %v1737_v60 = vpop.permute.xlu0 %1736 }
 0x286   : > { %v1742_v45 = vadd.f32 %v1737_v60, %v1728_v37  ;;  %v2101_v60 = vmul.f32 %v2099_v46, %v4128_v59  ;;  %v1603_v37 = vadd.f32 %v1599_v29, %v1589_v38 }
 0x287   : > { %2050 = vrot.lane.b32.xlu1 %v2045_v2, %s4456_s24 }
 0x289   : > { %v1627_v61 = vpop.permute.xlu1 %1626  ;;  %v1751_v21 = vpop.permute.xlu0 %1750 }
 0x28a   : > { %v1756_v34 = vadd.f32 %v1751_v21, %v1742_v45 }
 0x28b   : > { %2064 = vrot.lane.b32.xlu1 %v2059_v54, %s4456_s24  ;;  %v1617_v54 = vadd.f32 %v1613_v22, %v1603_v37  ;;  %s4217_s24 = sld [smem:[#allocation4 + $0x55]] }
 0x28c   : > { %v1764_v0 = vadd.f32 %v1762_v3, %v1756_v34 }
 0x28d   : > { %v1641_v14 = vpop.permute.xlu1 %1640  ;;  %v1781_v63 = vpop.permute.xlu0 %1780  ;;  %v1631_v3 = vadd.f32 %v1627_v61, %v1617_v54 }
 0x28e   : > { %v1772_v53 = vadd.f32 %v1770_v49, %v1764_v0 }
 0x28f   : > { %2078 = vrot.lane.b32.xlu1 %v2073_v18, %s4459_s4  ;;  %v1645_v0 = vadd.f32 %v1641_v14, %v1631_v3 }
 0x290   : > { %v1786_v29 = vadd.f32 %v1781_v63, %v1772_v53  ;;  %v1771_v53 = vmul.f32 %v1769_v25, %v3983_v10 }
 0x291   : > { %v1655_v41 = vpop.permute.xlu1 %1654  ;;  %v1795_v33 = vpop.permute.xlu0 %1794  ;;  %v1953_v10 = vstv %s4217_s24 }
 0x292   : > { %v1659_v42 = vadd.f32 %v1655_v41, %v1645_v0  ;;  %v1800_v56 = vadd.f32 %v1795_v33, %v1786_v29  ;;  %v1763_v41 = vmul.f32 %v1761_v6, %v3970_v13 }
 0x293   : > { %2092 = vrot.lane.b32.xlu1 %v2087_v55, %s4459_s4  ;;  %s4225_s4 = sld [smem:[#allocation4 + $0x62]] }
 0x295   : > { %v1669_v2 = vpop.permute.xlu1 %1668  ;;  %v1809_v17 = vpop.permute.xlu0 %1808 }
 0x296   : > { %v1673_v30 = vadd.f32 %v1669_v2, %v1659_v42  ;;  %v1814_v1 = vadd.f32 %v1809_v17, %v1800_v56 }
 0x297   : > { %2106 = vrot.lane.b32.xlu1 %v2101_v60, %s4461_s6 }
 0x299   : > { %v1683_v45 = vpop.permute.xlu1 %1682  ;;  %v1823_v21 = vpop.permute.xlu0 %1822 }
 0x29a   : > { %v1687_v38 = vadd.f32 %v1683_v45, %v1673_v30 }
 0x29b   : > { %2120 = vrot.lane.b32.xlu1 %v2115_v62, %s4461_s6  ;;  %v1828_v62 = vadd.f32 %v1823_v21, %v1814_v1  ;;  %s186_s6 = sand.u32 1, %s2736_s13  }
 0x29c   : > { %s2485_s26 = sshll.u32 %s186_s6, 8  ;;  %s4316_s16 = scalar_lea.sflag [#allocation5], %s186_s6 }
 0x29d   : > { %v1697_v34 = vpop.permute.xlu1 %1696  ;;  %v1837_v49 = vpop.permute.xlu0 %1836  ;;  %s4241_s28 = scalar_lea.vmem [#allocation7], %s2485_s26 }
 0x29e   : > { %v1701_v60 = vadd.f32 %v1697_v34, %v1687_v38  ;;  %v1842_v54 = vadd.f32 %v1837_v49, %v1828_v62  ;;  %v1945_v49 = vstv %s4215_s19  ;;  %v1954_v38 = vmul.f32 %v1953_v10, %v4021_v9  ;;  %s2396_s1 = sshll.u32 %s4241_s28, 4  ;;  %s4308_s1 = int_to_ptr.vmem [resolvable:$true] %s2396_s1 }
 0x29f   : > { %v1946_v25 = vmul.f32 %v1945_v49, %v4008_v50  ;;  %s2678_s10 = scalar_lea.vmem %s4308_s1, 4096  ;;  %p2685_p13 = scmp.lt.s32.totalorder %s4308_s1, %s2683_s21 }
 0x2a0   : > { %p2679_p9 = scmp.ne.s32.totalorder %s4308_s1, %s2678_s10  ;;  %p2686_p0 = scmp.lt.s32.totalorder %s2684_s30, %s2678_s10 }
 0x2a1   : > { %v1711_v18 = vpop.permute.xlu1 %1710  ;;  %v1851_v46 = vpop.permute.xlu0 %1850 }
 0x2a2   : > { %v1715_v52 = vadd.f32 %v1711_v18, %v1701_v60  ;;  %v1856_v0 = vadd.f32 %v1851_v46, %v1842_v54  ;;  %p2680_p10 = pnand %p2679_p9, %p2815_p5  ;;  %p2687_p1 = por %p2686_p0, %p2685_p13 }
 0x2a4   : > { %p2681_p12 = pneg %p2680_p10 }
 0x2a5   : > { %v1725_v55 = vpop.permute.xlu1 %1724  ;;  %v1865_v57 = vpop.permute.xlu0 %1864 }
 0x2a6   : > { %v1729_v37 = vadd.f32 %v1725_v55, %v1715_v52  ;;  %v1870_v33 = vadd.f32 %v1865_v57, %v1856_v0  ;;  %p2688_p2 = pnand %p2687_p1, %p2681_p12 }
 0x2a9   : > { %v1739_v22 = vpop.permute.xlu1 %1738  ;;  %v1879_v51 = vpop.permute.xlu0 %1878 }
 0x2aa   : > { %v1743_v61 = vadd.f32 %v1739_v22, %v1729_v37  ;;  %v1884_v45 = vadd.f32 %v1879_v51, %v1870_v33 }
 0x2ad   : > { %v1753_v14 = vpop.permute.xlu1 %1752  ;;  %v1893_v2 = vpop.permute.xlu0 %1892 }
 0x2ae   : > { %v1757_v3 = vadd.f32 %v1753_v14, %v1743_v61  ;;  %v1898_v21 = vadd.f32 %v1893_v2, %v1884_v45 }
 0x2b0   : > { %v1765_v63 = vadd.f32 %v1763_v41, %v1757_v3 }
 0x2b1   : > { %v1783_v56 = vpop.permute.xlu1 %1782  ;;  %v1907_v52 = vpop.permute.xlu0 %1906 }
 0x2b2   : > { %v1773_v17 = vadd.f32 %v1771_v53, %v1765_v63  ;;  %v1912_v6 = vadd.f32 %v1907_v52, %v1898_v21 }
 0x2b4   : > { %v1787_v37 = vadd.f32 %v1783_v56, %v1773_v17 }
 0x2b5   : > { %v1797_v34 = vpop.permute.xlu1 %1796  ;;  %v1921_v13 = vpop.permute.xlu0 %1920 }
 0x2b6   : > { %v1926_v42 = vadd.f32 %v1921_v13, %v1912_v6  ;;  %v1801_v54 = vadd.f32 %v1797_v34, %v1787_v37 }
 0x2b9   : > { %v1811_v18 = vpop.permute.xlu1 %1810  ;;  %v1935_v30 = vpop.permute.xlu0 %1934 }
 0x2ba   : > { %v1940_v46 = vadd.f32 %v1935_v30, %v1926_v42  ;;  %v1815_v41 = vadd.f32 %v1811_v18, %v1801_v54 }
 0x2bc   : > { %v1948_v57 = vadd.f32 %v1946_v25, %v1940_v46 }
 0x2bd   : > { %v1825_v29 = vpop.permute.xlu1 %1824  ;;  %v1965_v55 = vpop.permute.xlu0 %1964 }
 0x2be   : > { %v1956_v60 = vadd.f32 %v1954_v38, %v1948_v57  ;;  %v1829_v2 = vadd.f32 %v1825_v29, %v1815_v41  ;;  %v1947_v29 = vmul.f32 %v1945_v49, %v4128_v59  ;;  %v2127_v49 = vstv %s4225_s4 }
 0x2c0   : > { %v1970_v52 = vadd.f32 %v1965_v55, %v1956_v60  ;;  %v1955_v60 = vmul.f32 %v1953_v10, %v4141_v58 }
 0x2c1   : > { %v1839_v1 = vpop.permute.xlu1 %1838  ;;  %v1979_v51 = vpop.permute.xlu0 %1978 }
 0x2c2   : > { %v1843_v50 = vadd.f32 %v1839_v1, %v1829_v2  ;;  %v1984_v6 = vadd.f32 %v1979_v51, %v1970_v52 }
 0x2c5   : > { %v1853_v22 = vpop.permute.xlu1 %1852  ;;  %v1993_v62 = vpop.permute.xlu0 %1992 }
 0x2c6   : > { %v1857_v53 = vadd.f32 %v1853_v22, %v1843_v50  ;;  %v1998_v56 = vadd.f32 %v1993_v62, %v1984_v6 }
 0x2c9   : > { %v1867_v61 = vpop.permute.xlu1 %1866  ;;  %v2007_v14 = vpop.permute.xlu0 %2006 }
 0x2ca   : > { %v1871_v9 = vadd.f32 %v1867_v61, %v1857_v53  ;;  %v2012_v25 = vadd.f32 %v2007_v14, %v1998_v56 }
 0x2cd   : > { %v1881_v3 = vpop.permute.xlu1 %1880  ;;  %v2021_v0 = vpop.permute.xlu0 %2020 }
 0x2ce   : > { %v1885_v21 = vadd.f32 %v1881_v3, %v1871_v9  ;;  %v2026_v46 = vadd.f32 %v2021_v0, %v2012_v25 }
 0x2d1   : > { %v1895_v63 = vpop.permute.xlu1 %1894  ;;  %v2035_v33 = vpop.permute.xlu0 %2034 }
 0x2d2   : > { %v1899_v42 = vadd.f32 %v1895_v63, %v1885_v21  ;;  %v2040_v22 = vadd.f32 %v2035_v33, %v2026_v46 }
 0x2d5   : > { %v1909_v45 = vpop.permute.xlu1 %1908  ;;  %v2049_v13 = vpop.permute.xlu0 %2048 }
 0x2d6   : > { %v1913_v30 = vadd.f32 %v1909_v45, %v1899_v42  ;;  %v2054_v37 = vadd.f32 %v2049_v13, %v2040_v22 }
 0x2d9   : > { %v1923_v17 = vpop.permute.xlu1 %1922  ;;  %v2063_v34 = vpop.permute.xlu0 %2062 }
 0x2da   : > { %v1927_v18 = vadd.f32 %v1923_v17, %v1913_v30  ;;  %v2068_v62 = vadd.f32 %v2063_v34, %v2054_v37 }
 0x2dd   : > { %v1937_v57 = vpop.permute.xlu1 %1936  ;;  %v2077_v1 = vpop.permute.xlu0 %2076 }
 0x2de   : > { %v1941_v38 = vadd.f32 %v1937_v57, %v1927_v18  ;;  %v2082_v14 = vadd.f32 %v2077_v1, %v2068_v62  ;;  %v2144_v57 = vsub.s32 0, %v3047_v26  ;;  %v2166_v62 = vsub.s32 2, %v3047_v26 }
 0x2e0   : > { %v1949_v55 = vadd.f32 %v1947_v29, %v1941_v38 }
 0x2e1   : > { %v1967_v61 = vpop.permute.xlu1 %1966  ;;  %v2091_v54 = vpop.permute.xlu0 %2090 }
 0x2e2   : > { %v1957_v51 = vadd.f32 %v1955_v60, %v1949_v55  ;;  %v2096_v2 = vadd.f32 %v2091_v54, %v2082_v14  ;;  %v2155_v60 = vsub.s32 1, %v3047_v26 }
 0x2e4   : > { %v1971_v9 = vadd.f32 %v1967_v61, %v1957_v51 }
 0x2e5   : > { %v1981_v41 = vpop.permute.xlu1 %1980  ;;  %v2105_v3 = vpop.permute.xlu0 %2104 }
 0x2e6   : > { %v2110_v0 = vadd.f32 %v2105_v3, %v2096_v2  ;;  %v1985_v21 = vadd.f32 %v1981_v41, %v1971_v9  ;;  %v2177_v2 = vsub.s32 3, %v3047_v26  ;;  %v2221_v9 = vsub.s32 7, %v3047_v26 }
 0x2e9   : > { %v1995_v59 = vpop.permute.xlu1 %1994  ;;  %v2119_v50 = vpop.permute.xlu0 %2118 }
 0x2ea   : > { %v2124_v63 = vadd.f32 %v2119_v50, %v2110_v0  ;;  %v1999_v6 = vadd.f32 %v1995_v59, %v1985_v21  ;;  %v2188_v50 = vsub.s32 4, %v3047_v26 }
 0x2ec   : > { %v2128_v53 = vadd.f32 %v2127_v49, %v2124_v63 }
 0x2ed   : > { %v2009_v33 = vpop.permute.xlu1 %2008 }
 0x2ee   : > { %v2587_v58 = vmul.f32 -1.442695, %v2128_v53  ;;  %v2013_v17 = vadd.f32 %v2009_v33, %v1999_v6  ;;  %v2199_v53 = vsub.s32 5, %v3047_v26 }
 0x2f0   : > { %2655 = vpow2.f32 %v2587_v58 }
 0x2f1   : > { %v2023_v10 = vpop.permute.xlu1 %2022 }
 0x2f2   : > { %v2027_v30 = vadd.f32 %v2023_v10, %v2013_v17 }
 0x2f5   : > { %v2037_v52 = vpop.permute.xlu1 %2036 }
 0x2f6   : > { %v2041_v25 = vadd.f32 %v2037_v52, %v2027_v30 }
 0x2f9   : > { %v2051_v45 = vpop.permute.xlu1 %2050 }
 0x2fa   : > { %v2656_v13 = vpop.eup %2655  ;;  %v2055_v18 = vadd.f32 %v2051_v45, %v2041_v25 }
 0x2fb   : > { %v2136_v42 = vadd.f32 1.0, %v2656_v13 }
 0x2fd   : > { %v2065_v56 = vpop.permute.xlu1 %2064  ;;  %2657 = vrcp.f32 %v2136_v42 }
 0x2fe   : > { %v2069_v29 = vadd.f32 %v2065_v56, %v2055_v18 }
 0x301   : > { %v2079_v34 = vpop.permute.xlu1 %2078 }
 0x302   : > { %v2083_v1 = vadd.f32 %v2079_v34, %v2069_v29 }
 0x305   : > { %v2093_v46 = vpop.permute.xlu1 %2092 }
 0x306   : > { %v2097_v37 = vadd.f32 %v2093_v46, %v2083_v1 }
 0x307   : > { %v2658_v38 = vpop.eup %2657 }
 0x308   : > { %v2145_v55 = vrot.slane %v2658_v38, %v2144_v57  ;;  %v2156_v54 = vrot.slane %v2658_v38, %v2155_v60  ;;  %v2167_v3 = vrot.slane %v2658_v38, %v2166_v62  ;;  %v2178_v59 = vrot.slane %v2658_v38, %v2177_v2 }
 0x309   : > { %v2107_v22 = vpop.permute.xlu1 %2106  ;;  %v2189_v63 = vrot.slane %v2658_v38, %v2188_v50  ;;  %v2200_v33 = vrot.slane %v2658_v38, %v2199_v53  ;;  %v2222_v45 = vrot.slane %v2658_v38, %v2221_v9 }
 0x30a   : > { %2151 = vbcast.lane.b32.xlu1 %v2145_v55, 264  ;;  %2147 = vbcast.lane.b32.xlu0 %v2145_v55, 256  ;;  %v2111_v61 = vadd.f32 %v2107_v22, %v2097_v37 }
 0x30d   : > { %v2121_v51 = vpop.permute.xlu1 %2120 }
 0x30e   : > { %v2125_v14 = vadd.f32 %v2121_v51, %v2111_v61  ;;  %2162 = vbcast.lane.b32.xlu1 %v2156_v54, 264  ;;  %2158 = vbcast.lane.b32.xlu0 %v2156_v54, 256 }
 0x310   : > { %v2129_v41 = vadd.f32 %v2127_v49, %v2125_v14  ;;  %v2210_v49 = vsub.s32 6, %v3047_v26 }
 0x312   : > { %v2588_v0 = vmul.f32 -1.442695, %v2129_v41  ;;  %2173 = vbcast.lane.b32.xlu1 %v2167_v3, 264  ;;  %2169 = vbcast.lane.b32.xlu0 %v2167_v3, 256  ;;  %v2211_v52 = vrot.slane %v2658_v38, %v2210_v49 }
 0x314   : > { %2659 = vpow2.f32 %v2588_v0 }
 0x316   : > { %2184 = vbcast.lane.b32.xlu1 %v2178_v59, 264  ;;  %2180 = vbcast.lane.b32.xlu0 %v2178_v59, 256 }
 0x31a   : > { %2195 = vbcast.lane.b32.xlu1 %v2189_v63, 264  ;;  %2191 = vbcast.lane.b32.xlu0 %v2189_v63, 256 }
 0x31e   : > { %v2660_v58 = vpop.eup %2659  ;;  %2206 = vbcast.lane.b32.xlu1 %v2200_v33, 264  ;;  %2202 = vbcast.lane.b32.xlu0 %v2200_v33, 256 }
 0x31f   : > { %v2137_v10 = vadd.f32 1.0, %v2660_v58 }
 0x321   : > { %2661 = vrcp.f32 %v2137_v10 }
 0x322   : > { %2217 = vbcast.lane.b32.xlu1 %v2211_v52, 264  ;;  %2213 = vbcast.lane.b32.xlu0 %v2211_v52, 256 }
 0x326   : > { %2228 = vbcast.lane.b32.xlu1 %v2222_v45, 264  ;;  %2224 = vbcast.lane.b32.xlu0 %v2222_v45, 256  ;;  %v4513_v45 = vld [vmem:[#allocation11_spill] sm:$0xff] }
 0x32b   : > { %v2662_v21 = vpop.eup %2661 }
 0x32c   : > { %v2233_v13 = vrot.slane %v2662_v21, %v2144_v57  ;;  %v2244_v6 = vrot.slane %v2662_v21, %v2155_v60  ;;  %v2255_v42 = vrot.slane %v2662_v21, %v2166_v62  ;;  %v2266_v56 = vrot.slane %v2662_v21, %v2177_v2 }
 0x32d   : > { %v2277_v26 = vrot.slane %v2662_v21, %v2188_v50  ;;  %v2288_v17 = vrot.slane %v2662_v21, %v2199_v53  ;;  %v2299_v30 = vrot.slane %v2662_v21, %v2210_v49  ;;  %v2310_v34 = vrot.slane %v2662_v21, %v2221_v9  ;;  %v4514_v21 = vld [vmem:[#allocation12_spill] sm:$0xff] }
 0x32e   : > { %2239 = vbcast.lane.b32.xlu1 %v2233_v13, 264  ;;  %2235 = vbcast.lane.b32.xlu0 %v2233_v13, 256 }
 0x332   : > { %2250 = vbcast.lane.b32.xlu1 %v2244_v6, 264  ;;  %2246 = vbcast.lane.b32.xlu0 %v2244_v6, 256 }
 0x336   : > { %2261 = vbcast.lane.b32.xlu1 %v2255_v42, 264  ;;  %2257 = vbcast.lane.b32.xlu0 %v2255_v42, 256  ;;  %v4515_v42 = vld [vmem:[#allocation13_spill] sm:$0xff] }
 0x33a   : > { %2272 = vbcast.lane.b32.xlu1 %v2266_v56, 264  ;;  %2268 = vbcast.lane.b32.xlu0 %v2266_v56, 256  ;;  %v4516_v56 = vld [vmem:[#allocation14_spill] sm:$0xff] }
 0x33e   : > { %2283 = vbcast.lane.b32.xlu1 %v2277_v26, 264  ;;  %2279 = vbcast.lane.b32.xlu0 %v2277_v26, 256 }
 0x342   : > { %2294 = vbcast.lane.b32.xlu1 %v2288_v17, 264  ;;  %2290 = vbcast.lane.b32.xlu0 %v2288_v17, 256 }
 0x346   : > { %2305 = vbcast.lane.b32.xlu1 %v2299_v30, 264  ;;  %2301 = vbcast.lane.b32.xlu0 %v2299_v30, 256  ;;  %v4517_v30 = vld [vmem:[#allocation15_spill] sm:$0xff] }
 0x34a   : > { %2316 = vbcast.lane.b32.xlu1 %v2310_v34, 264  ;;  %2312 = vbcast.lane.b32.xlu0 %v2310_v34, 256 }
 0x37c   : > { %v2152_v25 = vpop.permute.xlu1 %2151  ;;  %v2148_v18 = vpop.permute.xlu0 %2147 }
 0x37d   : > { %v2319_v46 = vmul.f32 %v2152_v25, %v2871_v8  ;;  %v2318_v57 = vmul.f32 %v2148_v18, %v2862_v5  ;;  %v4518_v25 = vld [vmem:[#allocation16_spill] sm:$0xff] }
 0x37f   : > { %2351 = vst [vmem:[%s4241_s28 + $0x8] sm:$0xff] %v2319_v46  ;;  %2350 = vst [vmem:[%s4241_s28] sm:$0xff] %v2318_v57 }
 0x380   : > { %v2163_v29 = vpop.permute.xlu1 %2162  ;;  %v2159_v38 = vpop.permute.xlu0 %2158 }
 0x381   : > { %v2321_v1 = vmul.f32 %v2163_v29, %v2868_v7  ;;  %v2320_v8 = vmul.f32 %v2159_v38, %v2859_v4  ;;  %v4519_v29 = vld [vmem:[#allocation17_spill] sm:$0xff] }
 0x383   : > { %2353 = vst [vmem:[%s4241_s28 + $0x18] sm:$0xff] %v2321_v1  ;;  %2352 = vst [vmem:[%s4241_s28 + $0x10] sm:$0xff] %v2320_v8  ;;  %v4520_v1 = vld [vmem:[#allocation18_spill] sm:$0xff] }
 0x384   : > { %v2174_v5 = vpop.permute.xlu1 %2173  ;;  %v2170_v22 = vpop.permute.xlu0 %2169 }
 0x385   : > { %v2323_v55 = vmul.f32 %v2174_v5, %v2878_v11  ;;  %v2322_v60 = vmul.f32 %v2170_v22, %v2881_v12 }
 0x387   : > { %2355 = vst [vmem:[%s4241_s28 + $0x28] sm:$0xff] %v2323_v55  ;;  %2354 = vst [vmem:[%s4241_s28 + $0x20] sm:$0xff] %v2322_v60 }
 0x388   : > { %v2185_v37 = vpop.permute.xlu1 %2184  ;;  %v2181_v61 = vpop.permute.xlu0 %2180 }
 0x389   : > { %v2325_v7 = vmul.f32 %v2185_v37, %v2888_v15  ;;  %v2324_v4 = vmul.f32 %v2181_v61, %v2891_v16 }
 0x38b   : > { %2357 = vst [vmem:[%s4241_s28 + $0x38] sm:$0xff] %v2325_v7  ;;  %2356 = vst [vmem:[%s4241_s28 + $0x30] sm:$0xff] %v2324_v4 }
 0x38c   : > { %v2196_v51 = vpop.permute.xlu1 %2195  ;;  %v2192_v54 = vpop.permute.xlu0 %2191 }
 0x38d   : > { %v2327_v11 = vmul.f32 %v2196_v51, %v2898_v19  ;;  %v2326_v12 = vmul.f32 %v2192_v54, %v2901_v20 }
 0x38f   : > { %2359 = vst [vmem:[%s4241_s28 + $0x48] sm:$0xff] %v2327_v11  ;;  %2358 = vst [vmem:[%s4241_s28 + $0x40] sm:$0xff] %v2326_v12 }
 0x390   : > { %v2207_v62 = vpop.permute.xlu1 %2206  ;;  %v2203_v14 = vpop.permute.xlu0 %2202 }
 0x391   : > { %v2329_v15 = vmul.f32 %v2207_v62, %v2908_v23  ;;  %v2328_v16 = vmul.f32 %v2203_v14, %v2911_v24 }
 0x393   : > { %2361 = vst [vmem:[%s4241_s28 + $0x58] sm:$0xff] %v2329_v15  ;;  %2360 = vst [vmem:[%s4241_s28 + $0x50] sm:$0xff] %v2328_v16 }
 0x394   : > { %v2218_v41 = vpop.permute.xlu1 %2217  ;;  %v2214_v3 = vpop.permute.xlu0 %2213 }
 0x395   : > { %v2331_v19 = vmul.f32 %v2218_v41, %v2918_v27  ;;  %v2330_v20 = vmul.f32 %v2214_v3, %v2921_v28 }
 0x397   : > { %2363 = vst [vmem:[%s4241_s28 + $0x68] sm:$0xff] %v2331_v19  ;;  %2362 = vst [vmem:[%s4241_s28 + $0x60] sm:$0xff] %v2330_v20 }
 0x398   : > { %v2229_v2 = vpop.permute.xlu1 %2228  ;;  %v2225_v0 = vpop.permute.xlu0 %2224 }
 0x399   : > { %v2333_v23 = vmul.f32 %v2229_v2, %v2928_v31  ;;  %v2332_v24 = vmul.f32 %v2225_v0, %v2931_v32 }
 0x39b   : > { %2365 = vst [vmem:[%s4241_s28 + $0x78] sm:$0xff] %v2333_v23  ;;  %2364 = vst [vmem:[%s4241_s28 + $0x70] sm:$0xff] %v2332_v24 }
 0x3a0   : > { %v2240_v59 = vpop.permute.xlu1 %2239  ;;  %v2236_v50 = vpop.permute.xlu0 %2235 }
 0x3a1   : > { %v2335_v27 = vmul.f32 %v2240_v59, %v2938_v35  ;;  %v2334_v28 = vmul.f32 %v2236_v50, %v2941_v36 }
 0x3a3   : > { %2367 = vst [vmem:[%s4241_s28 + $0x88] sm:$0xff] %v2335_v27  ;;  %2366 = vst [vmem:[%s4241_s28 + $0x80] sm:$0xff] %v2334_v28 }
 0x3a4   : > { %v2251_v63 = vpop.permute.xlu1 %2250  ;;  %v2247_v53 = vpop.permute.xlu0 %2246 }
 0x3a5   : > { %v2337_v31 = vmul.f32 %v2251_v63, %v2948_v39  ;;  %v2336_v32 = vmul.f32 %v2247_v53, %v2951_v40 }
 0x3a7   : > { %2369 = vst [vmem:[%s4241_s28 + $0x98] sm:$0xff] %v2337_v31  ;;  %2368 = vst [vmem:[%s4241_s28 + $0x90] sm:$0xff] %v2336_v32 }
 0x3a8   : > { %v2262_v33 = vpop.permute.xlu1 %2261  ;;  %v2258_v49 = vpop.permute.xlu0 %2257 }
 0x3a9   : > { %v2339_v35 = vmul.f32 %v2262_v33, %v2958_v43  ;;  %v2338_v36 = vmul.f32 %v2258_v49, %v2961_v44 }
 0x3ab   : > { %2371 = vst [vmem:[%s4241_s28 + $0xa8] sm:$0xff] %v2339_v35  ;;  %2370 = vst [vmem:[%s4241_s28 + $0xa0] sm:$0xff] %v2338_v36 }
 0x3ac   : > { %v2273_v58 = vpop.permute.xlu1 %2272  ;;  %v2269_v10 = vpop.permute.xlu0 %2268 }
 0x3ad   : > { %v2341_v39 = vmul.f32 %v2273_v58, %v2968_v47  ;;  %v2340_v40 = vmul.f32 %v2269_v10, %v2971_v48 }
 0x3af   : > { %2373 = vst [vmem:[%s4241_s28 + $0xb8] sm:$0xff] %v2341_v39  ;;  %2372 = vst [vmem:[%s4241_s28 + $0xb0] sm:$0xff] %v2340_v40 }
 0x3b0   : > { %v2284_v52 = vpop.permute.xlu1 %2283  ;;  %v2280_v9 = vpop.permute.xlu0 %2279 }
 0x3b1   : > { %v2343_v43 = vmul.f32 %v2284_v52, %v4513_v45  ;;  %v2342_v44 = vmul.f32 %v2280_v9, %v4514_v21 }
 0x3b3   : > { %2375 = vst [vmem:[%s4241_s28 + $0xc8] sm:$0xff] %v2343_v43  ;;  %2374 = vst [vmem:[%s4241_s28 + $0xc0] sm:$0xff] %v2342_v44 }
 0x3b4   : > { %v2295_v13 = vpop.permute.xlu1 %2294  ;;  %v2291_v6 = vpop.permute.xlu0 %2290 }
 0x3b5   : > { %v2345_v47 = vmul.f32 %v2295_v13, %v4515_v42  ;;  %v2344_v48 = vmul.f32 %v2291_v6, %v4516_v56 }
 0x3b7   : > { %2377 = vst [vmem:[%s4241_s28 + $0xd8] sm:$0xff] %v2345_v47  ;;  %2376 = vst [vmem:[%s4241_s28 + $0xd0] sm:$0xff] %v2344_v48 }
 0x3b8   : > { %v2306_v26 = vpop.permute.xlu1 %2305  ;;  %v2302_v17 = vpop.permute.xlu0 %2301 }
 0x3b9   : > { %v2347_v34 = vmul.f32 %v2306_v26, %v4517_v30  ;;  %v2346_v18 = vmul.f32 %v2302_v17, %v4518_v25 }
 0x3bb   : > { %2379 = vst [vmem:[%s4241_s28 + $0xe8] sm:$0xff] %v2347_v34  ;;  %2378 = vst [vmem:[%s4241_s28 + $0xe0] sm:$0xff] %v2346_v18 }
 0x3bc   : > { %v2317_v46 = vpop.permute.xlu1 %2316  ;;  %v2313_v57 = vpop.permute.xlu0 %2312 }
 0x3bd   : > { %v2349_v38 = vmul.f32 %v2317_v46, %v4519_v29  ;;  %v2348_v8 = vmul.f32 %v2313_v57, %v4520_v1 }
 0x3bf   : > { %2381 = vst [vmem:[%s4241_s28 + $0xf8] sm:$0xff] %v2349_v38  ;;  %2380 = vst [vmem:[%s4241_s28 + $0xf0] sm:$0xff] %v2348_v8 }
 0x3c0   : > { %2691 = shalt.err (!%p2688_p2)
}
 0x3c1   : > { %s2692_s20 = scalar_lea.hbm %s4306_s7, 4096  ;;  %s2696_s0 = scalar_lea.hbm %s4360_s3, 8192 }
 0x3c2   : > { %p2693_p3 = scmp.ne.s32.totalorder %s4306_s7, %s2692_s20  ;;  %p2697_p8 = scmp.lt.u32.totalorder %s4306_s7, %s4360_s3 }
 0x3c3   : > { %p2698_p11 = scmp.lt.u32.totalorder %s2696_s0, %s2692_s20  ;;  %p2700_p10 = scmp.lt.u32.totalorder %s2692_s20, %s4306_s7 }
 0x3c4   : > { %p2694_p4 = pnand %p2693_p3, %p2815_p5 }
 0x3c5   : > { %p2699_p9 = por %p2698_p11, %p2697_p8 }
 0x3c6   : > { %p2695_p7 = pneg %p2694_p4 }
 0x3c7   : > { %p2701_p12 = por %p2700_p10, %p2699_p9 }
 0x3c9   : > { %p2702_p13 = pnand %p2701_p12, %p2695_p7 }
 0x3cb   : > { %2705 = shalt.err (!%p2702_p13)
}
 0x3cc   : > { %s2755_s8 = smov 128   ;;  %s2756_s19 = smov 8  }
 0x3cd   : > { %2600 = dma.vmem_to_hbm [thread:$0]  (%p2815_p5), %s4308_s1, 4096, %s4306_s7, %s4316_s16, %s2755_s8, %s2755_s8, %s2756_s19  }
 0x3ce PF: > { %p2612_p0 = scmp.ge.s32.totalorder %s2744_s15, 2  ;;  %s2411_s24 = sand.u32 1, %s2732_s12  }
 0x3cf   : > { %s2412_s4 = scalar_lea.sflag [#allocation5], %s2411_s24 }
 0x3d0   : > { %p2607_p1 = pnand %p2612_p0, %p2819_p6 }
 0x3d2   : > { %2727 = dma.done.wait (!%p2607_p1), %s2412_s4, 4096  }
 0x3d3   : > { %2729 = vsyncadd (!%p2607_p1), %s2412_s4, 4294963200  ;;  %s4521_s6 = sld [smem:[#allocation10_spill]]  ;;  %p14_p2 = scmp.ge.s32.totalorder %s2802_s18, 4  }
 0x3d4   : > { %s4522_s12 = smov %s2736_s13  ;;  %s4523_s13 = smov %s2740_s14 }
 0x3d5   : > { %s4525_s15 = smov %s2802_s18  ;;  %16 = sbr.rel (!%p14_p2) target bundleno = 8 (0x8), region = 75 }
 0x3d9   : > { %s4524_s14 = smov %s4521_s6 }
 0x3dc   :  { %2417 = vsyncpa [#allocation5], 1 }
 0x3dd   :  { %2419 = vsyncpa [#allocation5 + $0x1], 1 }
 0x3de   :  { %2420 = vsyncpa [#allocation6], 1 }
 0x3df   :  { %2422 = vsyncpa [#allocation6 + $0x1], 1 }

</bundles_post_ra>
